<compile_context>
chip_gen: v7x
topology: tpu7x:2x2x1
jax: 0.10.0
libtpu: 0.0.40
codegen_flags: <defaults>
</compile_context>

<pallas_src>
import functools

import jax
import jax.numpy as jnp
from jax.experimental import pallas as pl
from jax.experimental.pallas import tpu as pltpu


def _fused_kernel(params_ref, xp_ref, v4_ref, u_ref, *, nr, nc):
    """Single grid step: all three convs + tanh, batch in the lane dim.

    params_ref : SMEM (38,) f32 (scalar prefetch):
                   [ w1*w2 (27) | b1*w2 + b2 (1) | w3 (9) | b3 (1) ]
    xp_ref     : VMEM (4*C, UH, UW, N) f32  parity planes of x:
                   xp[(p*2+q)*C + c, i, j, n] = x[n, c, 2i+p, 2j+q]
    v4_ref     : VMEM (H3, W3, N) f32       tanh output (batch in lanes)
    u_ref      : VMEM (UH, UW, N) f32       scratch: zero-padded sample grid
    nr, nc     : static ints — number of valid (odd) rows/cols of v2 sampled
    """
    pc = xp_ref.shape[0]
    c_in = pc // 4
    h3, w3, _ = v4_ref.shape

    # ---- conv(3->1, 3x3, valid) with the 1x1 conv folded in, evaluated ONLY
    # at the (odd, odd) positions sampled by the stride-2/pad-1/dilation-2
    # conv.  Each tap is a contiguous sublane/outer-dim slice of one parity
    # plane; the scalar weight broadcast-multiplies across all N lanes.
    g = None
    for c in range(c_in):
        for kh in range(3):
            p, r0 = (1 + kh) % 2, (1 + kh) // 2
            for kw in range(3):
                q, c0 = (1 + kw) % 2, (1 + kw) // 2
                plane = (p * 2 + q) * c_in + c
                tap = xp_ref[plane, r0:r0 + nr, c0:c0 + nc, :]
                wgt = params_ref[c * 9 + kh * 3 + kw]
                g = tap * wgt if g is None else g + tap * wgt
    g = g + params_ref[27]                              # (nr, nc, N)

    # ---- u[a, k, :] = pad(v2)[2a, 2k, :]: row 0 / col 0 (and any trailing
    # rows/cols beyond nr/nc) are the dilated conv's zero padding.
    u_ref[...] = jnp.zeros_like(u_ref)
    u_ref[1:1 + nr, 1:1 + nc, :] = g

    # ---- conv3x3 over u is now a plain stride-1 3x3 conv; bias + tanh, then
    # one unmasked full-block store.
    v3 = None
    for kh in range(3):
        for kw in range(3):
            t = u_ref[kh:kh + h3, kw:kw + w3, :]
            wgt = params_ref[28 + kh * 3 + kw]
            v3 = t * wgt if v3 is None else v3 + t * wgt
    v4_ref[...] = jnp.tanh(v3 + params_ref[37])


def model_tanh_forward(x, params):
    """Fused Pallas forward.  Returns (v5, v4).

    v5 == zeros_like(v4) is the module's actual return value (pure wrapper-side
    constant); v4 = tanh(conv3(conv1x1(conv1(x)))) is computed by the kernel
    and kept for verification.
    """
    n, c, h, w = x.shape
    h1, w1 = h - 2, w - 2                                # conv1 output size
    h3 = (h1 + 2 * 1 - 2 * (3 - 1) - 1) // 2 + 1         # dilated conv output
    w3 = (w1 + 2 * 1 - 2 * (3 - 1) - 1) // 2 + 1
    uh, uw = h3 + 2, w3 + 2                              # sampled grid incl. pad
    nr, nc = h1 // 2, w1 // 2                            # valid (odd) rows/cols

    w1p, b1p, w2p, b2p, w3p, b3p = params

    # Fold the pointwise 1x1 conv (scalar weight) into conv1 and pack all
    # parameters into one scalar-prefetch vector (lands in SMEM once).
    w2s = w2p.astype(jnp.float32).reshape(())
    params_flat = jnp.concatenate([
        (w1p.astype(jnp.float32) * w2s).reshape(-1),                           # 27
        (b1p.astype(jnp.float32) * w2s + b2p.astype(jnp.float32)).reshape(-1),  # 1
        w3p.astype(jnp.float32).reshape(-1),                                   # 9
        b3p.astype(jnp.float32).reshape(-1),                                   # 1
    ])                                                                          # (38,)

    # Host-side layout prep: N -> lane dim, parity (space-to-depth) split of
    # the spatial dims so every in-kernel tap read is a contiguous slice.
    hp, wp = h + (h % 2), w + (w % 2)
    xt = jnp.transpose(x.astype(jnp.float32), (1, 2, 3, 0))     # (C, H, W, N)
    if (hp, wp) != (h, w):
        xt = jnp.pad(xt, ((0, 0), (0, hp - h), (0, wp - w), (0, 0)))
    xpar = xt.reshape(c, hp // 2, 2, wp // 2, 2, n)
    xpar = jnp.transpose(xpar, (2, 4, 0, 1, 3, 5))              # (2,2,C,H/2,W/2,N)
    xpar = xpar.reshape(4 * c, hp // 2, wp // 2, n)             # (4C, UH, UW, N)
    assert xpar.shape[1] == uh and xpar.shape[2] == uw

    kernel = functools.partial(_fused_kernel, nr=nr, nc=nc)

    v4_t = pl.pallas_call(
        kernel,
        out_shape=jax.ShapeDtypeStruct((h3, w3, n), jnp.float32),
        grid_spec=pltpu.PrefetchScalarGridSpec(
            num_scalar_prefetch=1,
            grid=(1,),   # latency-bound at this size: one step (single TC does all)
            in_specs=[
                pl.BlockSpec((4 * c, uh, uw, n), lambda i, prm: (0, 0, 0, 0)),
            ],
            out_specs=pl.BlockSpec((h3, w3, n), lambda i, prm: (0, 0, 0)),
            scratch_shapes=[pltpu.VMEM((uh, uw, n), jnp.float32)],
        ),
        compiler_params=pltpu.CompilerParams(
            dimension_semantics=("arbitrary",)),
    )(params_flat, xpar)

    v4 = jnp.transpose(v4_t, (2, 0, 1)).reshape(n, 1, h3, w3)
    v5 = jnp.zeros_like(v4)   # module output; no kernel work spent on it
    return v5, v4


def _ref_forward(x, params):
    """Pure-JAX reference of the PyTorch module (for verification)."""
    w1, b1, w2, b2, w3, b3 = params
    dn = ('NCHW', 'OIHW', 'NCHW')
    v1 = jax.lax.conv_general_dilated(x, w1, (1, 1), 'VALID',
                                      dimension_numbers=dn) + b1.reshape(1, -1, 1, 1)
    v2 = jax.lax.conv_general_dilated(v1, w2, (1, 1), 'VALID',
                                      dimension_numbers=dn) + b2.reshape(1, -1, 1, 1)
    v3 = jax.lax.conv_general_dilated(v2, w3, (2, 2), ((1, 1), (1, 1)),
                                      rhs_dilation=(2, 2),
                                      dimension_numbers=dn) + b3.reshape(1, -1, 1, 1)
    v4 = jnp.tanh(v3)
    return jnp.zeros_like(v4), v4


if __name__ == "__main__":
    key = jax.random.PRNGKey(0)
    kx, k1, k2, k3, k4, k5, k6 = jax.random.split(key, 7)

    # Shapes from the module spec: NCHW, 3 input channels, 24x24 spatial.
    N, C, H, W = 10, 3, 24, 24
    x = jax.random.normal(kx, (N, C, H, W), jnp.float32)

    # deterministic synthetic parameters (PyTorch layer shapes)
    w1 = jax.random.normal(k1, (1, 3, 3, 3), jnp.float32) * 0.2   # Conv2d(3,1,3)
    b1 = jax.random.normal(k2, (1,), jnp.float32) * 0.1
    w2 = jax.random.normal(k3, (1, 1, 1, 1), jnp.float32) * 0.2   # Conv2d(1,1,1)
    b2 = jax.random.normal(k4, (1,), jnp.float32) * 0.1
    w3 = jax.random.normal(k5, (1, 1, 3, 3), jnp.float32) * 0.2   # Conv2d(1,1,3,s=2,p=1,d=2)
    b3 = jax.random.normal(k6, (1,), jnp.float32) * 0.1
    params = (w1, b1, w2, b2, w3, b3)

    v5, v4 = model_tanh_forward(x, params)
    jax.block_until_ready((v5, v4))

    v5_ref, v4_ref = _ref_forward(x, params)
    assert v5.shape == v5_ref.shape == (N, 1, 10, 10), v5.shape
    assert bool(jnp.all(v5 == 0.0)), "v5 (zeros_like) must be all zeros"
    assert bool(jnp.allclose(v4, v4_ref, atol=1e-3, rtol=1e-3)), \
        "fused conv/tanh pipeline mismatch vs reference"

    print("KERNEL_OK")
</pallas_src>

<mosaic_0001>
module attributes {stable_mosaic.version = 11 : i64} {
  func.func @_fused_kernel(%arg0: i32, %arg1: memref<38xf32, #tpu.memory_space<smem>>, %arg2: memref<12x12x12x10xf32, #tpu.memory_space<vmem>>, %arg3: memref<10x10x10xf32, #tpu.memory_space<vmem>>, %arg4: memref<12x12x10xf32, #tpu.memory_space<vmem>>) attributes {dimension_semantics = [#tpu.dimension_semantics<arbitrary>], iteration_bounds = array<i64: 1>, scalar_prefetch = 1 : i64, scratch_operands = 1 : i64, tpu.core_type = #tpu.core_type<tc>, window_params = [{pipeline_mode = #tpu.pipeline_mode<synchronous>, transform_indices = @transform_0, window_bounds = array<i64: 12, 12, 12, 10>}, {pipeline_mode = #tpu.pipeline_mode<synchronous>, transform_indices = @transform_1, window_bounds = array<i64: 10, 10, 10>}]} {
    %c9 = arith.constant 9 : index
    %c0 = arith.constant 0 : index
    %c0_0 = arith.constant 0 : index
    %c0_1 = arith.constant 0 : index
    %0 = vector.load %arg2[%c9, %c0, %c0_0, %c0_1] : memref<12x12x12x10xf32, #tpu.memory_space<vmem>>, vector<1x11x11x10xf32>
    %1 = vector.shape_cast %0 : vector<1x11x11x10xf32> to vector<11x11x10xf32>
    %c0_2 = arith.constant 0 : index
    %2 = memref.load %arg1[%c0_2] : memref<38xf32, #tpu.memory_space<smem>>
    %3 = vector.broadcast %2 : f32 to vector<11x11x10xf32>
    %4 = arith.mulf %1, %3 : vector<11x11x10xf32>
    %c6 = arith.constant 6 : index
    %c0_3 = arith.constant 0 : index
    %c1 = arith.constant 1 : index
    %c0_4 = arith.constant 0 : index
    %5 = vector.load %arg2[%c6, %c0_3, %c1, %c0_4] : memref<12x12x12x10xf32, #tpu.memory_space<vmem>>, vector<1x11x11x10xf32>
    %6 = vector.shape_cast %5 : vector<1x11x11x10xf32> to vector<11x11x10xf32>
    %c1_5 = arith.constant 1 : index
    %7 = memref.load %arg1[%c1_5] : memref<38xf32, #tpu.memory_space<smem>>
    %8 = vector.broadcast %7 : f32 to vector<11x11x10xf32>
    %9 = arith.mulf %6, %8 : vector<11x11x10xf32>
    %10 = arith.addf %4, %9 : vector<11x11x10xf32>
    %c9_6 = arith.constant 9 : index
    %c0_7 = arith.constant 0 : index
    %c1_8 = arith.constant 1 : index
    %c0_9 = arith.constant 0 : index
    %11 = vector.load %arg2[%c9_6, %c0_7, %c1_8, %c0_9] : memref<12x12x12x10xf32, #tpu.memory_space<vmem>>, vector<1x11x11x10xf32>
    %12 = vector.shape_cast %11 : vector<1x11x11x10xf32> to vector<11x11x10xf32>
    %c2 = arith.constant 2 : index
    %13 = memref.load %arg1[%c2] : memref<38xf32, #tpu.memory_space<smem>>
    %14 = vector.broadcast %13 : f32 to vector<11x11x10xf32>
    %15 = arith.mulf %12, %14 : vector<11x11x10xf32>
    %16 = arith.addf %10, %15 : vector<11x11x10xf32>
    %c3 = arith.constant 3 : index
    %c1_10 = arith.constant 1 : index
    %c0_11 = arith.constant 0 : index
    %c0_12 = arith.constant 0 : index
    %17 = vector.load %arg2[%c3, %c1_10, %c0_11, %c0_12] : memref<12x12x12x10xf32, #tpu.memory_space<vmem>>, vector<1x11x11x10xf32>
    %18 = vector.shape_cast %17 : vector<1x11x11x10xf32> to vector<11x11x10xf32>
    %c3_13 = arith.constant 3 : index
    %19 = memref.load %arg1[%c3_13] : memref<38xf32, #tpu.memory_space<smem>>
    %20 = vector.broadcast %19 : f32 to vector<11x11x10xf32>
    %21 = arith.mulf %18, %20 : vector<11x11x10xf32>
    %22 = arith.addf %16, %21 : vector<11x11x10xf32>
    %c0_14 = arith.constant 0 : index
    %c1_15 = arith.constant 1 : index
    %c1_16 = arith.constant 1 : index
    %c0_17 = arith.constant 0 : index
    %23 = vector.load %arg2[%c0_14, %c1_15, %c1_16, %c0_17] : memref<12x12x12x10xf32, #tpu.memory_space<vmem>>, vector<1x11x11x10xf32>
    %24 = vector.shape_cast %23 : vector<1x11x11x10xf32> to vector<11x11x10xf32>
    %c4 = arith.constant 4 : index
    %25 = memref.load %arg1[%c4] : memref<38xf32, #tpu.memory_space<smem>>
    %26 = vector.broadcast %25 : f32 to vector<11x11x10xf32>
    %27 = arith.mulf %24, %26 : vector<11x11x10xf32>
    %28 = arith.addf %22, %27 : vector<11x11x10xf32>
    %c3_18 = arith.constant 3 : index
    %c1_19 = arith.constant 1 : index
    %c1_20 = arith.constant 1 : index
    %c0_21 = arith.constant 0 : index
    %29 = vector.load %arg2[%c3_18, %c1_19, %c1_20, %c0_21] : memref<12x12x12x10xf32, #tpu.memory_space<vmem>>, vector<1x11x11x10xf32>
    %30 = vector.shape_cast %29 : vector<1x11x11x10xf32> to vector<11x11x10xf32>
    %c5 = arith.constant 5 : index
    %31 = memref.load %arg1[%c5] : memref<38xf32, #tpu.memory_space<smem>>
    %32 = vector.broadcast %31 : f32 to vector<11x11x10xf32>
    %33 = arith.mulf %30, %32 : vector<11x11x10xf32>
    %34 = arith.addf %28, %33 : vector<11x11x10xf32>
    %c9_22 = arith.constant 9 : index
    %c1_23 = arith.constant 1 : index
    %c0_24 = arith.constant 0 : index
    %c0_25 = arith.constant 0 : index
    %35 = vector.load %arg2[%c9_22, %c1_23, %c0_24, %c0_25] : memref<12x12x12x10xf32, #tpu.memory_space<vmem>>, vector<1x11x11x10xf32>
    %36 = vector.shape_cast %35 : vector<1x11x11x10xf32> to vector<11x11x10xf32>
    %c6_26 = arith.constant 6 : index
    %37 = memref.load %arg1[%c6_26] : memref<38xf32, #tpu.memory_space<smem>>
    %38 = vector.broadcast %37 : f32 to vector<11x11x10xf32>
    %39 = arith.mulf %36, %38 : vector<11x11x10xf32>
    %40 = arith.addf %34, %39 : vector<11x11x10xf32>
    %c6_27 = arith.constant 6 : index
    %c1_28 = arith.constant 1 : index
    %c1_29 = arith.constant 1 : index
    %c0_30 = arith.constant 0 : index
    %41 = vector.load %arg2[%c6_27, %c1_28, %c1_29, %c0_30] : memref<12x12x12x10xf32, #tpu.memory_space<vmem>>, vector<1x11x11x10xf32>
    %42 = vector.shape_cast %41 : vector<1x11x11x10xf32> to vector<11x11x10xf32>
    %c7 = arith.constant 7 : index
    %43 = memref.load %arg1[%c7] : memref<38xf32, #tpu.memory_space<smem>>
    %44 = vector.broadcast %43 : f32 to vector<11x11x10xf32>
    %45 = arith.mulf %42, %44 : vector<11x11x10xf32>
    %46 = arith.addf %40, %45 : vector<11x11x10xf32>
    %c9_31 = arith.constant 9 : index
    %c1_32 = arith.constant 1 : index
    %c1_33 = arith.constant 1 : index
    %c0_34 = arith.constant 0 : index
    %47 = vector.load %arg2[%c9_31, %c1_32, %c1_33, %c0_34] : memref<12x12x12x10xf32, #tpu.memory_space<vmem>>, vector<1x11x11x10xf32>
    %48 = vector.shape_cast %47 : vector<1x11x11x10xf32> to vector<11x11x10xf32>
    %c8 = arith.constant 8 : index
    %49 = memref.load %arg1[%c8] : memref<38xf32, #tpu.memory_space<smem>>
    %50 = vector.broadcast %49 : f32 to vector<11x11x10xf32>
    %51 = arith.mulf %48, %50 : vector<11x11x10xf32>
    %52 = arith.addf %46, %51 : vector<11x11x10xf32>
    %c10 = arith.constant 10 : index
    %c0_35 = arith.constant 0 : index
    %c0_36 = arith.constant 0 : index
    %c0_37 = arith.constant 0 : index
    %53 = vector.load %arg2[%c10, %c0_35, %c0_36, %c0_37] : memref<12x12x12x10xf32, #tpu.memory_space<vmem>>, vector<1x11x11x10xf32>
    %54 = vector.shape_cast %53 : vector<1x11x11x10xf32> to vector<11x11x10xf32>
    %c9_38 = arith.constant 9 : index
    %55 = memref.load %arg1[%c9_38] : memref<38xf32, #tpu.memory_space<smem>>
    %56 = vector.broadcast %55 : f32 to vector<11x11x10xf32>
    %57 = arith.mulf %54, %56 : vector<11x11x10xf32>
    %58 = arith.addf %52, %57 : vector<11x11x10xf32>
    %c7_39 = arith.constant 7 : index
    %c0_40 = arith.constant 0 : index
    %c1_41 = arith.constant 1 : index
    %c0_42 = arith.constant 0 : index
    %59 = vector.load %arg2[%c7_39, %c0_40, %c1_41, %c0_42] : memref<12x12x12x10xf32, #tpu.memory_space<vmem>>, vector<1x11x11x10xf32>
    %60 = vector.shape_cast %59 : vector<1x11x11x10xf32> to vector<11x11x10xf32>
    %c10_43 = arith.constant 10 : index
    %61 = memref.load %arg1[%c10_43] : memref<38xf32, #tpu.memory_space<smem>>
    %62 = vector.broadcast %61 : f32 to vector<11x11x10xf32>
    %63 = arith.mulf %60, %62 : vector<11x11x10xf32>
    %64 = arith.addf %58, %63 : vector<11x11x10xf32>
    %c10_44 = arith.constant 10 : index
    %c0_45 = arith.constant 0 : index
    %c1_46 = arith.constant 1 : index
    %c0_47 = arith.constant 0 : index
    %65 = vector.load %arg2[%c10_44, %c0_45, %c1_46, %c0_47] : memref<12x12x12x10xf32, #tpu.memory_space<vmem>>, vector<1x11x11x10xf32>
    %66 = vector.shape_cast %65 : vector<1x11x11x10xf32> to vector<11x11x10xf32>
    %c11 = arith.constant 11 : index
    %67 = memref.load %arg1[%c11] : memref<38xf32, #tpu.memory_space<smem>>
    %68 = vector.broadcast %67 : f32 to vector<11x11x10xf32>
    %69 = arith.mulf %66, %68 : vector<11x11x10xf32>
    %70 = arith.addf %64, %69 : vector<11x11x10xf32>
    %c4_48 = arith.constant 4 : index
    %c1_49 = arith.constant 1 : index
    %c0_50 = arith.constant 0 : index
    %c0_51 = arith.constant 0 : index
    %71 = vector.load %arg2[%c4_48, %c1_49, %c0_50, %c0_51] : memref<12x12x12x10xf32, #tpu.memory_space<vmem>>, vector<1x11x11x10xf32>
    %72 = vector.shape_cast %71 : vector<1x11x11x10xf32> to vector<11x11x10xf32>
    %c12 = arith.constant 12 : index
    %73 = memref.load %arg1[%c12] : memref<38xf32, #tpu.memory_space<smem>>
    %74 = vector.broadcast %73 : f32 to vector<11x11x10xf32>
    %75 = arith.mulf %72, %74 : vector<11x11x10xf32>
    %76 = arith.addf %70, %75 : vector<11x11x10xf32>
    %c1_52 = arith.constant 1 : index
    %c1_53 = arith.constant 1 : index
    %c1_54 = arith.constant 1 : index
    %c0_55 = arith.constant 0 : index
    %77 = vector.load %arg2[%c1_52, %c1_53, %c1_54, %c0_55] : memref<12x12x12x10xf32, #tpu.memory_space<vmem>>, vector<1x11x11x10xf32>
    %78 = vector.shape_cast %77 : vector<1x11x11x10xf32> to vector<11x11x10xf32>
    %c13 = arith.constant 13 : index
    %79 = memref.load %arg1[%c13] : memref<38xf32, #tpu.memory_space<smem>>
    %80 = vector.broadcast %79 : f32 to vector<11x11x10xf32>
    %81 = arith.mulf %78, %80 : vector<11x11x10xf32>
    %82 = arith.addf %76, %81 : vector<11x11x10xf32>
    %c4_56 = arith.constant 4 : index
    %c1_57 = arith.constant 1 : index
    %c1_58 = arith.constant 1 : index
    %c0_59 = arith.constant 0 : index
    %83 = vector.load %arg2[%c4_56, %c1_57, %c1_58, %c0_59] : memref<12x12x12x10xf32, #tpu.memory_space<vmem>>, vector<1x11x11x10xf32>
    %84 = vector.shape_cast %83 : vector<1x11x11x10xf32> to vector<11x11x10xf32>
    %c14 = arith.constant 14 : index
    %85 = memref.load %arg1[%c14] : memref<38xf32, #tpu.memory_space<smem>>
    %86 = vector.broadcast %85 : f32 to vector<11x11x10xf32>
    %87 = arith.mulf %84, %86 : vector<11x11x10xf32>
    %88 = arith.addf %82, %87 : vector<11x11x10xf32>
    %c10_60 = arith.constant 10 : index
    %c1_61 = arith.constant 1 : index
    %c0_62 = arith.constant 0 : index
    %c0_63 = arith.constant 0 : index
    %89 = vector.load %arg2[%c10_60, %c1_61, %c0_62, %c0_63] : memref<12x12x12x10xf32, #tpu.memory_space<vmem>>, vector<1x11x11x10xf32>
    %90 = vector.shape_cast %89 : vector<1x11x11x10xf32> to vector<11x11x10xf32>
    %c15 = arith.constant 15 : index
    %91 = memref.load %arg1[%c15] : memref<38xf32, #tpu.memory_space<smem>>
    %92 = vector.broadcast %91 : f32 to vector<11x11x10xf32>
    %93 = arith.mulf %90, %92 : vector<11x11x10xf32>
    %94 = arith.addf %88, %93 : vector<11x11x10xf32>
    %c7_64 = arith.constant 7 : index
    %c1_65 = arith.constant 1 : index
    %c1_66 = arith.constant 1 : index
    %c0_67 = arith.constant 0 : index
    %95 = vector.load %arg2[%c7_64, %c1_65, %c1_66, %c0_67] : memref<12x12x12x10xf32, #tpu.memory_space<vmem>>, vector<1x11x11x10xf32>
    %96 = vector.shape_cast %95 : vector<1x11x11x10xf32> to vector<11x11x10xf32>
    %c16 = arith.constant 16 : index
    %97 = memref.load %arg1[%c16] : memref<38xf32, #tpu.memory_space<smem>>
    %98 = vector.broadcast %97 : f32 to vector<11x11x10xf32>
    %99 = arith.mulf %96, %98 : vector<11x11x10xf32>
    %100 = arith.addf %94, %99 : vector<11x11x10xf32>
    %c10_68 = arith.constant 10 : index
    %c1_69 = arith.constant 1 : index
    %c1_70 = arith.constant 1 : index
    %c0_71 = arith.constant 0 : index
    %101 = vector.load %arg2[%c10_68, %c1_69, %c1_70, %c0_71] : memref<12x12x12x10xf32, #tpu.memory_space<vmem>>, vector<1x11x11x10xf32>
    %102 = vector.shape_cast %101 : vector<1x11x11x10xf32> to vector<11x11x10xf32>
    %c17 = arith.constant 17 : index
    %103 = memref.load %arg1[%c17] : memref<38xf32, #tpu.memory_space<smem>>
    %104 = vector.broadcast %103 : f32 to vector<11x11x10xf32>
    %105 = arith.mulf %102, %104 : vector<11x11x10xf32>
    %106 = arith.addf %100, %105 : vector<11x11x10xf32>
    %c11_72 = arith.constant 11 : index
    %c0_73 = arith.constant 0 : index
    %c0_74 = arith.constant 0 : index
    %c0_75 = arith.constant 0 : index
    %107 = vector.load %arg2[%c11_72, %c0_73, %c0_74, %c0_75] : memref<12x12x12x10xf32, #tpu.memory_space<vmem>>, vector<1x11x11x10xf32>
    %108 = vector.shape_cast %107 : vector<1x11x11x10xf32> to vector<11x11x10xf32>
    %c18 = arith.constant 18 : index
    %109 = memref.load %arg1[%c18] : memref<38xf32, #tpu.memory_space<smem>>
    %110 = vector.broadcast %109 : f32 to vector<11x11x10xf32>
    %111 = arith.mulf %108, %110 : vector<11x11x10xf32>
    %112 = arith.addf %106, %111 : vector<11x11x10xf32>
    %c8_76 = arith.constant 8 : index
    %c0_77 = arith.constant 0 : index
    %c1_78 = arith.constant 1 : index
    %c0_79 = arith.constant 0 : index
    %113 = vector.load %arg2[%c8_76, %c0_77, %c1_78, %c0_79] : memref<12x12x12x10xf32, #tpu.memory_space<vmem>>, vector<1x11x11x10xf32>
    %114 = vector.shape_cast %113 : vector<1x11x11x10xf32> to vector<11x11x10xf32>
    %c19 = arith.constant 19 : index
    %115 = memref.load %arg1[%c19] : memref<38xf32, #tpu.memory_space<smem>>
    %116 = vector.broadcast %115 : f32 to vector<11x11x10xf32>
    %117 = arith.mulf %114, %116 : vector<11x11x10xf32>
    %118 = arith.addf %112, %117 : vector<11x11x10xf32>
    %c11_80 = arith.constant 11 : index
    %c0_81 = arith.constant 0 : index
    %c1_82 = arith.constant 1 : index
    %c0_83 = arith.constant 0 : index
    %119 = vector.load %arg2[%c11_80, %c0_81, %c1_82, %c0_83] : memref<12x12x12x10xf32, #tpu.memory_space<vmem>>, vector<1x11x11x10xf32>
    %120 = vector.shape_cast %119 : vector<1x11x11x10xf32> to vector<11x11x10xf32>
    %c20 = arith.constant 20 : index
    %121 = memref.load %arg1[%c20] : memref<38xf32, #tpu.memory_space<smem>>
    %122 = vector.broadcast %121 : f32 to vector<11x11x10xf32>
    %123 = arith.mulf %120, %122 : vector<11x11x10xf32>
    %124 = arith.addf %118, %123 : vector<11x11x10xf32>
    %c5_84 = arith.constant 5 : index
    %c1_85 = arith.constant 1 : index
    %c0_86 = arith.constant 0 : index
    %c0_87 = arith.constant 0 : index
    %125 = vector.load %arg2[%c5_84, %c1_85, %c0_86, %c0_87] : memref<12x12x12x10xf32, #tpu.memory_space<vmem>>, vector<1x11x11x10xf32>
    %126 = vector.shape_cast %125 : vector<1x11x11x10xf32> to vector<11x11x10xf32>
    %c21 = arith.constant 21 : index
    %127 = memref.load %arg1[%c21] : memref<38xf32, #tpu.memory_space<smem>>
    %128 = vector.broadcast %127 : f32 to vector<11x11x10xf32>
    %129 = arith.mulf %126, %128 : vector<11x11x10xf32>
    %130 = arith.addf %124, %129 : vector<11x11x10xf32>
    %c2_88 = arith.constant 2 : index
    %c1_89 = arith.constant 1 : index
    %c1_90 = arith.constant 1 : index
    %c0_91 = arith.constant 0 : index
    %131 = vector.load %arg2[%c2_88, %c1_89, %c1_90, %c0_91] : memref<12x12x12x10xf32, #tpu.memory_space<vmem>>, vector<1x11x11x10xf32>
    %132 = vector.shape_cast %131 : vector<1x11x11x10xf32> to vector<11x11x10xf32>
    %c22 = arith.constant 22 : index
    %133 = memref.load %arg1[%c22] : memref<38xf32, #tpu.memory_space<smem>>
    %134 = vector.broadcast %133 : f32 to vector<11x11x10xf32>
    %135 = arith.mulf %132, %134 : vector<11x11x10xf32>
    %136 = arith.addf %130, %135 : vector<11x11x10xf32>
    %c5_92 = arith.constant 5 : index
    %c1_93 = arith.constant 1 : index
    %c1_94 = arith.constant 1 : index
    %c0_95 = arith.constant 0 : index
    %137 = vector.load %arg2[%c5_92, %c1_93, %c1_94, %c0_95] : memref<12x12x12x10xf32, #tpu.memory_space<vmem>>, vector<1x11x11x10xf32>
    %138 = vector.shape_cast %137 : vector<1x11x11x10xf32> to vector<11x11x10xf32>
    %c23 = arith.constant 23 : index
    %139 = memref.load %arg1[%c23] : memref<38xf32, #tpu.memory_space<smem>>
    %140 = vector.broadcast %139 : f32 to vector<11x11x10xf32>
    %141 = arith.mulf %138, %140 : vector<11x11x10xf32>
    %142 = arith.addf %136, %141 : vector<11x11x10xf32>
    %c11_96 = arith.constant 11 : index
    %c1_97 = arith.constant 1 : index
    %c0_98 = arith.constant 0 : index
    %c0_99 = arith.constant 0 : index
    %143 = vector.load %arg2[%c11_96, %c1_97, %c0_98, %c0_99] : memref<12x12x12x10xf32, #tpu.memory_space<vmem>>, vector<1x11x11x10xf32>
    %144 = vector.shape_cast %143 : vector<1x11x11x10xf32> to vector<11x11x10xf32>
    %c24 = arith.constant 24 : index
    %145 = memref.load %arg1[%c24] : memref<38xf32, #tpu.memory_space<smem>>
    %146 = vector.broadcast %145 : f32 to vector<11x11x10xf32>
    %147 = arith.mulf %144, %146 : vector<11x11x10xf32>
    %148 = arith.addf %142, %147 : vector<11x11x10xf32>
    %c8_100 = arith.constant 8 : index
    %c1_101 = arith.constant 1 : index
    %c1_102 = arith.constant 1 : index
    %c0_103 = arith.constant 0 : index
    %149 = vector.load %arg2[%c8_100, %c1_101, %c1_102, %c0_103] : memref<12x12x12x10xf32, #tpu.memory_space<vmem>>, vector<1x11x11x10xf32>
    %150 = vector.shape_cast %149 : vector<1x11x11x10xf32> to vector<11x11x10xf32>
    %c25 = arith.constant 25 : index
    %151 = memref.load %arg1[%c25] : memref<38xf32, #tpu.memory_space<smem>>
    %152 = vector.broadcast %151 : f32 to vector<11x11x10xf32>
    %153 = arith.mulf %150, %152 : vector<11x11x10xf32>
    %154 = arith.addf %148, %153 : vector<11x11x10xf32>
    %c11_104 = arith.constant 11 : index
    %c1_105 = arith.constant 1 : index
    %c1_106 = arith.constant 1 : index
    %c0_107 = arith.constant 0 : index
    %155 = vector.load %arg2[%c11_104, %c1_105, %c1_106, %c0_107] : memref<12x12x12x10xf32, #tpu.memory_space<vmem>>, vector<1x11x11x10xf32>
    %156 = vector.shape_cast %155 : vector<1x11x11x10xf32> to vector<11x11x10xf32>
    %c26 = arith.constant 26 : index
    %157 = memref.load %arg1[%c26] : memref<38xf32, #tpu.memory_space<smem>>
    %158 = vector.broadcast %157 : f32 to vector<11x11x10xf32>
    %159 = arith.mulf %156, %158 : vector<11x11x10xf32>
    %160 = arith.addf %154, %159 : vector<11x11x10xf32>
    %c27 = arith.constant 27 : index
    %161 = memref.load %arg1[%c27] : memref<38xf32, #tpu.memory_space<smem>>
    %162 = vector.broadcast %161 : f32 to vector<11x11x10xf32>
    %163 = arith.addf %160, %162 : vector<11x11x10xf32>
    %cst = arith.constant 0.000000e+00 : f32
    %164 = vector.broadcast %cst : f32 to vector<12x12x10xf32>
    %c0_108 = arith.constant 0 : index
    %c0_109 = arith.constant 0 : index
    %c0_110 = arith.constant 0 : index
    %165 = vector.load %arg4[%c0_108, %c0_109, %c0_110] : memref<12x12x10xf32, #tpu.memory_space<vmem>>, vector<12x12x10xf32>
    tpu.vector_store %arg4[%c0_108, %c0_109, %c0_110], %164 {strides = array<i32>} : memref<12x12x10xf32, #tpu.memory_space<vmem>>, vector<12x12x10xf32>,
    %c1_111 = arith.constant 1 : index
    %c1_112 = arith.constant 1 : index
    %c0_113 = arith.constant 0 : index
    %166 = vector.load %arg4[%c1_111, %c1_112, %c0_113] : memref<12x12x10xf32, #tpu.memory_space<vmem>>, vector<11x11x10xf32>
    tpu.vector_store %arg4[%c1_111, %c1_112, %c0_113], %163 {strides = array<i32>} : memref<12x12x10xf32, #tpu.memory_space<vmem>>, vector<11x11x10xf32>,
    %c0_114 = arith.constant 0 : index
    %c0_115 = arith.constant 0 : index
    %c0_116 = arith.constant 0 : index
    %167 = vector.load %arg4[%c0_114, %c0_115, %c0_116] : memref<12x12x10xf32, #tpu.memory_space<vmem>>, vector<10x10x10xf32>
    %c28 = arith.constant 28 : index
    %168 = memref.load %arg1[%c28] : memref<38xf32, #tpu.memory_space<smem>>
    %169 = vector.broadcast %168 : f32 to vector<10x10x10xf32>
    %170 = arith.mulf %167, %169 : vector<10x10x10xf32>
    %c0_117 = arith.constant 0 : index
    %c1_118 = arith.constant 1 : index
    %c0_119 = arith.constant 0 : index
    %171 = vector.load %arg4[%c0_117, %c1_118, %c0_119] : memref<12x12x10xf32, #tpu.memory_space<vmem>>, vector<10x10x10xf32>
    %c29 = arith.constant 29 : index
    %172 = memref.load %arg1[%c29] : memref<38xf32, #tpu.memory_space<smem>>
    %173 = vector.broadcast %172 : f32 to vector<10x10x10xf32>
    %174 = arith.mulf %171, %173 : vector<10x10x10xf32>
    %175 = arith.addf %170, %174 : vector<10x10x10xf32>
    %c0_120 = arith.constant 0 : index
    %c2_121 = arith.constant 2 : index
    %c0_122 = arith.constant 0 : index
    %176 = vector.load %arg4[%c0_120, %c2_121, %c0_122] : memref<12x12x10xf32, #tpu.memory_space<vmem>>, vector<10x10x10xf32>
    %c30 = arith.constant 30 : index
    %177 = memref.load %arg1[%c30] : memref<38xf32, #tpu.memory_space<smem>>
    %178 = vector.broadcast %177 : f32 to vector<10x10x10xf32>
    %179 = arith.mulf %176, %178 : vector<10x10x10xf32>
    %180 = arith.addf %175, %179 : vector<10x10x10xf32>
    %c1_123 = arith.constant 1 : index
    %c0_124 = arith.constant 0 : index
    %c0_125 = arith.constant 0 : index
    %181 = vector.load %arg4[%c1_123, %c0_124, %c0_125] : memref<12x12x10xf32, #tpu.memory_space<vmem>>, vector<10x10x10xf32>
    %c31 = arith.constant 31 : index
    %182 = memref.load %arg1[%c31] : memref<38xf32, #tpu.memory_space<smem>>
    %183 = vector.broadcast %182 : f32 to vector<10x10x10xf32>
    %184 = arith.mulf %181, %183 : vector<10x10x10xf32>
    %185 = arith.addf %180, %184 : vector<10x10x10xf32>
    %c1_126 = arith.constant 1 : index
    %c1_127 = arith.constant 1 : index
    %c0_128 = arith.constant 0 : index
    %186 = vector.load %arg4[%c1_126, %c1_127, %c0_128] : memref<12x12x10xf32, #tpu.memory_space<vmem>>, vector<10x10x10xf32>
    %c32 = arith.constant 32 : index
    %187 = memref.load %arg1[%c32] : memref<38xf32, #tpu.memory_space<smem>>
    %188 = vector.broadcast %187 : f32 to vector<10x10x10xf32>
    %189 = arith.mulf %186, %188 : vector<10x10x10xf32>
    %190 = arith.addf %185, %189 : vector<10x10x10xf32>
    %c1_129 = arith.constant 1 : index
    %c2_130 = arith.constant 2 : index
    %c0_131 = arith.constant 0 : index
    %191 = vector.load %arg4[%c1_129, %c2_130, %c0_131] : memref<12x12x10xf32, #tpu.memory_space<vmem>>, vector<10x10x10xf32>
    %c33 = arith.constant 33 : index
    %192 = memref.load %arg1[%c33] : memref<38xf32, #tpu.memory_space<smem>>
    %193 = vector.broadcast %192 : f32 to vector<10x10x10xf32>
    %194 = arith.mulf %191, %193 : vector<10x10x10xf32>
    %195 = arith.addf %190, %194 : vector<10x10x10xf32>
    %c2_132 = arith.constant 2 : index
    %c0_133 = arith.constant 0 : index
    %c0_134 = arith.constant 0 : index
    %196 = vector.load %arg4[%c2_132, %c0_133, %c0_134] : memref<12x12x10xf32, #tpu.memory_space<vmem>>, vector<10x10x10xf32>
    %c34 = arith.constant 34 : index
    %197 = memref.load %arg1[%c34] : memref<38xf32, #tpu.memory_space<smem>>
    %198 = vector.broadcast %197 : f32 to vector<10x10x10xf32>
    %199 = arith.mulf %196, %198 : vector<10x10x10xf32>
    %200 = arith.addf %195, %199 : vector<10x10x10xf32>
    %c2_135 = arith.constant 2 : index
    %c1_136 = arith.constant 1 : index
    %c0_137 = arith.constant 0 : index
    %201 = vector.load %arg4[%c2_135, %c1_136, %c0_137] : memref<12x12x10xf32, #tpu.memory_space<vmem>>, vector<10x10x10xf32>
    %c35 = arith.constant 35 : index
    %202 = memref.load %arg1[%c35] : memref<38xf32, #tpu.memory_space<smem>>
    %203 = vector.broadcast %202 : f32 to vector<10x10x10xf32>
    %204 = arith.mulf %201, %203 : vector<10x10x10xf32>
    %205 = arith.addf %200, %204 : vector<10x10x10xf32>
    %c2_138 = arith.constant 2 : index
    %c2_139 = arith.constant 2 : index
    %c0_140 = arith.constant 0 : index
    %206 = vector.load %arg4[%c2_138, %c2_139, %c0_140] : memref<12x12x10xf32, #tpu.memory_space<vmem>>, vector<10x10x10xf32>
    %c36 = arith.constant 36 : index
    %207 = memref.load %arg1[%c36] : memref<38xf32, #tpu.memory_space<smem>>
    %208 = vector.broadcast %207 : f32 to vector<10x10x10xf32>
    %209 = arith.mulf %206, %208 : vector<10x10x10xf32>
    %210 = arith.addf %205, %209 : vector<10x10x10xf32>
    %c37 = arith.constant 37 : index
    %211 = memref.load %arg1[%c37] : memref<38xf32, #tpu.memory_space<smem>>
    %212 = vector.broadcast %211 : f32 to vector<10x10x10xf32>
    %213 = arith.addf %210, %212 : vector<10x10x10xf32>
    %214 = math.tanh %213 : vector<10x10x10xf32>
    %c0_141 = arith.constant 0 : index
    %c0_142 = arith.constant 0 : index
    %c0_143 = arith.constant 0 : index
    %215 = vector.load %arg3[%c0_141, %c0_142, %c0_143] : memref<10x10x10xf32, #tpu.memory_space<vmem>>, vector<10x10x10xf32>
    tpu.vector_store %arg3[%c0_141, %c0_142, %c0_143], %214 {strides = array<i32>} : memref<10x10x10xf32, #tpu.memory_space<vmem>>, vector<10x10x10xf32>,
    return
  }
  func.func @transform_0(%arg0: i32, %arg1: memref<38xf32, #tpu.memory_space<smem>>) -> (i32, i32, i32, i32) {
    %c0_i32 = arith.constant 0 : i32
    %c0_i32_0 = arith.constant 0 : i32
    %c0_i32_1 = arith.constant 0 : i32
    %c0_i32_2 = arith.constant 0 : i32
    %c0_i32_3 = arith.constant 0 : i32
    return %c0_i32, %c0_i32_0, %c0_i32_1, %c0_i32_2 : i32, i32, i32, i32
  }
  func.func @transform_1(%arg0: i32, %arg1: memref<38xf32, #tpu.memory_space<smem>>) -> (i32, i32, i32) {
    %c0_i32 = arith.constant 0 : i32
    %c0_i32_0 = arith.constant 0 : i32
    %c0_i32_1 = arith.constant 0 : i32
    %c0_i32_2 = arith.constant 0 : i32
    return %c0_i32, %c0_i32_0, %c0_i32_1 : i32, i32, i32
  }
}

</mosaic_0001>

<bundles_post_ra>
// kernel: tpu_custom_call.1
= control target key start
LH: loop header
LB: loop body
LE: loop exit
PB: predicated region body
PF: predicated region fallthrough
CT: control target
= control target key end

     0   :  { %s7480_s0 = inlined_call_operand.vmem [shape: f32[38], index: 0, kind: input, shape index: {}]   ;;  %s7481_s1 = inlined_call_operand.vmem [shape: f32[12,12,12,10], index: 1, kind: input, shape index: {}]   ;;  %s7482_s2 = inlined_call_operand.hbm [shape: f32[10,10,10], index: 2, kind: output, shape index: {}]  }
   0x1   :  { %s7_s11 = sshll.u32 %s7480_s0, 4  ;;  %s8_s11 = int_to_ptr.vmem [resolvable:$true] %s7_s11 }
   0x2   :  { %s3216_s12 = scalar_lea.vmem %s8_s11, 16  ;;  %p3221_p1 = scmp.lt.s32.totalorder %s8_s11, %s8_s11 }
   0x3   :  { %p3217_p0 = scmp.ne.s32.totalorder %s8_s11, %s3216_s12  ;;  %p3222_p2 = scmp.lt.s32.totalorder %s3216_s12, %s3216_s12 }
   0x5   :  { %p3223_p3 = por %p3222_p2, %p3221_p1 }
   0x7   :  { %p3224_p4 = pnand %p3223_p3, %p3217_p0 }
   0x9   :  { %3227 = shalt.err (!%p3224_p4)  }
   0xa   :  { %s3254_s13 = smov [#allocation4]  }
   0xb   :  { %10 = dma.vmem_to_smem %s8_s11, 16, %s3254_s13, [#allocation3] }
   0xc   :  { %3250 = dma.done.wait [#allocation3], 16 }
   0xd   :  { %3251 = vsyncadd [#allocation3], 4294967280 }
   0xe   :  { %12 = sfence }
   0xf   :  { %vm1872_vm0 = vcmask 80896   ;;  %vm1874_vm1 = vcmask 76800   ;;  %s3277_s14 = sld [smem:[#allocation4]]  ;;  %v3255_v0 = vmov 0.0   ;;  %s2584_s0 = sld [smem:[#allocation4 + $0x1]]  ;;  %v2540_v1 = vld [vmem:[%s7481_s1 + $0x6c0] sm:$0xff] }
  0x10   :  { %1873 = vst.msk [vmem:[#allocation2] sm:$0xff] %vm1872_vm0, %v3255_v0  ;;  %1876 = vst.msk [vmem:[#allocation2 + $0x10] sm:$0xff] %vm1872_vm0, %v3255_v0  ;;  %s2607_s15 = sld [smem:[#allocation4 + $0x2]]  ;;  %s2630_s16 = sld [smem:[#allocation4 + $0x3]]  ;;  %v2562_v2 = vld [vmem:[%s7481_s1 + $0x481] sm:$0xff]  ;;  %v2608_v5 = vld [vmem:[%s7481_s1 + $0x250] sm:$0xff] }
  0x11   :  { %1878 = vst.msk [vmem:[#allocation2 + $0x20] sm:$0xff] %vm1872_vm0, %v3255_v0  ;;  %1880 = vst.msk [vmem:[#allocation2 + $0x30] sm:$0xff] %vm1872_vm0, %v3255_v0  ;;  %s2653_s17 = sld [smem:[#allocation4 + $0x4]]  ;;  %s2676_s18 = sld [smem:[#allocation4 + $0x5]]  ;;  %v2585_v3 = vld [vmem:[%s7481_s1 + $0x6c1] sm:$0xff]  ;;  %v2631_v13 = vld [vmem:[%s7481_s1 + $0x11] sm:$0xff] }
  0x12   :  { %1882 = vst.msk [vmem:[#allocation2 + $0x40] sm:$0xff] %vm1872_vm0, %v3255_v0  ;;  %1884 = vst.msk [vmem:[#allocation2 + $0x50] sm:$0xff] %vm1872_vm0, %v3255_v0  ;;  %s3303_s19 = sld [smem:[#allocation4 + $0x6]]  ;;  %s3308_s22 = sld [smem:[#allocation4 + $0x7]]  ;;  %v2654_v15 = vld [vmem:[%s7481_s1 + $0x251] sm:$0xff]  ;;  %v2746_v26 = vld [vmem:[%s7481_s1 + $0x780] sm:$0xff] }
  0x13   :  { %1886 = vst.msk [vmem:[#allocation2 + $0x60] sm:$0xff] %vm1872_vm0, %v3255_v0  ;;  %1888 = vst.msk [vmem:[#allocation2 + $0x70] sm:$0xff] %vm1872_vm0, %v3255_v0  ;;  %s3310_s23 = sld [smem:[#allocation4 + $0x8]]  ;;  %s3318_s28 = sld [smem:[#allocation4 + $0x9]]  ;;  %v2677_v18 = vld [vmem:[%s7481_s1 + $0x6d0] sm:$0xff]  ;;  %v2769_v31 = vld [vmem:[%s7481_s1 + $0x541] sm:$0xff] }
  0x14   :  { %1890 = vst.msk [vmem:[#allocation2 + $0x80] sm:$0xff] %vm1872_vm0, %v3255_v0  ;;  %1892 = vst.msk [vmem:[#allocation2 + $0x90] sm:$0xff] %vm1872_vm0, %v3255_v0  ;;  %s3320_s29 = sld [smem:[#allocation4 + $0xa]]  ;;  %s3328_s4 = sld [smem:[#allocation4 + $0xb]]  ;;  %v3378_v21 = vld [vmem:[%s7481_s1 + $0x491] sm:$0xff]  ;;  %v2792_v32 = vld [vmem:[%s7481_s1 + $0x781] sm:$0xff] }
  0x15   :  { %1894 = vst.msk [vmem:[#allocation2 + $0xa0] sm:$0xff] %vm1872_vm0, %v3255_v0  ;;  %1896 = vst.msk [vmem:[#allocation2 + $0xb0] sm:$0xff] %vm1872_vm0, %v3255_v0  ;;  %v3323_v4 = vstv %s3277_s14  ;;  %s3330_s5 = sld [smem:[#allocation4 + $0xc]]  ;;  %v3333_v7 = vstv %s2584_s0  ;;  %s3337_s6 = sld [smem:[#allocation4 + $0xd]]  ;;  %v3386_v24 = vld [vmem:[%s7481_s1 + $0x6d1] sm:$0xff]  ;;  %v2953_v54 = vld [vmem:[%s7481_s1 + $0x840] sm:$0xff] }
  0x16   :  { %1875 = vst.msk [vmem:[#allocation2 + $0x8] sm:$0xf] %vm1874_vm1, %v3255_v0  ;;  %1877 = vst.msk [vmem:[#allocation2 + $0x18] sm:$0xf] %vm1874_vm1, %v3255_v0  ;;  %v41_v6 = vmul.f32 %v2540_v1, %v3323_v4  ;;  %v3335_v8 = vstv %s2607_s15  ;;  %s3339_s7 = sld [smem:[#allocation4 + $0xe]]  ;;  %v88_v9 = vmul.f32 %v2562_v2, %v3333_v7  ;;  %v3343_v11 = vstv %s2630_s16  ;;  %s3345_s8 = sld [smem:[#allocation4 + $0xf]] }
  0x17   :  { %1879 = vst.msk [vmem:[#allocation2 + $0x28] sm:$0xf] %vm1874_vm1, %v3255_v0  ;;  %1881 = vst.msk [vmem:[#allocation2 + $0x38] sm:$0xf] %vm1874_vm1, %v3255_v0  ;;  %v156_v10 = vmul.f32 %v2585_v3, %v3335_v8  ;;  %s3347_s9 = sld [smem:[#allocation4 + $0x10]]  ;;  %v225_v12 = vmul.f32 %v2608_v5, %v3343_v11  ;;  %v3353_v14 = vstv %s2653_s17  ;;  %s3358_s14 = sld [smem:[#allocation4 + $0x11]]  ;;  %v3362_v17 = vstv %s2676_s18 }
  0x18   :  { %1883 = vst.msk [vmem:[#allocation2 + $0x48] sm:$0xf] %vm1874_vm1, %v3255_v0  ;;  %1885 = vst.msk [vmem:[#allocation2 + $0x58] sm:$0xf] %vm1874_vm1, %v3255_v0  ;;  %s3360_s0 = sld [smem:[#allocation4 + $0x12]]  ;;  %v110_v16 = vadd.f32 %v88_v9, %v41_v6  ;;  %v3368_v19 = vstv %s3303_s19  ;;  %v3371_v20 = vstv %s3308_s22  ;;  %s3373_s17 = sld [smem:[#allocation4 + $0x13]]  ;;  %v294_v23 = vmul.f32 %v2631_v13, %v3353_v14 }
  0x19   :  { %1887 = vst.msk [vmem:[#allocation2 + $0x68] sm:$0xf] %vm1874_vm1, %v3255_v0  ;;  %1889 = vst.msk [vmem:[#allocation2 + $0x78] sm:$0xf] %vm1874_vm1, %v3255_v0  ;;  %s3380_s24 = sld [smem:[#allocation4 + $0x14]]  ;;  %v3389_v25 = vstv %s3310_s23  ;;  %v3395_v27 = vstv %s3318_s28  ;;  %s3397_s26 = sld [smem:[#allocation4 + $0x15]]  ;;  %v362_v28 = vmul.f32 %v2654_v15, %v3362_v17  ;;  %v431_v29 = vmul.f32 %v2677_v18, %v3368_v19 }
  0x1a   :  { %1891 = vst.msk [vmem:[#allocation2 + $0x88] sm:$0xf] %vm1874_vm1, %v3255_v0  ;;  %1893 = vst.msk [vmem:[#allocation2 + $0x98] sm:$0xf] %vm1874_vm1, %v3255_v0  ;;  %v178_v22 = vadd.f32 %v156_v10, %v110_v16  ;;  %s3399_s27 = sld [smem:[#allocation4 + $0x16]]  ;;  %v500_v30 = vmul.f32 %v3378_v21, %v3371_v20  ;;  %s3411_s28 = sld [smem:[#allocation4 + $0x17]]  ;;  %v3416_v33 = vmul.f32 %v2677_v18, %v3323_v4  ;;  %v3419_v35 = vstv %s3320_s29 }
  0x1b   :  { %1895 = vst.msk [vmem:[#allocation2 + $0xa8] sm:$0xf] %vm1874_vm1, %v3255_v0  ;;  %1897 = vst.msk [vmem:[#allocation2 + $0xb8] sm:$0xf] %vm1874_vm1, %v3255_v0  ;;  %s3413_s11 = sld [smem:[#allocation4 + $0x18]]  ;;  %v3422_v36 = vstv %s3328_s4  ;;  %v2815_v37 = vld [vmem:[%s7481_s1 + $0x310] sm:$0xff]  ;;  %v3428_v38 = vstv %s3330_s5  ;;  %v568_v39 = vmul.f32 %v3386_v24, %v3389_v25  ;;  %v3437_v40 = vmul.f32 %v2746_v26, %v3395_v27 }
  0x1c   :  { %7544 = vst [vmem:[#allocation9_spill] sm:$0xff] %v3323_v4  ;;  %v247_v34 = vadd.f32 %v225_v12, %v178_v22  ;;  %7545 = vst [vmem:[#allocation10_spill] sm:$0xff] %v3422_v36  ;;  %s3430_s15 = sld [smem:[#allocation4 + $0x19]]  ;;  %s3432_s16 = sld [smem:[#allocation4 + $0x1a]]  ;;  %v2838_v41 = vld [vmem:[%s7481_s1 + $0xd1] sm:$0xff]  ;;  %v3443_v42 = vstv %s3337_s6  ;;  %v3449_v44 = vstv %s3339_s7  ;;  %v3452_v46 = vstv %s3345_s8 }
  0x1d   :  { %v2861_v43 = vld [vmem:[%s7481_s1 + $0x311] sm:$0xff]  ;;  %v3455_v47 = vstv %s3347_s9  ;;  %v3458_v48 = vstv %s3358_s14  ;;  %v3461_v49 = vmul.f32 %v2769_v31, %v3419_v35  ;;  %v3464_v50 = vmul.f32 %v2792_v32, %v3422_v36  ;;  %s3485_s18 = sld [smem:[#allocation4 + $0x1b]]  ;;  %v2976_v60 = vld [vmem:[%s7481_s1 + $0x601] sm:$0xff] }
  0x1e   :  { %v316_v45 = vadd.f32 %v294_v23, %v247_v34  ;;  %v3467_v51 = vmul.f32 %v2815_v37, %v3428_v38  ;;  %v3472_v52 = vld [vmem:[%s7481_s1 + $0x790] sm:$0xff]  ;;  %v3483_v55 = vstv %s3360_s0  ;;  %v3488_v57 = vmul.f32 %v2838_v41, %v3443_v42  ;;  %v2541_v62 = vld [vmem:[%s7481_s1 + $0x6c8] sm:$0x7] }
  0x1f   :  { %v3477_v53 = vld [vmem:[%s7481_s1 + $0x551] sm:$0xff]  ;;  %v3491_v58 = vmul.f32 %v2861_v43, %v3449_v44  ;;  %v3502_v61 = vstv %s3373_s17  ;;  %v3509_v63 = vmul.f32 %v3472_v52, %v3452_v46  ;;  %v2999_v2 = vld [vmem:[%s7481_s1 + $0x841] sm:$0xff]  ;;  %v3523_v3 = vstv %s3380_s24 }
  0x20   :  { %v384_v56 = vadd.f32 %v362_v28, %v316_v45  ;;  %v3496_v59 = vld [vmem:[%s7481_s1 + $0x791] sm:$0xff]  ;;  %v3513_v0 = vmul.f32 %v3477_v53, %v3455_v47  ;;  %v2563_v6 = vld [vmem:[%s7481_s1 + $0x489] sm:$0x7]  ;;  %v3532_v10 = vmul.f32 %v2953_v54, %v3483_v55  ;;  %v3535_v12 = vstv %s3397_s26 }
  0x21   :  { %v3517_v1 = vmul.f32 %v3496_v59, %v3458_v48  ;;  %v3022_v5 = vld [vmem:[%s7481_s1 + $0x3d0] sm:$0xff]  ;;  %v3541_v15 = vstv %s3399_s27  ;;  %v2586_v16 = vld [vmem:[%s7481_s1 + $0x6c9] sm:$0x7]  ;;  %v3547_v18 = vmul.f32 %v2976_v60, %v3502_v61  ;;  %v3553_v23 = vstv %s3411_s28 }
  0x22   :  { %v453_v9 = vadd.f32 %v431_v29, %v384_v56  ;;  %7547 = vst [vmem:[#allocation12_spill] sm:$0xff] %v3532_v10  ;;  %v3045_v13 = vld [vmem:[%s7481_s1 + $0x191] sm:$0xff]  ;;  %v3556_v26 = vstv %s3413_s11  ;;  %v42_v28 = vmul.f32 %v2541_v62, %v3323_v4  ;;  %v3573_v37 = vstv %s3430_s15  ;;  %v2632_v62 = vld [vmem:[%s7481_s1 + $0x19] sm:$0x7] }
  0x23   :  { %7546 = vst [vmem:[#allocation11_spill] sm:$0xff] %v3517_v1  ;;  %7548 = vst [vmem:[#allocation13_spill] sm:$0xff] %v3547_v18  ;;  %v3068_v22 = vld [vmem:[%s7481_s1 + $0x3d1] sm:$0xff]  ;;  %v3581_v43 = vstv %s3432_s16  ;;  %v3585_v45 = vmul.f32 %v2999_v2, %v3523_v3  ;;  %v3588_v54 = vmul.f32 %v3022_v5, %v3535_v12  ;;  %v3591_v56 = vmul.f32 %v3045_v13, %v3541_v15  ;;  %v2862_v10 = vld [vmem:[%s7481_s1 + $0x319] sm:$0x7] }
  0x24   :  { %v2609_v29 = vld [vmem:[%s7481_s1 + $0x258] sm:$0x7]  ;;  %v522_v31 = vadd.f32 %v500_v30, %v453_v9  ;;  %v3565_v32 = vld [vmem:[%s7481_s1 + $0x850] sm:$0xff]  ;;  %v89_v30 = vmul.f32 %v2563_v6, %v3333_v7  ;;  %v157_v60 = vmul.f32 %v2586_v16, %v3335_v8  ;;  %v3604_v9 = vmul.f32 %v3068_v22, %v3553_v23 }
  0x25   :  { %v3570_v34 = vld [vmem:[%s7481_s1 + $0x611] sm:$0xff]  ;;  %7551 = vst [vmem:[#allocation16_spill] sm:$0xff] %v3585_v45  ;;  %7552 = vst [vmem:[#allocation17_spill] sm:$0xff] %v3588_v54  ;;  %v2655_v6 = vld [vmem:[%s7481_s1 + $0x259] sm:$0x7]  ;;  %v295_v18 = vmul.f32 %v2632_v62, %v3353_v14  ;;  %vm1900_vm2 = vcmask 75776  }
  0x26   :  { %7549 = vst [vmem:[#allocation14_spill] sm:$0xff] %v3570_v34  ;;  %v3578_v41 = vld [vmem:[%s7481_s1 + $0x851] sm:$0xff]  ;;  %7553 = vst [vmem:[#allocation18_spill] sm:$0xff] %v3591_v56  ;;  %v590_v5 = vadd.f32 %v568_v39, %v522_v31  ;;  %v111_v13 = vadd.f32 %v89_v30, %v42_v28  ;;  %v226_v56 = vmul.f32 %v2609_v29, %v3343_v11  ;;  %v2701_v16 = vld [vmem:[%s7481_s1 + $0x499] sm:$0x7]  ;;  %v3629_v29 = vstv %s3485_s18 }
  0x27   :  { %7550 = vst [vmem:[#allocation15_spill] sm:$0xff] %v3578_v41  ;;  %v2678_v2 = vld [vmem:[%s7481_s1 + $0x6d8] sm:$0x7]  ;;  %7554 = vst [vmem:[#allocation19_spill] sm:$0xff] %v3604_v9  ;;  %v2747_v45 = vld [vmem:[%s7481_s1 + $0x788] sm:$0x7]  ;;  %v3618_v39 = vmul.f32 %v3565_v32, %v3556_v26  ;;  %v3622_v22 = vmul.f32 %v3570_v34, %v3573_v37  ;;  %v3626_v28 = vmul.f32 %v3578_v41, %v3581_v43 }
  0x28   :  { %v2724_v54 = vld [vmem:[%s7481_s1 + $0x6d9] sm:$0x7]  ;;  %7558 = vst [vmem:[#allocation23_spill] sm:$0xff] %v3629_v29  ;;  %v2770_v31 = vld [vmem:[%s7481_s1 + $0x549] sm:$0x7]  ;;  %v179_v9 = vadd.f32 %v157_v60, %v111_v13  ;;  %v432_v1 = vmul.f32 %v2678_v2, %v3368_v19  ;;  %v3658_v62 = vmul.f32 %v2747_v45, %v3395_v27 }
  0x29   :  { %7555 = vst [vmem:[#allocation20_spill] sm:$0xff] %v3618_v39  ;;  %7556 = vst [vmem:[#allocation21_spill] sm:$0xff] %v3622_v22  ;;  %v2793_v30 = vld [vmem:[%s7481_s1 + $0x789] sm:$0x7]  ;;  %v2816_v39 = vld [vmem:[%s7481_s1 + $0x318] sm:$0x7]  ;;  %v659_v22 = vadd.f32 %v3437_v40, %v590_v5  ;;  %v501_v40 = vmul.f32 %v2701_v16, %v3371_v20  ;;  %v3655_v60 = vmul.f32 %v2724_v54, %v3389_v25 }
  0x2a   :  { %7557 = vst [vmem:[#allocation22_spill] sm:$0xff] %v3626_v28  ;;  %v363_v28 = vmul.f32 %v2655_v6, %v3362_v17  ;;  %v2839_v29 = vld [vmem:[%s7481_s1 + $0xd9] sm:$0x7]  ;;  %v248_v4 = vadd.f32 %v226_v56, %v179_v9  ;;  %v3668_v2 = vmul.f32 %v2770_v31, %v3419_v35  ;;  %v3671_v54 = vmul.f32 %v2793_v30, %v3422_v36  ;;  %v2954_v45 = vld [vmem:[%s7481_s1 + $0x848] sm:$0x7] }
  0x2b   :  { %v2885_v41 = vld [vmem:[%s7481_s1 + $0x798] sm:$0x7]  ;;  %v728_v13 = vadd.f32 %v3461_v49, %v659_v22  ;;  %v2977_v16 = vld [vmem:[%s7481_s1 + $0x609] sm:$0x7]  ;;  %v3680_v34 = vmul.f32 %v2816_v39, %v3428_v38  ;;  %v3683_v49 = vmul.f32 %v2839_v29, %v3443_v42  ;;  %v3686_v56 = vmul.f32 %v2862_v10, %v3449_v44 }
  0x2c   :  { %v2908_v6 = vld [vmem:[%s7481_s1 + $0x559] sm:$0x7]  ;;  %v3689_v9 = vmul.f32 %v2885_v41, %v3452_v46  ;;  %v3000_v22 = vld [vmem:[%s7481_s1 + $0x849] sm:$0x7]  ;;  %v317_v30 = vadd.f32 %v295_v18, %v248_v4  ;;  %v3714_v4 = vmul.f32 %v2954_v45, %v3483_v55 }
  0x2d   :  { %v2931_v5 = vld [vmem:[%s7481_s1 + $0x799] sm:$0x7]  ;;  %7559 = vst [vmem:[#allocation24_spill] sm:$0xff] %v3686_v56  ;;  %v796_v39 = vadd.f32 %v3464_v50, %v728_v13  ;;  %v3699_v29 = vmul.f32 %v2908_v6, %v3455_v47  ;;  %v2610_v56 = vld [vmem:[%s7481_s1 + $0x260] sm:$0xff]  ;;  %v3717_v50 = vmul.f32 %v2977_v16, %v3502_v61  ;;  %v158_v13 = vmul.f32 %v3386_v24, %v3335_v8 }
  0x2e   :  { %7560 = vst [vmem:[#allocation25_spill] sm:$0xff] %v3689_v9  ;;  %v3023_v31 = vld [vmem:[%s7481_s1 + $0x3d8] sm:$0x7]  ;;  %v3702_v10 = vmul.f32 %v2931_v5, %v3458_v48  ;;  %7563 = vst [vmem:[#allocation28_spill] sm:$0xff] %v3714_v4  ;;  %v90_v5 = vmul.f32 %v3378_v21, %v3333_v7  ;;  %v385_v4 = vadd.f32 %v363_v28, %v317_v30  ;;  %v2633_v21 = vld [vmem:[%s7481_s1 + $0x21] sm:$0xff] }
  0x2f   :  { %7561 = vst [vmem:[#allocation26_spill] sm:$0xff] %v3699_v29  ;;  %v3046_v41 = vld [vmem:[%s7481_s1 + $0x199] sm:$0x7]  ;;  %7564 = vst [vmem:[#allocation29_spill] sm:$0xff] %v3717_v50  ;;  %v865_v45 = vadd.f32 %v3467_v51, %v796_v39  ;;  %v3731_v16 = vmul.f32 %v3000_v22, %v3523_v3  ;;  %v3734_v50 = vmul.f32 %v3023_v31, %v3535_v12  ;;  %v2656_v24 = vld [vmem:[%s7481_s1 + $0x261] sm:$0xff] }
  0x30   :  { %7562 = vst [vmem:[#allocation27_spill] sm:$0xff] %v3702_v10  ;;  %v3069_v9 = vld [vmem:[%s7481_s1 + $0x3d9] sm:$0x7]  ;;  %v3746_v51 = vmul.f32 %v3046_v41, %v3541_v15  ;;  %v112_v22 = vadd.f32 %v90_v5, %v3416_v33  ;;  %v227_v31 = vmul.f32 %v2610_v56, %v3343_v11  ;;  %v454_v30 = vadd.f32 %v432_v1, %v385_v4  ;;  %v3768_v33 = vld [vmem:[%s7481_s1 + $0x6e0] sm:$0xff] }
  0x31   :  { %v3092_v18 = vld [vmem:[%s7481_s1 + $0x858] sm:$0x7]  ;;  %7565 = vst [vmem:[#allocation30_spill] sm:$0xff] %v3731_v16  ;;  %7566 = vst [vmem:[#allocation31_spill] sm:$0xff] %v3734_v50  ;;  %v3749_v28 = vmul.f32 %v3069_v9, %v3553_v23  ;;  %v934_v39 = vadd.f32 %v3488_v57, %v865_v45  ;;  %v296_v9 = vmul.f32 %v2633_v21, %v3353_v14  ;;  %v3773_v57 = vld [vmem:[%s7481_s1 + $0x4a1] sm:$0xff] }
  0x32   :  { %v3115_v6 = vld [vmem:[%s7481_s1 + $0x619] sm:$0x7]  ;;  %7567 = vst [vmem:[#allocation32_spill] sm:$0xff] %v3746_v51  ;;  %v3755_v50 = vmul.f32 %v3092_v18, %v3556_v26  ;;  %v180_v41 = vadd.f32 %v158_v13, %v112_v22  ;;  %v2817_v1 = vld [vmem:[%s7481_s1 + $0x320] sm:$0xff]  ;;  %v433_v4 = vmul.f32 %v3768_v33, %v3368_v19  ;;  %v502_v18 = vmul.f32 %v3773_v57, %v3371_v20 }
  0x33   :  { %v3138_v10 = vld [vmem:[%s7481_s1 + $0x859] sm:$0x7]  ;;  %7568 = vst [vmem:[#allocation33_spill] sm:$0xff] %v3749_v28  ;;  %v3758_v16 = vmul.f32 %v3115_v6, %v3573_v37  ;;  %v364_v28 = vmul.f32 %v2656_v24, %v3362_v17  ;;  %v1002_v56 = vadd.f32 %v3491_v58, %v934_v39  ;;  %v3786_v6 = vld [vmem:[%s7481_s1 + $0x6e1] sm:$0xff]  ;;  %v3798_v45 = vmul.f32 %v3472_v52, %v3395_v27 }
  0x34   :  { %7569 = vst [vmem:[#allocation34_spill] sm:$0xff] %v3755_v50  ;;  %v3761_v29 = vmul.f32 %v3138_v10, %v3581_v43  ;;  %v523_v10 = vadd.f32 %v501_v40, %v454_v30  ;;  %v2840_v5 = vld [vmem:[%s7481_s1 + $0xe1] sm:$0xff]  ;;  %v249_v40 = vadd.f32 %v227_v31, %v180_v41  ;;  %v570_v13 = vmul.f32 %v3786_v6, %v3389_v25 }
  0x35   :  { %7570 = vst [vmem:[#allocation35_spill] sm:$0xff] %v3758_v16  ;;  %v2863_v58 = vld [vmem:[%s7481_s1 + $0x321] sm:$0xff]  ;;  %v3802_v21 = vmul.f32 %v3477_v53, %v3419_v35  ;;  %v1071_v24 = vadd.f32 %v3509_v63, %v1002_v56  ;;  %v3808_v39 = vmul.f32 %v3496_v59, %v3422_v36  ;;  %v3811_v31 = vmul.f32 %v2817_v1, %v3428_v38  ;;  %v2543_v63 = vld [vmem:[%s7481_s1 + $0x6d8] sm:$0x7] }
  0x36   :  { %7571 = vst [vmem:[#allocation36_spill] sm:$0xff] %v3761_v29  ;;  %v591_v22 = vadd.f32 %v3655_v60, %v523_v10  ;;  %v3816_v52 = vld [vmem:[%s7481_s1 + $0x7a0] sm:$0xff]  ;;  %v318_v60 = vadd.f32 %v296_v9, %v249_v40  ;;  %v3827_v59 = vmul.f32 %v2840_v5, %v3443_v42  ;;  %v3830_v30 = vmul.f32 %v2863_v58, %v3449_v44  ;;  %v2565_v56 = vld [vmem:[%s7481_s1 + $0x499] sm:$0x7] }
  0x37   :  { %7572 = vst [vmem:[#allocation37_spill] sm:$0xff] %v3816_v52  ;;  %v3821_v53 = vld [vmem:[%s7481_s1 + $0x561] sm:$0xff]  ;;  %v3834_v41 = vmul.f32 %v3816_v52, %v3452_v46  ;;  %v2588_v9 = vld [vmem:[%s7481_s1 + $0x6d9] sm:$0x7]  ;;  %v1140_v10 = vadd.f32 %v3513_v0, %v1071_v24  ;;  %v3865_v0 = vmul.f32 %v3565_v32, %v3483_v55  ;;  %v91_v32 = vmul.f32 %v2565_v56, %v3333_v7  ;;  %v2634_v56 = vld [vmem:[%s7481_s1 + $0x29] sm:$0x7] }
  0x38   :  { %7573 = vst [vmem:[#allocation38_spill] sm:$0xff] %v3821_v53  ;;  %v3839_v1 = vld [vmem:[%s7481_s1 + $0x7a1] sm:$0xff]  ;;  %v660_v5 = vadd.f32 %v3658_v62, %v591_v22  ;;  %v3851_v58 = vmul.f32 %v3821_v53, %v3455_v47  ;;  %v386_v50 = vadd.f32 %v364_v28, %v318_v60  ;;  %v7580_v53 = vld [vmem:[#allocation11_spill] sm:$0xff]  ;;  %v159_v60 = vmul.f32 %v2588_v9, %v3335_v8 }
  0x39   :  { %7574 = vst [vmem:[#allocation39_spill] sm:$0xff] %v3839_v1  ;;  %v3855_v40 = vmul.f32 %v3839_v1, %v3458_v48  ;;  %v3024_v29 = vld [vmem:[%s7481_s1 + $0x3e0] sm:$0xff]  ;;  %7576 = vst [vmem:[#allocation41_spill] sm:$0xff] %v3865_v0  ;;  %v7577_v62 = vld [vmem:[#allocation14_spill] sm:$0xff] }
  0x3a   :  { %v3047_v16 = vld [vmem:[%s7481_s1 + $0x1a1] sm:$0xff]  ;;  %v3869_v24 = vmul.f32 %v7577_v62, %v3502_v61  ;;  %v729_v52 = vadd.f32 %v3668_v2, %v660_v5  ;;  %v455_v62 = vadd.f32 %v433_v4, %v386_v50  ;;  %v3887_v0 = vmul.f32 %v3024_v29, %v3535_v12  ;;  %v7586_v50 = vld [vmem:[#allocation12_spill] sm:$0xff]  ;;  %v2657_v5 = vld [vmem:[%s7481_s1 + $0x269] sm:$0x7] }
  0x3b   :  { %7575 = vst [vmem:[#allocation40_spill] sm:$0xff] %v3855_v40  ;;  %v7579_v22 = vld [vmem:[#allocation9_spill] sm:$0xff]  ;;  %v2611_v1 = vld [vmem:[%s7481_s1 + $0x268] sm:$0x7]  ;;  %v1208_v40 = vadd.f32 %v7580_v53, %v1140_v10  ;;  %v3890_v53 = vmul.f32 %v3047_v16, %v3541_v15 }
  0x3c   :  { %7578 = vst [vmem:[#allocation14_spill] sm:$0xff] %v3869_v24  ;;  %v44_v51 = vmul.f32 %v2543_v63, %v7579_v22  ;;  %v3070_v28 = vld [vmem:[%s7481_s1 + $0x3e1] sm:$0xff]  ;;  %v7581_v24 = vld [vmem:[#allocation15_spill] sm:$0xff]  ;;  %7583 = vst [vmem:[#allocation11_spill] sm:$0xff] %v3887_v0  ;;  %v797_v9 = vadd.f32 %v3671_v54, %v729_v52  ;;  %v228_v10 = vmul.f32 %v2611_v1, %v3343_v11 }
  0x3d   :  { %v3884_v63 = vmul.f32 %v7581_v24, %v3523_v3  ;;  %7584 = vst [vmem:[#allocation15_spill] sm:$0xff] %v3890_v53  ;;  %v3895_v2 = vld [vmem:[%s7481_s1 + $0x860] sm:$0xff]  ;;  %v1277_v4 = vadd.f32 %v7586_v50, %v1208_v40  ;;  %v2680_v24 = vld [vmem:[%s7481_s1 + $0x6e8] sm:$0x7]  ;;  %v524_v53 = vadd.f32 %v502_v18, %v455_v62  ;;  %v3915_v40 = vmul.f32 %v3070_v28, %v3553_v23 }
  0x3e   :  { %7585 = vst [vmem:[#allocation42_spill] sm:$0xff] %v3895_v2  ;;  %v3905_v29 = vld [vmem:[%s7481_s1 + $0x621] sm:$0xff]  ;;  %v113_v16 = vadd.f32 %v91_v32, %v44_v51  ;;  %v3919_v54 = vmul.f32 %v3895_v2, %v3556_v26  ;;  %v2703_v18 = vld [vmem:[%s7481_s1 + $0x4a9] sm:$0x7]  ;;  %v866_v32 = vadd.f32 %v3680_v34, %v797_v9  ;;  %v297_v50 = vmul.f32 %v2634_v56, %v3353_v14  ;;  %v2795_v56 = vld [vmem:[%s7481_s1 + $0x799] sm:$0x7] }
  0x3f   :  { %7582 = vst [vmem:[#allocation9_spill] sm:$0xff] %v3884_v63  ;;  %7587 = vst [vmem:[#allocation12_spill] sm:$0xff] %v3905_v29  ;;  %v3923_v51 = vmul.f32 %v3905_v29, %v3573_v37  ;;  %v3928_v52 = vld [vmem:[%s7481_s1 + $0x861] sm:$0xff]  ;;  %v592_v0 = vadd.f32 %v570_v13, %v524_v53  ;;  %v365_v34 = vmul.f32 %v2657_v5, %v3362_v17  ;;  %v7594_v9 = vld [vmem:[#allocation16_spill] sm:$0xff] }
  0x40   :  { %7588 = vst [vmem:[#allocation43_spill] sm:$0xff] %v3915_v40  ;;  %7589 = vst [vmem:[#allocation44_spill] sm:$0xff] %v3919_v54  ;;  %v7592_v1 = vld [vmem:[#allocation13_spill] sm:$0xff]  ;;  %v181_v62 = vadd.f32 %v159_v60, %v113_v16  ;;  %v2749_v54 = vld [vmem:[%s7481_s1 + $0x798] sm:$0x7]  ;;  %v434_v60 = vmul.f32 %v2680_v24, %v3368_v19  ;;  %v503_v29 = vmul.f32 %v2703_v18, %v3371_v20 }
  0x41   :  { %7590 = vst [vmem:[#allocation45_spill] sm:$0xff] %v3923_v51  ;;  %7591 = vst [vmem:[#allocation46_spill] sm:$0xff] %v3928_v52  ;;  %v1346_v28 = vadd.f32 %v7592_v1, %v1277_v4  ;;  %v2726_v51 = vld [vmem:[%s7481_s1 + $0x6e9] sm:$0x7]  ;;  %v2772_v40 = vld [vmem:[%s7481_s1 + $0x559] sm:$0x7]  ;;  %v3947_v4 = vmul.f32 %v3928_v52, %v3581_v43  ;;  %v935_v1 = vadd.f32 %v3683_v49, %v866_v32 }
  0x42   :  { %v250_v63 = vadd.f32 %v228_v10, %v181_v62  ;;  %v2818_v13 = vld [vmem:[%s7481_s1 + $0x328] sm:$0x7]  ;;  %v661_v24 = vadd.f32 %v3798_v45, %v592_v0  ;;  %v640_v49 = vmul.f32 %v2749_v54, %v3395_v27  ;;  %v3970_v10 = vmul.f32 %v2772_v40, %v3419_v35  ;;  %v7595_v32 = vld [vmem:[#allocation17_spill] sm:$0xff]  ;;  %v2956_v40 = vld [vmem:[%s7481_s1 + $0x858] sm:$0x7] }
  0x43   :  { %7593 = vst [vmem:[#allocation13_spill] sm:$0xff] %v3947_v4  ;;  %v1414_v16 = vadd.f32 %v7594_v9, %v1346_v28  ;;  %v2841_v53 = vld [vmem:[%s7481_s1 + $0xe9] sm:$0x7]  ;;  %v571_v28 = vmul.f32 %v2726_v51, %v3389_v25  ;;  %v7596_v9 = vld [vmem:[#allocation24_spill] sm:$0xff]  ;;  %v3978_v2 = vmul.f32 %v2795_v56, %v3422_v36  ;;  %v3991_v51 = vmul.f32 %v2818_v13, %v3428_v38 }
  0x44   :  { %v2864_v5 = vld [vmem:[%s7481_s1 + $0x329] sm:$0x7]  ;;  %v1003_v4 = vadd.f32 %v7596_v9, %v935_v1  ;;  %v319_v52 = vadd.f32 %v297_v50, %v250_v63  ;;  %v730_v54 = vadd.f32 %v3802_v21, %v661_v24  ;;  %v3994_v63 = vmul.f32 %v2841_v53, %v3443_v42  ;;  %v2979_v56 = vld [vmem:[%s7481_s1 + $0x619] sm:$0x7] }
  0x45   :  { %v2887_v18 = vld [vmem:[%s7481_s1 + $0x7a8] sm:$0x7]  ;;  %v1483_v62 = vadd.f32 %v7595_v32, %v1414_v16  ;;  %v3997_v50 = vmul.f32 %v2864_v5, %v3449_v44  ;;  %v7598_v32 = vld [vmem:[#allocation25_spill] sm:$0xff]  ;;  %v4015_v24 = vmul.f32 %v2956_v40, %v3483_v55 }
  0x46   :  { %v2910_v45 = vld [vmem:[%s7481_s1 + $0x569] sm:$0x7]  ;;  %v1072_v9 = vadd.f32 %v7598_v32, %v1003_v4  ;;  %v387_v36 = vadd.f32 %v365_v34, %v319_v52  ;;  %v4005_v21 = vmul.f32 %v2887_v18, %v3452_v46  ;;  %v798_v13 = vadd.f32 %v3808_v39, %v730_v54  ;;  %v7599_v4 = vld [vmem:[#allocation19_spill] sm:$0xff] }
  0x47   :  { %v2933_v0 = vld [vmem:[%s7481_s1 + $0x7a9] sm:$0x7]  ;;  %v4009_v53 = vmul.f32 %v2910_v45, %v3455_v47  ;;  %v4023_v39 = vmul.f32 %v2979_v56, %v3502_v61  ;;  %v160_v56 = vmul.f32 %v3786_v6, %v3335_v8 }
  0x48   :  { %v7597_v16 = vld [vmem:[#allocation18_spill] sm:$0xff]  ;;  %v4012_v5 = vmul.f32 %v2933_v0, %v3458_v48  ;;  %v2612_v0 = vld [vmem:[%s7481_s1 + $0x270] sm:$0xff]  ;;  %v867_v40 = vadd.f32 %v3811_v31, %v798_v13 }
  0x49   :  { %v1552_v1 = vadd.f32 %v7597_v16, %v1483_v62  ;;  %v3002_v62 = vld [vmem:[%s7481_s1 + $0x859] sm:$0x7]  ;;  %v7600_v34 = vld [vmem:[#allocation26_spill] sm:$0xff]  ;;  %v456_v16 = vadd.f32 %v434_v60, %v387_v36  ;;  %7601 = vst [vmem:[#allocation16_spill] sm:$0xff] %v4023_v39  ;;  %v45_v36 = vmul.f32 %v3768_v33, %v7579_v22  ;;  %v92_v60 = vmul.f32 %v3773_v57, %v3333_v7  ;;  %v2635_v33 = vld [vmem:[%s7481_s1 + $0x31] sm:$0xff] }
  0x4a   :  { %v1141_v18 = vadd.f32 %v7600_v34, %v1072_v9  ;;  %v3025_v45 = vld [vmem:[%s7481_s1 + $0x3e8] sm:$0x7]  ;;  %v7603_v9 = vld [vmem:[#allocation27_spill] sm:$0xff]  ;;  %v4044_v31 = vmul.f32 %v3002_v62, %v3523_v3  ;;  %v936_v57 = vadd.f32 %v3827_v59, %v867_v40  ;;  %v229_v62 = vmul.f32 %v2612_v0, %v3343_v11 }
  0x4b   :  { %v1620_v52 = vadd.f32 %v7599_v4, %v1552_v1  ;;  %v3048_v54 = vld [vmem:[%s7481_s1 + $0x1a9] sm:$0x7]  ;;  %v7602_v1 = vld [vmem:[#allocation20_spill] sm:$0xff]  ;;  %v525_v34 = vadd.f32 %v503_v29, %v456_v16  ;;  %v4054_v6 = vmul.f32 %v3025_v45, %v3535_v12 }
  0x4c   :  { %v1209_v4 = vadd.f32 %v7603_v9, %v1141_v18  ;;  %7604 = vst [vmem:[#allocation17_spill] sm:$0xff] %v4044_v31  ;;  %v3071_v13 = vld [vmem:[%s7481_s1 + $0x3e9] sm:$0x7]  ;;  %v7605_v18 = vld [vmem:[#allocation21_spill] sm:$0xff]  ;;  %v4063_v39 = vmul.f32 %v3048_v54, %v3541_v15  ;;  %v2658_v45 = vld [vmem:[%s7481_s1 + $0x271] sm:$0xff]  ;;  %v1004_v40 = vadd.f32 %v3830_v30, %v936_v57  ;;  %v298_v54 = vmul.f32 %v2635_v33, %v3353_v14 }
  0x4d   :  { %v1689_v32 = vadd.f32 %v7602_v1, %v1620_v52  ;;  %v3094_v29 = vld [vmem:[%s7481_s1 + $0x868] sm:$0x7]  ;;  %v114_v52 = vadd.f32 %v92_v60, %v45_v36  ;;  %v7606_v1 = vld [vmem:[#allocation28_spill] sm:$0xff]  ;;  %v593_v31 = vadd.f32 %v571_v28, %v525_v34  ;;  %v4073_v0 = vmul.f32 %v3071_v13, %v3553_v23 }
  0x4e   :  { %v1278_v9 = vadd.f32 %v7606_v1, %v1209_v4  ;;  %7607 = vst [vmem:[#allocation24_spill] sm:$0xff] %v4063_v39  ;;  %v3117_v59 = vld [vmem:[%s7481_s1 + $0x629] sm:$0x7]  ;;  %v7610_v4 = vld [vmem:[#allocation29_spill] sm:$0xff]  ;;  %v4082_v1 = vmul.f32 %v3094_v29, %v3556_v26  ;;  %v1073_v30 = vadd.f32 %v3834_v41, %v1004_v40  ;;  %v7613_v39 = vld [vmem:[#allocation23_spill] sm:$0xff] }
  0x4f   :  { %v1758_v16 = vadd.f32 %v7605_v18, %v1689_v32  ;;  %7608 = vst [vmem:[#allocation18_spill] sm:$0xff] %v4073_v0  ;;  %v3140_v28 = vld [vmem:[%s7481_s1 + $0x869] sm:$0x7]  ;;  %v182_v36 = vadd.f32 %v160_v56, %v114_v52  ;;  %v662_v18 = vadd.f32 %v640_v49, %v593_v31  ;;  %v4086_v13 = vmul.f32 %v3117_v59, %v3573_v37  ;;  %v4098_v49 = vld [vmem:[%s7481_s1 + $0x6f0] sm:$0xff] }
  0x50   :  { %v7609_v60 = vld [vmem:[#allocation22_spill] sm:$0xff]  ;;  %v1347_v34 = vadd.f32 %v7610_v4, %v1278_v9  ;;  %7611 = vst [vmem:[#allocation25_spill] sm:$0xff] %v4082_v1  ;;  %v366_v0 = vmul.f32 %v2658_v45, %v3362_v17  ;;  %v4093_v9 = vmul.f32 %v3140_v28, %v3581_v43  ;;  %v4103_v41 = vld [vmem:[%s7481_s1 + $0x4b1] sm:$0xff]  ;;  %v1142_v31 = vadd.f32 %v3851_v58, %v1073_v30 }
  0x51   :  { %v1826_v32 = vadd.f32 %v7609_v60, %v1758_v16  ;;  %7612 = vst [vmem:[#allocation19_spill] sm:$0xff] %v4086_v13  ;;  %v251_v57 = vadd.f32 %v229_v62, %v182_v36  ;;  %v7614_v52 = vld [vmem:[#allocation30_spill] sm:$0xff]  ;;  %v731_v16 = vadd.f32 %v3970_v10, %v662_v18  ;;  %7616 = vst [vmem:[#allocation20_spill] sm:$0xff] %v4103_v41  ;;  %v4113_v59 = vld [vmem:[%s7481_s1 + $0x6f1] sm:$0xff] }
  0x52   :  { %v1415_v33 = vadd.f32 %v7614_v52, %v1347_v34  ;;  %7615 = vst [vmem:[#allocation26_spill] sm:$0xff] %v4093_v9  ;;  %v435_v62 = vmul.f32 %v4098_v49, %v3368_v19  ;;  %v504_v10 = vmul.f32 %v4103_v41, %v3371_v20  ;;  %7617 = vst [vmem:[#allocation27_spill] sm:$0xff] %v4113_v59  ;;  %v2819_v45 = vld [vmem:[%s7481_s1 + $0x330] sm:$0xff]  ;;  %v7619_v60 = vld [vmem:[#allocation37_spill] sm:$0xff] }
  0x53   :  { %v1850_v56 = vadd.f32 %v7613_v39, %v1826_v32  ;;  %v320_v29 = vadd.f32 %v298_v54, %v251_v57  ;;  %v2842_v58 = vld [vmem:[%s7481_s1 + $0xf1] sm:$0xff]  ;;  %v799_v36 = vadd.f32 %v3978_v2, %v731_v16  ;;  %v572_v54 = vmul.f32 %v4113_v59, %v3389_v25  ;;  %v7621_v57 = vld [vmem:[#allocation38_spill] sm:$0xff] }
  0x54   :  { %v7618_v40 = vld [vmem:[#allocation31_spill] sm:$0xff]  ;;  %v641_v32 = vmul.f32 %v7619_v60, %v3395_v27  ;;  %v7620_v34 = vld [vmem:[#allocation40_spill] sm:$0xff]  ;;  %v7622_v52 = vld [vmem:[#allocation10_spill] sm:$0xff]  ;;  %v4141_v60 = vmul.f32 %v2819_v45, %v3428_v38  ;;  %v4144_v13 = vmul.f32 %v2842_v58, %v3443_v42 }
  0x55   :  { %1899 = vst.msk [vmem:[#allocation2 + $0x11] sm:$0xff] %vm1872_vm0, %v1850_v56  ;;  %v1484_v28 = vadd.f32 %v7618_v40, %v1415_v33  ;;  %v2865_v4 = vld [vmem:[%s7481_s1 + $0x331] sm:$0xff]  ;;  %v1210_v18 = vadd.f32 %v7620_v34, %v1142_v31  ;;  %v388_v30 = vadd.f32 %v366_v0, %v320_v29  ;;  %v710_v56 = vmul.f32 %v7621_v57, %v3419_v35  ;;  %v7627_v29 = vld [vmem:[#allocation41_spill] sm:$0xff]  ;;  %v2545_v34 = vld [vmem:[%s7481_s1 + $0x6e8] sm:$0x7] }
  0x56   :  { %v7623_v33 = vld [vmem:[#allocation39_spill] sm:$0xff]  ;;  %v7624_v2 = vld [vmem:[#allocation32_spill] sm:$0xff]  ;;  %v868_v9 = vadd.f32 %v3991_v51, %v799_v36  ;;  %v4158_v45 = vmul.f32 %v2865_v4, %v3449_v44  ;;  %v7633_v59 = vld [vmem:[#allocation42_spill] sm:$0xff] }
  0x57   :  { %v4136_v40 = vmul.f32 %v7623_v33, %v7622_v52  ;;  %v1553_v16 = vadd.f32 %v7624_v2, %v1484_v28  ;;  %v4149_v0 = vld [vmem:[%s7481_s1 + $0x7b0] sm:$0xff]  ;;  %v1279_v28 = vadd.f32 %v7627_v29, %v1210_v18  ;;  %v457_v51 = vadd.f32 %v435_v62, %v388_v30  ;;  %v2567_v62 = vld [vmem:[%s7481_s1 + $0x4a9] sm:$0x7]  ;;  %v7629_v18 = vld [vmem:[#allocation33_spill] sm:$0xff] }
  0x58   :  { %7625 = vst [vmem:[#allocation21_spill] sm:$0xff] %v4149_v0  ;;  %v4154_v31 = vld [vmem:[%s7481_s1 + $0x571] sm:$0xff]  ;;  %v4162_v58 = vmul.f32 %v4149_v0, %v3452_v46  ;;  %v937_v30 = vadd.f32 %v3994_v63, %v868_v9  ;;  %v2590_v2 = vld [vmem:[%s7481_s1 + $0x6e9] sm:$0x7] }
  0x59   :  { %7626 = vst [vmem:[#allocation28_spill] sm:$0xff] %v4154_v31  ;;  %v4167_v36 = vld [vmem:[%s7481_s1 + $0x7b1] sm:$0xff]  ;;  %v1621_v4 = vadd.f32 %v7629_v18, %v1553_v16  ;;  %v4179_v57 = vmul.f32 %v4154_v31, %v3455_v47  ;;  %v7632_v29 = vld [vmem:[#allocation14_spill] sm:$0xff]  ;;  %v526_v1 = vadd.f32 %v504_v10, %v457_v51  ;;  %v4191_v16 = vmul.f32 %v7633_v59, %v3483_v55 }
  0x5a   :  { %7628 = vst [vmem:[#allocation22_spill] sm:$0xff] %v4167_v36  ;;  %v4183_v33 = vmul.f32 %v4167_v36, %v3458_v48  ;;  %v1348_v0 = vadd.f32 %v7632_v29, %v1279_v28  ;;  %v7635_v63 = vld [vmem:[#allocation12_spill] sm:$0xff]  ;;  %v7637_v36 = vld [vmem:[#allocation34_spill] sm:$0xff]  ;;  %v3026_v10 = vld [vmem:[%s7481_s1 + $0x3f0] sm:$0xff]  ;;  %v46_v28 = vmul.f32 %v2545_v34, %v7579_v22  ;;  %v93_v51 = vmul.f32 %v2567_v62, %v3333_v7 }
  0x5b   :  { %7630 = vst [vmem:[#allocation29_spill] sm:$0xff] %v4179_v57  ;;  %7634 = vst [vmem:[#allocation30_spill] sm:$0xff] %v4191_v16  ;;  %v4195_v9 = vmul.f32 %v7635_v63, %v3502_v61  ;;  %v2613_v18 = vld [vmem:[%s7481_s1 + $0x278] sm:$0x7]  ;;  %v1690_v31 = vadd.f32 %v7637_v36, %v1621_v4  ;;  %v7638_v29 = vld [vmem:[#allocation9_spill] sm:$0xff] }
  0x5c   :  { %7631 = vst [vmem:[#allocation23_spill] sm:$0xff] %v4183_v33  ;;  %v1005_v33 = vadd.f32 %v3997_v50, %v937_v30  ;;  %v3049_v59 = vld [vmem:[%s7481_s1 + $0x1b1] sm:$0xff]  ;;  %v1416_v63 = vadd.f32 %v7638_v29, %v1348_v0  ;;  %v7639_v16 = vld [vmem:[#allocation46_spill] sm:$0xff]  ;;  %v161_v50 = vmul.f32 %v2590_v2, %v3335_v8  ;;  %v2636_v4 = vld [vmem:[%s7481_s1 + $0x39] sm:$0x7]  ;;  %v115_v0 = vadd.f32 %v93_v51, %v46_v28 }
  0x5d   :  { %7636 = vst [vmem:[#allocation31_spill] sm:$0xff] %v4195_v9  ;;  %v594_v9 = vadd.f32 %v572_v54, %v526_v1  ;;  %v4213_v36 = vmul.f32 %v7639_v16, %v3523_v3  ;;  %v7640_v30 = vld [vmem:[#allocation35_spill] sm:$0xff]  ;;  %v230_v1 = vmul.f32 %v2613_v18, %v3343_v11  ;;  %v4227_v2 = vmul.f32 %v3026_v10, %v3535_v12 }
  0x5e   :  { %v1759_v57 = vadd.f32 %v7640_v30, %v1690_v31  ;;  %v1074_v41 = vadd.f32 %v4005_v21, %v1005_v33  ;;  %v3072_v34 = vld [vmem:[%s7481_s1 + $0x3f1] sm:$0xff]  ;;  %v4230_v29 = vmul.f32 %v3049_v59, %v3541_v15  ;;  %v2659_v21 = vld [vmem:[%s7481_s1 + $0x279] sm:$0x7] }
  0x5f   :  { %v7641_v54 = vld [vmem:[#allocation11_spill] sm:$0xff]  ;;  %v663_v16 = vadd.f32 %v641_v32, %v594_v9  ;;  %v7643_v31 = vld [vmem:[#allocation36_spill] sm:$0xff]  ;;  %v183_v32 = vadd.f32 %v161_v50, %v115_v0  ;;  %v299_v9 = vmul.f32 %v2636_v4, %v3353_v14  ;;  %v4245_v51 = vmul.f32 %v3072_v34, %v3553_v23 }
  0x60   :  { %v1485_v62 = vadd.f32 %v7641_v54, %v1416_v63  ;;  %7642 = vst [vmem:[#allocation37_spill] sm:$0xff] %v4230_v29  ;;  %v1827_v33 = vadd.f32 %v7643_v31, %v1759_v57  ;;  %v1143_v30 = vadd.f32 %v4009_v53, %v1074_v41  ;;  %v4240_v18 = vld [vmem:[%s7481_s1 + $0x870] sm:$0xff]  ;;  %v2682_v41 = vld [vmem:[%s7481_s1 + $0x6f8] sm:$0x7]  ;;  %v367_v0 = vmul.f32 %v2659_v21, %v3362_v17  ;;  %v2774_v21 = vld [vmem:[%s7481_s1 + $0x569] sm:$0x7] }
  0x61   :  { %v7644_v10 = vld [vmem:[#allocation15_spill] sm:$0xff]  ;;  %v732_v59 = vadd.f32 %v710_v56, %v663_v16  ;;  %7645 = vst [vmem:[#allocation40_spill] sm:$0xff] %v4245_v51  ;;  %v4249_v63 = vmul.f32 %v4240_v18, %v3556_v26  ;;  %v2705_v56 = vld [vmem:[%s7481_s1 + $0x4b9] sm:$0x7]  ;;  %v252_v34 = vadd.f32 %v230_v1, %v183_v32  ;;  %v711_v51 = vmul.f32 %v2774_v21, %v3419_v35  ;;  %v2958_v21 = vld [vmem:[%s7481_s1 + $0x868] sm:$0x7] }
  0x62   :  { %v1554_v28 = vadd.f32 %v7644_v10, %v1485_v62  ;;  %v4254_v53 = vld [vmem:[%s7481_s1 + $0x631] sm:$0xff]  ;;  %v1851_v57 = vadd.f32 %v7613_v39, %v1827_v33  ;;  %v1211_v50 = vadd.f32 %v4012_v5, %v1143_v30  ;;  %v2728_v54 = vld [vmem:[%s7481_s1 + $0x6f9] sm:$0x7]  ;;  %v2751_v62 = vld [vmem:[%s7481_s1 + $0x7a8] sm:$0x7]  ;;  %v436_v10 = vmul.f32 %v2682_v41, %v3368_v19 }
  0x63   :  { %7646 = vst [vmem:[#allocation38_spill] sm:$0xff] %v4249_v63  ;;  %v4267_v4 = vld [vmem:[%s7481_s1 + $0x871] sm:$0xff]  ;;  %v800_v5 = vadd.f32 %v4136_v40, %v732_v59  ;;  %v4280_v33 = vmul.f32 %v4254_v53, %v3573_v37  ;;  %v2797_v30 = vld [vmem:[%s7481_s1 + $0x7a9] sm:$0x7]  ;;  %v321_v32 = vadd.f32 %v299_v9, %v252_v34  ;;  %v2866_v9 = vld [vmem:[%s7481_s1 + $0x339] sm:$0x7] }
  0x64   :  { %7647 = vst [vmem:[#allocation10_spill] sm:$0xff] %v4267_v4  ;;  %v7648_v16 = vld [vmem:[#allocation43_spill] sm:$0xff]  ;;  %v4284_v1 = vmul.f32 %v4267_v4, %v3581_v43  ;;  %1901 = vst.msk [vmem:[#allocation2 + $0x19] sm:$0x7] %vm1900_vm2, %v1851_v57  ;;  %v1280_v40 = vadd.f32 %v4015_v24, %v1211_v50  ;;  %v2820_v59 = vld [vmem:[%s7481_s1 + $0x338] sm:$0x7]  ;;  %v573_v57 = vmul.f32 %v2728_v54, %v3389_v25 }
  0x65   :  { %v1622_v31 = vadd.f32 %v7648_v16, %v1554_v28  ;;  %7649 = vst [vmem:[#allocation39_spill] sm:$0xff] %v4280_v33  ;;  %v505_v28 = vmul.f32 %v2705_v56, %v3371_v20  ;;  %v2843_v16 = vld [vmem:[%s7481_s1 + $0xf9] sm:$0x7]  ;;  %v869_v63 = vadd.f32 %v4141_v60, %v800_v5  ;;  %v642_v24 = vmul.f32 %v2751_v62, %v3395_v27  ;;  %v7653_v62 = vld [vmem:[#allocation45_spill] sm:$0xff] }
  0x66   :  { %7650 = vst [vmem:[#allocation32_spill] sm:$0xff] %v4284_v1  ;;  %v7651_v1 = vld [vmem:[#allocation44_spill] sm:$0xff]  ;;  %v389_v34 = vadd.f32 %v367_v0, %v321_v32  ;;  %v4329_v0 = vmul.f32 %v2843_v16, %v3443_v42  ;;  %v7654_v32 = vld [vmem:[#allocation17_spill] sm:$0xff] }
  0x67   :  { %v1691_v33 = vadd.f32 %v7651_v1, %v1622_v31  ;;  %v2889_v41 = vld [vmem:[%s7481_s1 + $0x7b8] sm:$0x7]  ;;  %v4315_v31 = vmul.f32 %v2797_v30, %v7622_v52  ;;  %v938_v1 = vadd.f32 %v4144_v13, %v869_v63  ;;  %v2981_v30 = vld [vmem:[%s7481_s1 + $0x629] sm:$0x7]  ;;  %v7655_v63 = vld [vmem:[#allocation13_spill] sm:$0xff] }
  0x68   :  { %v7652_v56 = vld [vmem:[#allocation16_spill] sm:$0xff]  ;;  %v458_v4 = vadd.f32 %v436_v10, %v389_v34  ;;  %v4342_v13 = vmul.f32 %v2889_v41, %v3452_v46  ;;  %v3004_v10 = vld [vmem:[%s7481_s1 + $0x869] sm:$0x7]  ;;  %v4357_v41 = vmul.f32 %v2958_v21, %v3483_v55  ;;  %v4360_v34 = vmul.f32 %v2981_v30, %v3502_v61 }
  0x69   :  { %v1349_v50 = vadd.f32 %v7652_v56, %v1280_v40  ;;  %v2912_v60 = vld [vmem:[%s7481_s1 + $0x579] sm:$0x7]  ;;  %v1760_v5 = vadd.f32 %v7653_v62, %v1691_v33  ;;  %v4326_v40 = vmul.f32 %v2820_v59, %v3428_v38  ;;  %v4339_v33 = vmul.f32 %v2866_v9, %v3449_v44 }
  0x6a   :  { %v2935_v54 = vld [vmem:[%s7481_s1 + $0x7b9] sm:$0x7]  ;;  %v1006_v16 = vadd.f32 %v4158_v45, %v938_v1  ;;  %v4347_v62 = vmul.f32 %v2912_v60, %v3455_v47  ;;  %7657 = vst [vmem:[#allocation33_spill] sm:$0xff] %v4357_v41  ;;  %7658 = vst [vmem:[#allocation14_spill] sm:$0xff] %v4360_v34  ;;  %v2614_v60 = vld [vmem:[%s7481_s1 + $0x280] sm:$0xff] }
  0x6b   :  { %v1417_v56 = vadd.f32 %v7654_v32, %v1349_v50  ;;  %v1828_v59 = vadd.f32 %v7655_v63, %v1760_v5  ;;  %v4350_v29 = vmul.f32 %v2935_v54, %v3458_v48  ;;  %v527_v50 = vadd.f32 %v505_v28, %v458_v4  ;;  %v3027_v45 = vld [vmem:[%s7481_s1 + $0x3f8] sm:$0x7] }
  0x6c   :  { %v1075_v5 = vadd.f32 %v4162_v58, %v1006_v16  ;;  %v3073_v4 = vld [vmem:[%s7481_s1 + $0x3f9] sm:$0x7]  ;;  %v47_v28 = vmul.f32 %v4098_v49, %v7579_v22  ;;  %v4382_v63 = vmul.f32 %v3004_v10, %v3523_v3  ;;  %v2637_v49 = vld [vmem:[%s7481_s1 + $0x41] sm:$0xff] }
  0x6d   :  { %7656 = vst [vmem:[#allocation41_spill] sm:$0xff] %v4350_v29  ;;  %v1486_v9 = vadd.f32 %v4054_v6, %v1417_v56  ;;  %v1852_v54 = vadd.f32 %v7613_v39, %v1828_v59  ;;  %v3050_v6 = vld [vmem:[%s7481_s1 + $0x1b9] sm:$0x7]  ;;  %v595_v56 = vadd.f32 %v573_v57, %v527_v50  ;;  %v7662_v59 = vld [vmem:[#allocation27_spill] sm:$0xff]  ;;  %v4395_v57 = vmul.f32 %v3027_v45, %v3535_v12 }
  0x6e   :  { %v7659_v1 = vld [vmem:[#allocation20_spill] sm:$0xff]  ;;  %7661 = vst [vmem:[#allocation42_spill] sm:$0xff] %v4382_v63  ;;  %v162_v16 = vmul.f32 %v7662_v59, %v3335_v8  ;;  %v7665_v59 = vld [vmem:[#allocation18_spill] sm:$0xff]  ;;  %v4409_v45 = vmul.f32 %v3073_v4, %v3553_v23 }
  0x6f   :  { %v94_v21 = vmul.f32 %v7659_v1, %v3333_v7  ;;  %v7660_v30 = vld [vmem:[#allocation24_spill] sm:$0xff]  ;;  %1902 = vst.msk [vmem:[#allocation2 + $0x21] sm:$0xff] %vm1872_vm0, %v1852_v54  ;;  %v7663_v1 = vld [vmem:[#allocation29_spill] sm:$0xff]  ;;  %7664 = vst [vmem:[#allocation12_spill] sm:$0xff] %v4395_v57  ;;  %v664_v41 = vadd.f32 %v642_v24, %v595_v56  ;;  %v4406_v54 = vmul.f32 %v3050_v6, %v3541_v15 }
  0x70   :  { %v1555_v32 = vadd.f32 %v7660_v30, %v1486_v9  ;;  %v3096_v58 = vld [vmem:[%s7481_s1 + $0x878] sm:$0x7]  ;;  %v1144_v34 = vadd.f32 %v7663_v1, %v1075_v5  ;;  %v231_v30 = vmul.f32 %v2614_v60, %v3343_v11  ;;  %7667 = vst [vmem:[#allocation9_spill] sm:$0xff] %v4409_v45  ;;  %v2660_v5 = vld [vmem:[%s7481_s1 + $0x281] sm:$0xff]  ;;  %v7668_v1 = vld [vmem:[#allocation23_spill] sm:$0xff]  ;;  %v300_v60 = vmul.f32 %v2637_v49, %v3353_v14 }
  0x71   :  { %v3119_v10 = vld [vmem:[%s7481_s1 + $0x639] sm:$0x7]  ;;  %v116_v50 = vadd.f32 %v94_v21, %v47_v28  ;;  %7666 = vst [vmem:[#allocation34_spill] sm:$0xff] %v4406_v54  ;;  %v4416_v29 = vmul.f32 %v3096_v58, %v3556_v26  ;;  %v7670_v21 = vld [vmem:[#allocation25_spill] sm:$0xff]  ;;  %v7680_v45 = vld [vmem:[#allocation22_spill] sm:$0xff] }
  0x72   :  { %v3142_v9 = vld [vmem:[%s7481_s1 + $0x879] sm:$0x7]  ;;  %v1623_v63 = vadd.f32 %v7665_v59, %v1555_v32  ;;  %v1212_v57 = vadd.f32 %v7668_v1, %v1144_v34  ;;  %v733_v32 = vadd.f32 %v711_v51, %v664_v41  ;;  %v4421_v6 = vmul.f32 %v3119_v10, %v3573_v37  ;;  %v4429_v56 = vld [vmem:[%s7481_s1 + $0x700] sm:$0xff]  ;;  %v7673_v34 = vld [vmem:[#allocation30_spill] sm:$0xff] }
  0x73   :  { %7669 = vst [vmem:[#allocation46_spill] sm:$0xff] %v4416_v29  ;;  %v184_v28 = vadd.f32 %v162_v16, %v116_v50  ;;  %v4424_v4 = vmul.f32 %v3142_v9, %v3581_v43  ;;  %v368_v16 = vmul.f32 %v2660_v5, %v3362_v17  ;;  %v4438_v51 = vld [vmem:[%s7481_s1 + $0x4c1] sm:$0xff]  ;;  %v4471_v54 = vmul.f32 %v7680_v45, %v7622_v52 }
  0x74   :  { %v1692_v24 = vadd.f32 %v7670_v21, %v1623_v63  ;;  %7671 = vst [vmem:[#allocation35_spill] sm:$0xff] %v4421_v6  ;;  %v1281_v58 = vadd.f32 %v7673_v34, %v1212_v57  ;;  %v437_v63 = vmul.f32 %v4429_v56, %v3368_v19  ;;  %v4443_v41 = vld [vmem:[%s7481_s1 + $0x701] sm:$0xff]  ;;  %v7675_v57 = vld [vmem:[#allocation19_spill] sm:$0xff]  ;;  %v801_v9 = vadd.f32 %v4315_v31, %v733_v32  ;;  %v7678_v32 = vld [vmem:[#allocation28_spill] sm:$0xff] }
  0x75   :  { %7672 = vst [vmem:[#allocation11_spill] sm:$0xff] %v4424_v4  ;;  %v253_v59 = vadd.f32 %v231_v30, %v184_v28  ;;  %7674 = vst [vmem:[#allocation36_spill] sm:$0xff] %v4443_v41  ;;  %v2821_v49 = vld [vmem:[%s7481_s1 + $0x340] sm:$0xff]  ;;  %v506_v50 = vmul.f32 %v4438_v51, %v3371_v20  ;;  %v574_v30 = vmul.f32 %v4443_v41, %v3389_v25  ;;  %v7676_v28 = vld [vmem:[#allocation31_spill] sm:$0xff] }
  0x76   :  { %v1761_v10 = vadd.f32 %v7675_v57, %v1692_v24  ;;  %v2844_v5 = vld [vmem:[%s7481_s1 + $0x101] sm:$0xff]  ;;  %v1350_v21 = vadd.f32 %v7676_v28, %v1281_v58  ;;  %v4465_v57 = vmul.f32 %v7678_v32, %v3419_v35  ;;  %v870_v29 = vadd.f32 %v4326_v40, %v801_v9 }
  0x77   :  { %v2867_v1 = vld [vmem:[%s7481_s1 + $0x341] sm:$0xff]  ;;  %v322_v34 = vadd.f32 %v300_v60, %v253_v59  ;;  %v4474_v41 = vmul.f32 %v2821_v49, %v3428_v38  ;;  %v4483_v28 = vmul.f32 %v2844_v5, %v3443_v42 }
  0x78   :  { %v7677_v24 = vld [vmem:[#allocation21_spill] sm:$0xff]  ;;  %v7679_v4 = vld [vmem:[#allocation26_spill] sm:$0xff]  ;;  %v1418_v58 = vadd.f32 %v4213_v36, %v1350_v21  ;;  %v4486_v40 = vmul.f32 %v2867_v1, %v3449_v44  ;;  %v2569_v36 = vld [vmem:[%s7481_s1 + $0x4b9] sm:$0x7]  ;;  %v939_v49 = vadd.f32 %v4329_v0, %v870_v29  ;;  %v4524_v21 = vmul.f32 %v4240_v18, %v3483_v55 }
  0x79   :  { %v643_v31 = vmul.f32 %v7677_v24, %v3395_v27  ;;  %v1829_v6 = vadd.f32 %v7679_v4, %v1761_v10  ;;  %v4479_v60 = vld [vmem:[%s7481_s1 + $0x7c0] sm:$0xff]  ;;  %v390_v59 = vadd.f32 %v368_v16, %v322_v34  ;;  %v2547_v4 = vld [vmem:[%s7481_s1 + $0x6f8] sm:$0x7]  ;;  %v2615_v24 = vld [vmem:[%s7481_s1 + $0x288] sm:$0x7] }
  0x7a   :  { %7681 = vst [vmem:[#allocation15_spill] sm:$0xff] %v4479_v60  ;;  %v4491_v45 = vld [vmem:[%s7481_s1 + $0x581] sm:$0xff]  ;;  %v4503_v10 = vmul.f32 %v4479_v60, %v3452_v46  ;;  %v2592_v1 = vld [vmem:[%s7481_s1 + $0x6f9] sm:$0x7]  ;;  %7684 = vst [vmem:[#allocation16_spill] sm:$0xff] %v4524_v21 }
  0x7b   :  { %7682 = vst [vmem:[#allocation43_spill] sm:$0xff] %v4491_v45  ;;  %v1853_v16 = vadd.f32 %v7613_v39, %v1829_v6  ;;  %v4507_v9 = vmul.f32 %v4491_v45, %v3455_v47  ;;  %v4512_v5 = vld [vmem:[%s7481_s1 + $0x7c1] sm:$0xff]  ;;  %v1487_v6 = vadd.f32 %v4227_v2, %v1418_v58  ;;  %v459_v29 = vadd.f32 %v437_v63, %v390_v59 }
  0x7c   :  { %7683 = vst [vmem:[#allocation44_spill] sm:$0xff] %v4512_v5  ;;  %v4520_v0 = vmul.f32 %v4512_v5, %v3458_v48  ;;  %v3028_v34 = vld [vmem:[%s7481_s1 + $0x400] sm:$0xff]  ;;  %v1007_v2 = vadd.f32 %v4339_v33, %v939_v49  ;;  %v4536_v63 = vmul.f32 %v4254_v53, %v3502_v61  ;;  %v48_v58 = vmul.f32 %v2547_v4, %v7579_v22  ;;  %v7687_v33 = vld [vmem:[#allocation10_spill] sm:$0xff] }
  0x7d   :  { %1903 = vst.msk [vmem:[#allocation2 + $0x29] sm:$0x7] %vm1900_vm2, %v1853_v16  ;;  %v3051_v18 = vld [vmem:[%s7481_s1 + $0x1c1] sm:$0xff]  ;;  %v95_v59 = vmul.f32 %v2569_v36, %v3333_v7  ;;  %v528_v5 = vadd.f32 %v506_v50, %v459_v29  ;;  %v4549_v49 = vmul.f32 %v7687_v33, %v3523_v3  ;;  %v163_v53 = vmul.f32 %v2592_v1, %v3335_v8 }
  0x7e   :  { %7685 = vst [vmem:[#allocation45_spill] sm:$0xff] %v4536_v63  ;;  %v3074_v32 = vld [vmem:[%s7481_s1 + $0x401] sm:$0xff]  ;;  %v2638_v63 = vld [vmem:[%s7481_s1 + $0x49] sm:$0x7]  ;;  %v1076_v45 = vadd.f32 %v4342_v13, %v1007_v2  ;;  %v4557_v60 = vmul.f32 %v3028_v34, %v3535_v12  ;;  %v232_v36 = vmul.f32 %v2615_v24, %v3343_v11 }
  0x7f   :  { %v7686_v21 = vld [vmem:[#allocation37_spill] sm:$0xff]  ;;  %7688 = vst [vmem:[#allocation17_spill] sm:$0xff] %v4549_v49  ;;  %v117_v50 = vadd.f32 %v95_v59, %v48_v58  ;;  %v596_v1 = vadd.f32 %v574_v30, %v528_v5  ;;  %v4570_v33 = vmul.f32 %v3074_v32, %v3553_v23  ;;  %v2661_v34 = vld [vmem:[%s7481_s1 + $0x289] sm:$0x7]  ;;  %v301_v32 = vmul.f32 %v2638_v63, %v3353_v14  ;;  %v2753_v63 = vld [vmem:[%s7481_s1 + $0x7b8] sm:$0x7] }
  0x80   :  { %v1556_v16 = vadd.f32 %v7686_v21, %v1487_v6  ;;  %7689 = vst [vmem:[#allocation13_spill] sm:$0xff] %v4557_v60  ;;  %v4562_v4 = vld [vmem:[%s7481_s1 + $0x880] sm:$0xff]  ;;  %v7690_v6 = vld [vmem:[#allocation40_spill] sm:$0xff]  ;;  %v4567_v21 = vmul.f32 %v3051_v18, %v3541_v15  ;;  %v2684_v24 = vld [vmem:[%s7481_s1 + $0x708] sm:$0x7]  ;;  %v1145_v30 = vadd.f32 %v4347_v62, %v1076_v45  ;;  %v644_v49 = vmul.f32 %v2753_v63, %v3395_v27 }
  0x81   :  { %7692 = vst [vmem:[#allocation24_spill] sm:$0xff] %v4570_v33  ;;  %v4575_v13 = vld [vmem:[%s7481_s1 + $0x641] sm:$0xff]  ;;  %v4586_v5 = vmul.f32 %v4562_v4, %v3556_v26  ;;  %v185_v18 = vadd.f32 %v163_v53, %v117_v50  ;;  %v2707_v58 = vld [vmem:[%s7481_s1 + $0x4c9] sm:$0x7]  ;;  %v2776_v50 = vld [vmem:[%s7481_s1 + $0x579] sm:$0x7] }
  0x82   :  { %v1624_v29 = vadd.f32 %v7690_v6, %v1556_v16  ;;  %7691 = vst [vmem:[#allocation20_spill] sm:$0xff] %v4567_v21  ;;  %7693 = vst [vmem:[#allocation27_spill] sm:$0xff] %v4575_v13  ;;  %v4591_v2 = vld [vmem:[%s7481_s1 + $0x881] sm:$0xff]  ;;  %v2730_v62 = vld [vmem:[%s7481_s1 + $0x709] sm:$0x7]  ;;  %v665_v16 = vadd.f32 %v643_v31, %v596_v1  ;;  %v4603_v6 = vmul.f32 %v4575_v13, %v3573_v37 }
  0x83   :  { %7694 = vst [vmem:[#allocation29_spill] sm:$0xff] %v4586_v5  ;;  %7695 = vst [vmem:[#allocation18_spill] sm:$0xff] %v4591_v2  ;;  %v7696_v45 = vld [vmem:[#allocation38_spill] sm:$0xff]  ;;  %v4607_v53 = vmul.f32 %v4591_v2, %v3581_v43  ;;  %v7699_v5 = vld [vmem:[#allocation41_spill] sm:$0xff]  ;;  %v369_v31 = vmul.f32 %v2661_v34, %v3362_v17  ;;  %v438_v1 = vmul.f32 %v2684_v24, %v3368_v19 }
  0x84   :  { %v1693_v59 = vadd.f32 %v7696_v45, %v1624_v29  ;;  %7697 = vst [vmem:[#allocation23_spill] sm:$0xff] %v4603_v6  ;;  %v1213_v33 = vadd.f32 %v7699_v5, %v1145_v30  ;;  %v254_v29 = vadd.f32 %v232_v36, %v185_v18  ;;  %v2799_v45 = vld [vmem:[%s7481_s1 + $0x7b9] sm:$0x7]  ;;  %v7700_v6 = vld [vmem:[#allocation39_spill] sm:$0xff]  ;;  %v734_v60 = vadd.f32 %v4465_v57, %v665_v16  ;;  %v2845_v34 = vld [vmem:[%s7481_s1 + $0x109] sm:$0x7] }
  0x85   :  { %7698 = vst [vmem:[#allocation25_spill] sm:$0xff] %v4607_v53  ;;  %v2822_v53 = vld [vmem:[%s7481_s1 + $0x348] sm:$0x7]  ;;  %v507_v2 = vmul.f32 %v2707_v58, %v3371_v20  ;;  %v575_v36 = vmul.f32 %v2730_v62, %v3389_v25  ;;  %v7701_v30 = vld [vmem:[#allocation33_spill] sm:$0xff]  ;;  %v7702_v62 = vld [vmem:[#allocation32_spill] sm:$0xff] }
  0x86   :  { %v1762_v21 = vadd.f32 %v7700_v6, %v1693_v59  ;;  %v2868_v24 = vld [vmem:[%s7481_s1 + $0x349] sm:$0x7]  ;;  %v1282_v5 = vadd.f32 %v7701_v30, %v1213_v33  ;;  %v323_v18 = vadd.f32 %v301_v32, %v254_v29  ;;  %v4637_v59 = vmul.f32 %v2776_v50, %v3419_v35  ;;  %v2960_v50 = vld [vmem:[%s7481_s1 + $0x878] sm:$0x7] }
  0x87   :  { %v2891_v57 = vld [vmem:[%s7481_s1 + $0x7c8] sm:$0x7]  ;;  %v802_v6 = vadd.f32 %v4471_v54, %v734_v60  ;;  %v4648_v33 = vmul.f32 %v2799_v45, %v7622_v52  ;;  %v4651_v32 = vmul.f32 %v2822_v53, %v3428_v38  ;;  %v4664_v54 = vmul.f32 %v2868_v24, %v3449_v44  ;;  %v2983_v60 = vld [vmem:[%s7481_s1 + $0x639] sm:$0x7] }
  0x88   :  { %v2914_v58 = vld [vmem:[%s7481_s1 + $0x589] sm:$0x7]  ;;  %v1830_v16 = vadd.f32 %v7702_v62, %v1762_v21  ;;  %v391_v13 = vadd.f32 %v369_v31, %v323_v18  ;;  %v4661_v21 = vmul.f32 %v2845_v34, %v3443_v42  ;;  %v4672_v62 = vmul.f32 %v2891_v57, %v3452_v46  ;;  %v3006_v31 = vld [vmem:[%s7481_s1 + $0x879] sm:$0x7]  ;;  %v2616_v57 = vld [vmem:[%s7481_s1 + $0x290] sm:$0xff] }
  0x89   :  { %v2937_v63 = vld [vmem:[%s7481_s1 + $0x7c9] sm:$0x7]  ;;  %v871_v45 = vadd.f32 %v4474_v41, %v802_v6 }
  0x8a   :  { %v7703_v29 = vld [vmem:[#allocation14_spill] sm:$0xff]  ;;  %v1854_v53 = vadd.f32 %v7613_v39, %v1830_v16  ;;  %v460_v18 = vadd.f32 %v438_v1, %v391_v13  ;;  %v4685_v16 = vmul.f32 %v2960_v50, %v3483_v55  ;;  %v4696_v13 = vmul.f32 %v2983_v60, %v3502_v61 }
  0x8b   :  { %v1351_v30 = vadd.f32 %v7703_v29, %v1282_v5  ;;  %v4675_v5 = vmul.f32 %v2914_v58, %v3455_v47  ;;  %v7704_v34 = vld [vmem:[#allocation42_spill] sm:$0xff]  ;;  %v4682_v29 = vmul.f32 %v2937_v63, %v3458_v48  ;;  %v940_v58 = vadd.f32 %v4483_v28, %v871_v45 }
  0x8c   :  { %7706 = vst [vmem:[#allocation19_spill] sm:$0xff] %v4685_v16  ;;  %v3029_v41 = vld [vmem:[%s7481_s1 + $0x408] sm:$0x7]  ;;  %1904 = vst.msk [vmem:[#allocation2 + $0x31] sm:$0xff] %vm1872_vm0, %v1854_v53  ;;  %v49_v63 = vmul.f32 %v4429_v56, %v7579_v22  ;;  %v96_v50 = vmul.f32 %v4438_v51, %v3333_v7  ;;  %v529_v28 = vadd.f32 %v507_v2, %v460_v18  ;;  %v2639_v56 = vld [vmem:[%s7481_s1 + $0x51] sm:$0xff] }
  0x8d   :  { %v1419_v24 = vadd.f32 %v7704_v34, %v1351_v30  ;;  %7705 = vst [vmem:[#allocation30_spill] sm:$0xff] %v4682_v29  ;;  %7707 = vst [vmem:[#allocation31_spill] sm:$0xff] %v4696_v13  ;;  %v3052_v1 = vld [vmem:[%s7481_s1 + $0x1c9] sm:$0x7]  ;;  %v7708_v30 = vld [vmem:[#allocation12_spill] sm:$0xff]  ;;  %v4710_v60 = vmul.f32 %v3006_v31, %v3523_v3  ;;  %v1008_v16 = vadd.f32 %v4486_v40, %v940_v58 }
  0x8e   :  { %v3075_v6 = vld [vmem:[%s7481_s1 + $0x409] sm:$0x7]  ;;  %v7710_v34 = vld [vmem:[#allocation36_spill] sm:$0xff]  ;;  %v4722_v51 = vmul.f32 %v3029_v41, %v3535_v12  ;;  %v233_v18 = vmul.f32 %v2616_v57, %v3343_v11  ;;  %v4733_v29 = vmul.f32 %v3052_v1, %v3541_v15  ;;  %v302_v57 = vmul.f32 %v2639_v56, %v3353_v14 }
  0x8f   :  { %v1488_v53 = vadd.f32 %v7708_v30, %v1419_v24  ;;  %7709 = vst [vmem:[#allocation21_spill] sm:$0xff] %v4710_v60  ;;  %v3098_v45 = vld [vmem:[%s7481_s1 + $0x888] sm:$0x7]  ;;  %v164_v13 = vmul.f32 %v7710_v34, %v3335_v8  ;;  %v118_v24 = vadd.f32 %v96_v50, %v49_v63  ;;  %v597_v60 = vadd.f32 %v575_v36, %v529_v28  ;;  %v2662_v41 = vld [vmem:[%s7481_s1 + $0x291] sm:$0xff]  ;;  %v7715_v50 = vld [vmem:[#allocation9_spill] sm:$0xff] }
  0x90   :  { %7711 = vst [vmem:[#allocation28_spill] sm:$0xff] %v4722_v51  ;;  %v3121_v2 = vld [vmem:[%s7481_s1 + $0x649] sm:$0x7]  ;;  %v4736_v40 = vmul.f32 %v3075_v6, %v3553_v23  ;;  %v1077_v58 = vadd.f32 %v4503_v10, %v1008_v16  ;;  %v4743_v51 = vmul.f32 %v3098_v45, %v3556_v26  ;;  %v4756_v28 = vld [vmem:[%s7481_s1 + $0x710] sm:$0xff] }
  0x91   :  { %v3144_v31 = vld [vmem:[%s7481_s1 + $0x889] sm:$0x7]  ;;  %v186_v63 = vadd.f32 %v164_v13, %v118_v24  ;;  %v4748_v1 = vmul.f32 %v3121_v2, %v3573_v37  ;;  %v370_v13 = vmul.f32 %v2662_v41, %v3362_v17  ;;  %v439_v45 = vmul.f32 %v4756_v28, %v3368_v19 }
  0x92   :  { %v7712_v30 = vld [vmem:[#allocation34_spill] sm:$0xff]  ;;  %7713 = vst [vmem:[#allocation26_spill] sm:$0xff] %v4736_v40  ;;  %7714 = vst [vmem:[#allocation22_spill] sm:$0xff] %v4743_v51  ;;  %v4751_v6 = vmul.f32 %v3144_v31, %v3581_v43  ;;  %v1146_v10 = vadd.f32 %v4507_v9, %v1077_v58  ;;  %v2823_v9 = vld [vmem:[%s7481_s1 + $0x350] sm:$0xff] }
  0x93   :  { %v1557_v34 = vadd.f32 %v7712_v30, %v1488_v53  ;;  %v666_v53 = vadd.f32 %v644_v49, %v597_v60  ;;  %7716 = vst [vmem:[#allocation37_spill] sm:$0xff] %v4748_v1  ;;  %v255_v16 = vadd.f32 %v233_v18, %v186_v63  ;;  %v4765_v49 = vld [vmem:[%s7481_s1 + $0x4d1] sm:$0xff]  ;;  %v7718_v56 = vld [vmem:[#allocation46_spill] sm:$0xff]  ;;  %v4801_v40 = vmul.f32 %v2823_v9, %v3428_v38 }
  0x94   :  { %7717 = vst [vmem:[#allocation10_spill] sm:$0xff] %v4751_v6  ;;  %v4770_v60 = vld [vmem:[%s7481_s1 + $0x711] sm:$0xff]  ;;  %v508_v24 = vmul.f32 %v4765_v49, %v3371_v20  ;;  %v1214_v41 = vadd.f32 %v4520_v0, %v1146_v10 }
  0x95   :  { %v1625_v36 = vadd.f32 %v7715_v50, %v1557_v34  ;;  %v735_v31 = vadd.f32 %v4637_v59, %v666_v53  ;;  %v576_v18 = vmul.f32 %v4770_v60, %v3389_v25  ;;  %v2846_v30 = vld [vmem:[%s7481_s1 + $0x111] sm:$0xff]  ;;  %v324_v58 = vadd.f32 %v302_v57, %v255_v16 }
  0x96   :  { %v2869_v34 = vld [vmem:[%s7481_s1 + $0x351] sm:$0xff]  ;;  %v4805_v16 = vmul.f32 %v2846_v30, %v3443_v42 }
  0x97   :  { %v1694_v2 = vadd.f32 %v7718_v56, %v1625_v36  ;;  %v7719_v63 = vld [vmem:[#allocation15_spill] sm:$0xff]  ;;  %v803_v6 = vadd.f32 %v4648_v33, %v735_v31  ;;  %v7722_v1 = vld [vmem:[#allocation44_spill] sm:$0xff]  ;;  %v392_v10 = vadd.f32 %v370_v13, %v324_v58  ;;  %v2549_v13 = vld [vmem:[%s7481_s1 + $0x708] sm:$0x7] }
  0x98   :  { %v645_v59 = vmul.f32 %v7719_v63, %v3395_v27  ;;  %v7720_v50 = vld [vmem:[#allocation43_spill] sm:$0xff]  ;;  %v4798_v51 = vmul.f32 %v7722_v1, %v7622_v52  ;;  %v7723_v0 = vld [vmem:[#allocation16_spill] sm:$0xff]  ;;  %v4808_v63 = vmul.f32 %v2869_v34, %v3449_v44  ;;  %v2571_v58 = vld [vmem:[%s7481_s1 + $0x4c9] sm:$0x7] }
  0x99   :  { %v4792_v36 = vmul.f32 %v7720_v50, %v3419_v35  ;;  %v7721_v53 = vld [vmem:[#allocation35_spill] sm:$0xff]  ;;  %v1283_v57 = vadd.f32 %v7723_v0, %v1214_v41  ;;  %v872_v31 = vadd.f32 %v4651_v32, %v803_v6  ;;  %v2594_v32 = vld [vmem:[%s7481_s1 + $0x709] sm:$0x7]  ;;  %v7729_v6 = vld [vmem:[#allocation45_spill] sm:$0xff]  ;;  %v4851_v0 = vmul.f32 %v4562_v4, %v3483_v55 }
  0x9a   :  { %v1763_v56 = vadd.f32 %v7721_v53, %v1694_v2  ;;  %v4813_v33 = vld [vmem:[%s7481_s1 + $0x7d0] sm:$0xff]  ;;  %v461_v53 = vadd.f32 %v439_v45, %v392_v10  ;;  %v2617_v4 = vld [vmem:[%s7481_s1 + $0x298] sm:$0x7] }
  0x9b   :  { %7724 = vst [vmem:[#allocation40_spill] sm:$0xff] %v4813_v33  ;;  %v4818_v1 = vld [vmem:[%s7481_s1 + $0x591] sm:$0xff]  ;;  %v4827_v30 = vmul.f32 %v4813_v33, %v3452_v46  ;;  %v1352_v50 = vadd.f32 %v7729_v6, %v1283_v57  ;;  %7731 = vst [vmem:[#allocation32_spill] sm:$0xff] %v4851_v0  ;;  %v941_v45 = vadd.f32 %v4661_v21, %v872_v31 }
  0x9c   :  { %7725 = vst [vmem:[#allocation38_spill] sm:$0xff] %v4818_v1  ;;  %v7726_v9 = vld [vmem:[#allocation11_spill] sm:$0xff]  ;;  %v4831_v34 = vmul.f32 %v4818_v1, %v3455_v47  ;;  %v50_v6 = vmul.f32 %v2549_v13, %v7579_v22  ;;  %v165_v21 = vmul.f32 %v2594_v32, %v3335_v8  ;;  %v7735_v13 = vld [vmem:[#allocation18_spill] sm:$0xff] }
  0x9d   :  { %v1831_v2 = vadd.f32 %v7726_v9, %v1763_v56  ;;  %v4836_v41 = vld [vmem:[%s7481_s1 + $0x7d1] sm:$0xff]  ;;  %v1009_v31 = vadd.f32 %v4664_v54, %v941_v45  ;;  %v7740_v54 = vld [vmem:[#allocation13_spill] sm:$0xff] }
  0x9e   :  { %7727 = vst [vmem:[#allocation41_spill] sm:$0xff] %v4831_v34  ;;  %7728 = vst [vmem:[#allocation39_spill] sm:$0xff] %v4836_v41  ;;  %v4847_v56 = vmul.f32 %v4836_v41, %v3458_v48  ;;  %v3030_v9 = vld [vmem:[%s7481_s1 + $0x410] sm:$0xff]  ;;  %v7734_v41 = vld [vmem:[#allocation17_spill] sm:$0xff] }
  0x9f   :  { %v3053_v1 = vld [vmem:[%s7481_s1 + $0x1d1] sm:$0xff]  ;;  %v1855_v33 = vadd.f32 %v7613_v39, %v1831_v2  ;;  %v1420_v0 = vadd.f32 %v7734_v41, %v1352_v50  ;;  %v97_v2 = vmul.f32 %v2571_v58, %v3333_v7 }
  0xa0   :  { %7730 = vst [vmem:[#allocation33_spill] sm:$0xff] %v4847_v56  ;;  %v7732_v57 = vld [vmem:[#allocation27_spill] sm:$0xff]  ;;  %v530_v56 = vadd.f32 %v508_v24, %v461_v53  ;;  %v4885_v24 = vmul.f32 %v3053_v1, %v3541_v15  ;;  %v234_v1 = vmul.f32 %v2617_v4, %v3343_v11  ;;  %v2686_v45 = vld [vmem:[%s7481_s1 + $0x718] sm:$0x7] }
  0xa1   :  { %v4863_v10 = vmul.f32 %v7732_v57, %v3502_v61  ;;  %v3076_v34 = vld [vmem:[%s7481_s1 + $0x411] sm:$0xff]  ;;  %1905 = vst.msk [vmem:[#allocation2 + $0x39] sm:$0x7] %vm1900_vm2, %v1855_v33  ;;  %v4879_v57 = vmul.f32 %v7735_v13, %v3523_v3  ;;  %v2640_v33 = vld [vmem:[%s7481_s1 + $0x59] sm:$0x7]  ;;  %v1489_v58 = vadd.f32 %v7740_v54, %v1420_v0  ;;  %v119_v53 = vadd.f32 %v97_v2, %v50_v6 }
  0xa2   :  { %7738 = vst [vmem:[#allocation36_spill] sm:$0xff] %v4885_v24  ;;  %v4890_v41 = vld [vmem:[%s7481_s1 + $0x890] sm:$0xff]  ;;  %v598_v32 = vadd.f32 %v576_v18, %v530_v56  ;;  %v1078_v13 = vadd.f32 %v4672_v62, %v1009_v31  ;;  %v4910_v18 = vmul.f32 %v3076_v34, %v3553_v23  ;;  %v2709_v62 = vld [vmem:[%s7481_s1 + $0x4d9] sm:$0x7]  ;;  %v303_v54 = vmul.f32 %v2640_v33, %v3353_v14 }
  0xa3   :  { %7733 = vst [vmem:[#allocation14_spill] sm:$0xff] %v4863_v10  ;;  %7736 = vst [vmem:[#allocation42_spill] sm:$0xff] %v4879_v57  ;;  %v4882_v10 = vmul.f32 %v3030_v9, %v3535_v12  ;;  %v4899_v50 = vld [vmem:[%s7481_s1 + $0x651] sm:$0xff]  ;;  %v2663_v9 = vld [vmem:[%s7481_s1 + $0x299] sm:$0x7]  ;;  %v4914_v56 = vmul.f32 %v4890_v41, %v3556_v26  ;;  %v187_v31 = vadd.f32 %v165_v21, %v119_v53 }
  0xa4   :  { %7739 = vst [vmem:[#allocation34_spill] sm:$0xff] %v4890_v41  ;;  %7741 = vst [vmem:[#allocation9_spill] sm:$0xff] %v4899_v50  ;;  %v4918_v0 = vmul.f32 %v4899_v50, %v3573_v37  ;;  %v4923_v6 = vld [vmem:[%s7481_s1 + $0x891] sm:$0xff]  ;;  %v667_v2 = vadd.f32 %v645_v59, %v598_v32  ;;  %v1147_v24 = vadd.f32 %v4675_v5, %v1078_v13  ;;  %v7749_v13 = vld [vmem:[#allocation30_spill] sm:$0xff] }
  0xa5   :  { %7737 = vst [vmem:[#allocation12_spill] sm:$0xff] %v4882_v10  ;;  %7742 = vst [vmem:[#allocation46_spill] sm:$0xff] %v4910_v18  ;;  %v7746_v4 = vld [vmem:[#allocation20_spill] sm:$0xff]  ;;  %v2778_v18 = vld [vmem:[%s7481_s1 + $0x589] sm:$0x7]  ;;  %v4942_v59 = vmul.f32 %v4923_v6, %v3581_v43  ;;  %v371_v21 = vmul.f32 %v2663_v9, %v3362_v17  ;;  %v440_v33 = vmul.f32 %v2686_v45, %v3368_v19 }
  0xa6   :  { %7743 = vst [vmem:[#allocation15_spill] sm:$0xff] %v4914_v56  ;;  %7744 = vst [vmem:[#allocation43_spill] sm:$0xff] %v4918_v0  ;;  %v1558_v34 = vadd.f32 %v7746_v4, %v1489_v58  ;;  %v2732_v56 = vld [vmem:[%s7481_s1 + $0x719] sm:$0x7]  ;;  %v2755_v0 = vld [vmem:[%s7481_s1 + $0x7c8] sm:$0x7]  ;;  %v736_v4 = vadd.f32 %v4792_v36, %v667_v2  ;;  %v256_v10 = vadd.f32 %v234_v1, %v187_v31 }
  0xa7   :  { %7745 = vst [vmem:[#allocation35_spill] sm:$0xff] %v4923_v6  ;;  %7747 = vst [vmem:[#allocation44_spill] sm:$0xff] %v4942_v59  ;;  %v2801_v58 = vld [vmem:[%s7481_s1 + $0x7c9] sm:$0x7]  ;;  %v7748_v32 = vld [vmem:[#allocation24_spill] sm:$0xff]  ;;  %v509_v50 = vmul.f32 %v2709_v62, %v3371_v20  ;;  %v1215_v59 = vadd.f32 %v7749_v13, %v1147_v24  ;;  %v646_v36 = vmul.f32 %v2755_v0, %v3395_v27 }
  0xa8   :  { %v1626_v53 = vadd.f32 %v7748_v32, %v1558_v34  ;;  %v2824_v5 = vld [vmem:[%s7481_s1 + $0x358] sm:$0x7]  ;;  %v577_v34 = vmul.f32 %v2732_v56, %v3389_v25  ;;  %v4965_v1 = vmul.f32 %v2778_v18, %v3419_v35  ;;  %v7750_v2 = vld [vmem:[#allocation29_spill] sm:$0xff]  ;;  %v804_v32 = vadd.f32 %v4798_v51, %v736_v4  ;;  %v2962_v56 = vld [vmem:[%s7481_s1 + $0x888] sm:$0x7] }
  0xa9   :  { %v2847_v9 = vld [vmem:[%s7481_s1 + $0x119] sm:$0x7]  ;;  %v325_v6 = vadd.f32 %v303_v54, %v256_v10  ;;  %v4973_v57 = vmul.f32 %v2801_v58, %v7622_v52  ;;  %v7751_v0 = vld [vmem:[#allocation19_spill] sm:$0xff]  ;;  %v4986_v51 = vmul.f32 %v2824_v5, %v3428_v38  ;;  %v2985_v58 = vld [vmem:[%s7481_s1 + $0x649] sm:$0x7] }
  0xaa   :  { %v2870_v45 = vld [vmem:[%s7481_s1 + $0x359] sm:$0x7]  ;;  %v1695_v31 = vadd.f32 %v7750_v2, %v1626_v53  ;;  %v1284_v53 = vadd.f32 %v7751_v0, %v1215_v59  ;;  %v4989_v10 = vmul.f32 %v2847_v9, %v3443_v42  ;;  %v7753_v4 = vld [vmem:[#allocation23_spill] sm:$0xff]  ;;  %v873_v2 = vadd.f32 %v4801_v40, %v804_v32  ;;  %v7755_v40 = vld [vmem:[#allocation25_spill] sm:$0xff] }
  0xab   :  { %v2893_v62 = vld [vmem:[%s7481_s1 + $0x7d8] sm:$0x7]  ;;  %v4992_v54 = vmul.f32 %v2870_v45, %v3449_v44  ;;  %v393_v41 = vadd.f32 %v371_v21, %v325_v6  ;;  %v7754_v5 = vld [vmem:[#allocation31_spill] sm:$0xff]  ;;  %v5018_v32 = vmul.f32 %v2985_v58, %v3502_v61  ;;  %v166_v58 = vmul.f32 %v4770_v60, %v3335_v8 }
  0xac   :  { %v2916_v24 = vld [vmem:[%s7481_s1 + $0x599] sm:$0x7]  ;;  %v1764_v13 = vadd.f32 %v7753_v4, %v1695_v31  ;;  %v5000_v59 = vmul.f32 %v2893_v62, %v3452_v46  ;;  %v1353_v0 = vadd.f32 %v7754_v5, %v1284_v53  ;;  %v3008_v31 = vld [vmem:[%s7481_s1 + $0x889] sm:$0x7]  ;;  %v942_v21 = vadd.f32 %v4805_v16, %v873_v2 }
  0xad   :  { %v2939_v18 = vld [vmem:[%s7481_s1 + $0x7d9] sm:$0x7]  ;;  %7752 = vst [vmem:[#allocation16_spill] sm:$0xff] %v4992_v54  ;;  %v5004_v9 = vmul.f32 %v2916_v24, %v3455_v47  ;;  %v5010_v54 = vmul.f32 %v2962_v56, %v3483_v55  ;;  %v462_v62 = vadd.f32 %v440_v33, %v393_v41  ;;  %v7756_v56 = vld [vmem:[#allocation21_spill] sm:$0xff]  ;;  %v51_v41 = vmul.f32 %v4756_v28, %v7579_v22 }
  0xae   :  { %v5007_v45 = vmul.f32 %v2939_v18, %v3458_v48  ;;  %v1832_v6 = vadd.f32 %v7755_v40, %v1764_v13  ;;  %v3031_v24 = vld [vmem:[%s7481_s1 + $0x418] sm:$0x7]  ;;  %v2618_v18 = vld [vmem:[%s7481_s1 + $0x2a0] sm:$0xff]  ;;  %v1421_v53 = vadd.f32 %v7756_v56, %v1353_v0  ;;  %v98_v33 = vmul.f32 %v4765_v49, %v3333_v7 }
  0xaf   :  { %v3054_v4 = vld [vmem:[%s7481_s1 + $0x1d9] sm:$0x7]  ;;  %v1010_v2 = vadd.f32 %v4808_v63, %v942_v21  ;;  %v531_v5 = vadd.f32 %v509_v50, %v462_v62  ;;  %v5042_v0 = vmul.f32 %v3008_v31, %v3523_v3  ;;  %v2641_v28 = vld [vmem:[%s7481_s1 + $0x61] sm:$0xff]  ;;  %v5052_v60 = vmul.f32 %v3031_v24, %v3535_v12 }
  0xb0   :  { %v3077_v16 = vld [vmem:[%s7481_s1 + $0x419] sm:$0x7]  ;;  %v1856_v13 = vadd.f32 %v7613_v39, %v1832_v6  ;;  %v120_v31 = vadd.f32 %v98_v33, %v51_v41  ;;  %v235_v6 = vmul.f32 %v2618_v18, %v3343_v11  ;;  %v304_v33 = vmul.f32 %v2641_v28, %v3353_v14 }
  0xb1   :  { %v3100_v40 = vld [vmem:[%s7481_s1 + $0x898] sm:$0x7]  ;;  %7758 = vst [vmem:[#allocation11_spill] sm:$0xff] %v5052_v60  ;;  %v1079_v21 = vadd.f32 %v4827_v30, %v1010_v2  ;;  %v599_v62 = vadd.f32 %v577_v34, %v531_v5  ;;  %v5067_v24 = vmul.f32 %v3077_v16, %v3553_v23  ;;  %v7762_v30 = vld [vmem:[#allocation41_spill] sm:$0xff] }
  0xb2   :  { %v7757_v49 = vld [vmem:[#allocation28_spill] sm:$0xff]  ;;  %1906 = vst.msk [vmem:[#allocation2 + $0x41] sm:$0xff] %vm1872_vm0, %v1856_v13  ;;  %v5074_v41 = vmul.f32 %v3100_v40, %v3556_v26  ;;  %v188_v18 = vadd.f32 %v166_v58, %v120_v31  ;;  %v5087_v2 = vld [vmem:[%s7481_s1 + $0x720] sm:$0xff] }
  0xb3   :  { %v1490_v56 = vadd.f32 %v7757_v49, %v1421_v53  ;;  %v3123_v63 = vld [vmem:[%s7481_s1 + $0x659] sm:$0x7]  ;;  %v5064_v53 = vmul.f32 %v3054_v4, %v3541_v15  ;;  %7760 = vst [vmem:[#allocation27_spill] sm:$0xff] %v5067_v24  ;;  %v2664_v49 = vld [vmem:[%s7481_s1 + $0x2a1] sm:$0xff]  ;;  %v1148_v34 = vadd.f32 %v7762_v30, %v1079_v21  ;;  %v668_v13 = vadd.f32 %v646_v36, %v599_v62  ;;  %v7773_v24 = vld [vmem:[#allocation39_spill] sm:$0xff] }
  0xb4   :  { %v3146_v50 = vld [vmem:[%s7481_s1 + $0x899] sm:$0x7]  ;;  %7761 = vst [vmem:[#allocation17_spill] sm:$0xff] %v5074_v41  ;;  %v5079_v4 = vmul.f32 %v3123_v63, %v3573_v37  ;;  %v257_v40 = vadd.f32 %v235_v6, %v188_v18  ;;  %v372_v58 = vmul.f32 %v2664_v49, %v3362_v17  ;;  %v441_v28 = vmul.f32 %v5087_v2, %v3368_v19  ;;  %v5096_v36 = vld [vmem:[%s7481_s1 + $0x4e1] sm:$0xff] }
  0xb5   :  { %7759 = vst [vmem:[#allocation45_spill] sm:$0xff] %v5064_v53  ;;  %v1559_v60 = vadd.f32 %v4733_v29, %v1490_v56  ;;  %v5082_v16 = vmul.f32 %v3146_v50, %v3581_v43  ;;  %v7765_v29 = vld [vmem:[#allocation26_spill] sm:$0xff]  ;;  %7766 = vst [vmem:[#allocation20_spill] sm:$0xff] %v5096_v36  ;;  %v7768_v63 = vld [vmem:[#allocation33_spill] sm:$0xff]  ;;  %v737_v31 = vadd.f32 %v4965_v1, %v668_v13 }
  0xb6   :  { %7763 = vst [vmem:[#allocation18_spill] sm:$0xff] %v5079_v4  ;;  %v5101_v56 = vld [vmem:[%s7481_s1 + $0x721] sm:$0xff]  ;;  %v1216_v50 = vadd.f32 %v7768_v63, %v1148_v34  ;;  %v510_v6 = vmul.f32 %v5096_v36, %v3371_v20  ;;  %v7770_v34 = vld [vmem:[#allocation40_spill] sm:$0xff]  ;;  %v5129_v53 = vmul.f32 %v7773_v24, %v7622_v52 }
  0xb7   :  { %7764 = vst [vmem:[#allocation13_spill] sm:$0xff] %v5082_v16  ;;  %v1627_v5 = vadd.f32 %v7765_v29, %v1559_v60  ;;  %7767 = vst [vmem:[#allocation24_spill] sm:$0xff] %v5101_v56  ;;  %v2825_v60 = vld [vmem:[%s7481_s1 + $0x360] sm:$0xff]  ;;  %v578_v21 = vmul.f32 %v5101_v56, %v3389_v25  ;;  %v7769_v18 = vld [vmem:[#allocation22_spill] sm:$0xff]  ;;  %v326_v29 = vadd.f32 %v304_v33, %v257_v40 }
  0xb8   :  { %v2848_v62 = vld [vmem:[%s7481_s1 + $0x121] sm:$0xff]  ;;  %v647_v1 = vmul.f32 %v7770_v34, %v3395_v27  ;;  %v7772_v16 = vld [vmem:[#allocation32_spill] sm:$0xff]  ;;  %v805_v41 = vadd.f32 %v4973_v57, %v737_v31  ;;  %v5132_v56 = vmul.f32 %v2825_v60, %v3428_v38 }
  0xb9   :  { %v2871_v49 = vld [vmem:[%s7481_s1 + $0x361] sm:$0xff]  ;;  %v1696_v30 = vadd.f32 %v7769_v18, %v1627_v5  ;;  %v1285_v4 = vadd.f32 %v7772_v16, %v1216_v50  ;;  %v394_v40 = vadd.f32 %v372_v58, %v326_v29  ;;  %v5136_v18 = vmul.f32 %v2848_v62, %v3443_v42  ;;  %v2551_v16 = vld [vmem:[%s7481_s1 + $0x718] sm:$0x7] }
  0xba   :  { %v7771_v13 = vld [vmem:[#allocation38_spill] sm:$0xff]  ;;  %v7774_v5 = vld [vmem:[#allocation37_spill] sm:$0xff]  ;;  %v5139_v34 = vmul.f32 %v2871_v49, %v3449_v44  ;;  %v874_v50 = vadd.f32 %v4986_v51, %v805_v41  ;;  %v2596_v51 = vld [vmem:[%s7481_s1 + $0x719] sm:$0x7] }
  0xbb   :  { %v5123_v63 = vmul.f32 %v7771_v13, %v3419_v35  ;;  %v1765_v33 = vadd.f32 %v7774_v5, %v1696_v30  ;;  %v5144_v57 = vld [vmem:[%s7481_s1 + $0x7e0] sm:$0xff]  ;;  %v7778_v58 = vld [vmem:[#allocation14_spill] sm:$0xff]  ;;  %v2573_v30 = vld [vmem:[%s7481_s1 + $0x4d9] sm:$0x7]  ;;  %v463_v29 = vadd.f32 %v441_v28, %v394_v40  ;;  %v52_v40 = vmul.f32 %v2551_v16, %v7579_v22 }
  0xbc   :  { %7775 = vst [vmem:[#allocation30_spill] sm:$0xff] %v5139_v34  ;;  %7776 = vst [vmem:[#allocation29_spill] sm:$0xff] %v5144_v57  ;;  %v5149_v24 = vld [vmem:[%s7481_s1 + $0x5a1] sm:$0xff]  ;;  %v1354_v60 = vadd.f32 %v7778_v58, %v1285_v4  ;;  %v5158_v31 = vmul.f32 %v5144_v57, %v3452_v46  ;;  %v7791_v16 = vld [vmem:[#allocation35_spill] sm:$0xff] }
  0xbd   :  { %7777 = vst [vmem:[#allocation19_spill] sm:$0xff] %v5149_v24  ;;  %v5162_v62 = vmul.f32 %v5149_v24, %v3455_v47  ;;  %v5167_v49 = vld [vmem:[%s7481_s1 + $0x7e1] sm:$0xff] }
  0xbe   :  { %7779 = vst [vmem:[#allocation23_spill] sm:$0xff] %v5158_v31  ;;  %7781 = vst [vmem:[#allocation25_spill] sm:$0xff] %v5167_v49  ;;  %v7782_v41 = vld [vmem:[#allocation10_spill] sm:$0xff]  ;;  %v5178_v13 = vmul.f32 %v5167_v49, %v3458_v48  ;;  %v3032_v24 = vld [vmem:[%s7481_s1 + $0x420] sm:$0xff]  ;;  %v943_v31 = vadd.f32 %v4989_v10, %v874_v50  ;;  %v532_v49 = vadd.f32 %v510_v6, %v463_v29 }
  0xbf   :  { %7780 = vst [vmem:[#allocation31_spill] sm:$0xff] %v5162_v62  ;;  %v1833_v4 = vadd.f32 %v7782_v41, %v1765_v33  ;;  %v7784_v5 = vld [vmem:[#allocation34_spill] sm:$0xff]  ;;  %v7787_v34 = vld [vmem:[#allocation9_spill] sm:$0xff]  ;;  %v5213_v36 = vmul.f32 %v3032_v24, %v3535_v12  ;;  %v7794_v29 = vld [vmem:[#allocation36_spill] sm:$0xff] }
  0xc0   :  { %7783 = vst [vmem:[#allocation21_spill] sm:$0xff] %v5178_v13  ;;  %v5182_v58 = vmul.f32 %v7784_v5, %v3483_v55  ;;  %v7786_v57 = vld [vmem:[#allocation42_spill] sm:$0xff]  ;;  %v5191_v33 = vmul.f32 %v7787_v34, %v3502_v61  ;;  %v99_v34 = vmul.f32 %v2573_v30, %v3333_v7  ;;  %v5210_v13 = vmul.f32 %v7791_v16, %v3523_v3 }
  0xc1   :  { %v1422_v62 = vadd.f32 %v7786_v57, %v1354_v60  ;;  %v3055_v28 = vld [vmem:[%s7481_s1 + $0x1e1] sm:$0xff]  ;;  %v1857_v5 = vadd.f32 %v7613_v39, %v1833_v4  ;;  %v167_v57 = vmul.f32 %v2596_v51, %v3335_v8  ;;  %v7789_v60 = vld [vmem:[#allocation12_spill] sm:$0xff]  ;;  %7792 = vst [vmem:[#allocation26_spill] sm:$0xff] %v5213_v36  ;;  %v2642_v6 = vld [vmem:[%s7481_s1 + $0x69] sm:$0x7]  ;;  %v600_v30 = vadd.f32 %v578_v21, %v532_v49 }
  0xc2   :  { %7785 = vst [vmem:[#allocation28_spill] sm:$0xff] %v5182_v58  ;;  %7788 = vst [vmem:[#allocation41_spill] sm:$0xff] %v5191_v33  ;;  %v2619_v41 = vld [vmem:[%s7481_s1 + $0x2a8] sm:$0x7]  ;;  %v7790_v33 = vld [vmem:[#allocation16_spill] sm:$0xff]  ;;  %v5220_v51 = vmul.f32 %v3055_v28, %v3541_v15 }
  0xc3   :  { %v3078_v10 = vld [vmem:[%s7481_s1 + $0x421] sm:$0xff]  ;;  %v1491_v50 = vadd.f32 %v7789_v60, %v1422_v62  ;;  %v1011_v58 = vadd.f32 %v7790_v33, %v943_v31  ;;  %1907 = vst.msk [vmem:[#allocation2 + $0x49] sm:$0x7] %vm1900_vm2, %v1857_v5  ;;  %v121_v62 = vadd.f32 %v99_v34, %v52_v40  ;;  %v236_v4 = vmul.f32 %v2619_v41, %v3343_v11  ;;  %v2665_v24 = vld [vmem:[%s7481_s1 + $0x2a9] sm:$0x7] }
  0xc4   :  { %7793 = vst [vmem:[#allocation33_spill] sm:$0xff] %v5220_v51  ;;  %v5225_v31 = vld [vmem:[%s7481_s1 + $0x8a0] sm:$0xff]  ;;  %v5234_v21 = vmul.f32 %v3078_v10, %v3553_v23  ;;  %v2688_v40 = vld [vmem:[%s7481_s1 + $0x728] sm:$0x7]  ;;  %v305_v60 = vmul.f32 %v2642_v6, %v3353_v14  ;;  %v2780_v6 = vld [vmem:[%s7481_s1 + $0x599] sm:$0x7] }
  0xc5   :  { %v1560_v33 = vadd.f32 %v7794_v29, %v1491_v50  ;;  %v1080_v5 = vadd.f32 %v5000_v59, %v1011_v58  ;;  %v5238_v49 = vmul.f32 %v5225_v31, %v3556_v26  ;;  %v5243_v28 = vld [vmem:[%s7481_s1 + $0x661] sm:$0xff]  ;;  %v2711_v59 = vld [vmem:[%s7481_s1 + $0x4e9] sm:$0x7]  ;;  %v669_v58 = vadd.f32 %v647_v1, %v600_v30  ;;  %v2757_v1 = vld [vmem:[%s7481_s1 + $0x7d8] sm:$0x7] }
  0xc6   :  { %7795 = vst [vmem:[#allocation22_spill] sm:$0xff] %v5234_v21  ;;  %v5253_v41 = vmul.f32 %v5243_v28, %v3573_v37  ;;  %v5258_v10 = vld [vmem:[%s7481_s1 + $0x8a1] sm:$0xff]  ;;  %v189_v34 = vadd.f32 %v167_v57, %v121_v62  ;;  %v2734_v50 = vld [vmem:[%s7481_s1 + $0x729] sm:$0x7]  ;;  %v373_v57 = vmul.f32 %v2665_v24, %v3362_v17  ;;  %v2803_v62 = vld [vmem:[%s7481_s1 + $0x7d9] sm:$0x7] }
  0xc7   :  { %7796 = vst [vmem:[#allocation40_spill] sm:$0xff] %v5238_v49  ;;  %7798 = vst [vmem:[#allocation32_spill] sm:$0xff] %v5258_v10  ;;  %v7799_v16 = vld [vmem:[#allocation46_spill] sm:$0xff]  ;;  %v1149_v29 = vadd.f32 %v5004_v9, %v1080_v5  ;;  %v738_v49 = vadd.f32 %v5123_v63, %v669_v58  ;;  %v511_v9 = vmul.f32 %v2711_v59, %v3371_v20 }
  0xc8   :  { %7797 = vst [vmem:[#allocation38_spill] sm:$0xff] %v5253_v41  ;;  %v1628_v30 = vadd.f32 %v7799_v16, %v1560_v33  ;;  %v5271_v41 = vmul.f32 %v5258_v10, %v3581_v43  ;;  %v258_v21 = vadd.f32 %v236_v4, %v189_v34  ;;  %v442_v33 = vmul.f32 %v2688_v40, %v3368_v19  ;;  %v2826_v5 = vld [vmem:[%s7481_s1 + $0x368] sm:$0x7]  ;;  %v7801_v16 = vld [vmem:[#allocation15_spill] sm:$0xff] }
  0xc9   :  { %v2849_v24 = vld [vmem:[%s7481_s1 + $0x129] sm:$0x7]  ;;  %v1217_v51 = vadd.f32 %v5007_v45, %v1149_v29  ;;  %v579_v10 = vmul.f32 %v2734_v50, %v3389_v25  ;;  %v648_v63 = vmul.f32 %v2757_v1, %v3395_v27  ;;  %v806_v59 = vadd.f32 %v5129_v53, %v738_v49 }
  0xca   :  { %7800 = vst [vmem:[#allocation39_spill] sm:$0xff] %v5271_v41  ;;  %v1697_v41 = vadd.f32 %v7801_v16, %v1628_v30  ;;  %v2872_v4 = vld [vmem:[%s7481_s1 + $0x369] sm:$0x7]  ;;  %v327_v58 = vadd.f32 %v305_v60, %v258_v21  ;;  %v5301_v34 = vmul.f32 %v2780_v6, %v3419_v35  ;;  %v5304_v45 = vmul.f32 %v2803_v62, %v7622_v52 }
  0xcb   :  { %v2895_v40 = vld [vmem:[%s7481_s1 + $0x7e8] sm:$0x7] }
  0xcc   :  { %v2918_v50 = vld [vmem:[%s7481_s1 + $0x5a9] sm:$0x7] }
  0xcd   :  { %v2941_v1 = vld [vmem:[%s7481_s1 + $0x7e9] sm:$0x7] }
  0xce   :  { %13 = vsyncpa [#allocation6], 0  ;;  %v7802_v30 = vld [vmem:[#allocation43_spill] sm:$0xff]  ;;  %v1286_v53 = vadd.f32 %v5010_v54, %v1217_v51  ;;  %v5315_v21 = vmul.f32 %v2826_v5, %v3428_v38  ;;  %v5318_v49 = vmul.f32 %v2849_v24, %v3443_v42  ;;  %v2964_v60 = vld [vmem:[%s7481_s1 + $0x898] sm:$0x7]  ;;  %v875_v62 = vadd.f32 %v5132_v56, %v806_v59  ;;  %s6908_s5 = sld [smem:[#allocation4 + $0x1c]] }
  0xcf   :  { %v1766_v29 = vadd.f32 %v7802_v30, %v1697_v41  ;;  %v2987_v6 = vld [vmem:[%s7481_s1 + $0x659] sm:$0x7]  ;;  %v395_v16 = vadd.f32 %v373_v57, %v327_v58  ;;  %v5328_v41 = vmul.f32 %v2872_v4, %v3449_v44  ;;  %v5331_v54 = vmul.f32 %v2895_v40, %v3452_v46  ;;  %v2620_v58 = vld [vmem:[%s7481_s1 + $0x2b0] sm:$0xff]  ;;  %s6910_s18 = sld [smem:[#allocation4 + $0x1d]]  ;;  %s6933_s28 = sld [smem:[#allocation4 + $0x1e]] }
  0xd0   :  { %v7803_v51 = vld [vmem:[#allocation44_spill] sm:$0xff]  ;;  %v1355_v24 = vadd.f32 %v5018_v32, %v1286_v53  ;;  %v5336_v30 = vmul.f32 %v2918_v50, %v3455_v47  ;;  %v5339_v36 = vmul.f32 %v2941_v1, %v3458_v48  ;;  %v944_v57 = vadd.f32 %v5136_v18, %v875_v62  ;;  %v3033_v32 = vld [vmem:[%s7481_s1 + $0x428] sm:$0x7]  ;;  %s6935_s11 = sld [smem:[#allocation4 + $0x1f]]  ;;  %s6964_s17 = sld [smem:[#allocation4 + $0x20]] }
  0xd1   :  { %v1834_v5 = vadd.f32 %v7803_v51, %v1766_v29  ;;  %v3010_v56 = vld [vmem:[%s7481_s1 + $0x899] sm:$0x7]  ;;  %v464_v4 = vadd.f32 %v442_v33, %v395_v16  ;;  %v5346_v40 = vmul.f32 %v2964_v60, %v3483_v55  ;;  %v5349_v59 = vmul.f32 %v2987_v6, %v3502_v61  ;;  %v3056_v18 = vld [vmem:[%s7481_s1 + $0x1e9] sm:$0x7]  ;;  %s6973_s3 = sld [smem:[#allocation4 + $0x21]]  ;;  %s7001_s13 = sld [smem:[#allocation4 + $0x22]] }
  0xd2   :  { %7804 = vst [vmem:[#allocation37_spill] sm:$0xff] %v5339_v36  ;;  %v1423_v1 = vadd.f32 %v5042_v0, %v1355_v24  ;;  %v3079_v33 = vld [vmem:[%s7481_s1 + $0x429] sm:$0x7]  ;;  %v53_v29 = vmul.f32 %v5087_v2, %v7579_v22  ;;  %v7807_v53 = vld [vmem:[#allocation20_spill] sm:$0xff]  ;;  %v5371_v51 = vmul.f32 %v3010_v56, %v3523_v3  ;;  %s7003_s29 = sld [smem:[#allocation4 + $0x23]]  ;;  %s7024_s24 = sld [smem:[#allocation4 + $0x24]] }
  0xd3   :  { %7805 = vst [vmem:[#allocation14_spill] sm:$0xff] %v5346_v40  ;;  %7806 = vst [vmem:[#allocation10_spill] sm:$0xff] %v5349_v59  ;;  %v1858_v50 = vadd.f32 %v7613_v39, %v1834_v5  ;;  %v100_v60 = vmul.f32 %v7807_v53, %v3333_v7  ;;  %v7808_v6 = vld [vmem:[#allocation30_spill] sm:$0xff]  ;;  %v533_v16 = vadd.f32 %v511_v9, %v464_v4  ;;  %v7810_v5 = vld [vmem:[#allocation24_spill] sm:$0xff]  ;;  %s7080_s8 = sld [smem:[#allocation4 + $0x25]]  ;;  %vm2504_vm3 = vcmask 74752  }
  0xd4   :  { %v1012_v62 = vadd.f32 %v7808_v6, %v944_v57  ;;  %7809 = vst [vmem:[#allocation34_spill] sm:$0xff] %v5371_v51  ;;  %v3102_v0 = vld [vmem:[%s7481_s1 + $0x8a8] sm:$0x7]  ;;  %v168_v24 = vmul.f32 %v7810_v5, %v3335_v8  ;;  %v2643_v2 = vld [vmem:[%s7481_s1 + $0x71] sm:$0xff]  ;;  %v5384_v9 = vmul.f32 %v3033_v32, %v3535_v12  ;;  %v237_v6 = vmul.f32 %v2620_v58, %v3343_v11 }
  0xd5   :  { %1908 = vst.msk [vmem:[#allocation2 + $0x51] sm:$0xff] %vm1872_vm0, %v1858_v50  ;;  %v7811_v53 = vld [vmem:[#allocation11_spill] sm:$0xff]  ;;  %v3125_v56 = vld [vmem:[%s7481_s1 + $0x669] sm:$0x7]  ;;  %v122_v4 = vadd.f32 %v100_v60, %v53_v29  ;;  %v601_v40 = vadd.f32 %v579_v10, %v533_v16  ;;  %v5395_v50 = vmul.f32 %v3056_v18, %v3541_v15  ;;  %v5398_v32 = vmul.f32 %v3079_v33, %v3553_v23 }
  0xd6   :  { %v1492_v59 = vadd.f32 %v7811_v53, %v1423_v1  ;;  %7812 = vst [vmem:[#allocation42_spill] sm:$0xff] %v5384_v9  ;;  %v3148_v57 = vld [vmem:[%s7481_s1 + $0x8a9] sm:$0x7]  ;;  %v7813_v5 = vld [vmem:[#allocation23_spill] sm:$0xff]  ;;  %v7816_v53 = vld [vmem:[#allocation45_spill] sm:$0xff]  ;;  %v5405_v36 = vmul.f32 %v3102_v0, %v3556_v26  ;;  %v306_v58 = vmul.f32 %v2643_v2, %v3353_v14  ;;  %v5410_v18 = vmul.f32 %v3125_v56, %v3573_v37 }
  0xd7   :  { %v1081_v51 = vadd.f32 %v7813_v5, %v1012_v62  ;;  %7814 = vst [vmem:[#allocation9_spill] sm:$0xff] %v5395_v50  ;;  %7815 = vst [vmem:[#allocation12_spill] sm:$0xff] %v5398_v32  ;;  %v2666_v1 = vld [vmem:[%s7481_s1 + $0x2b1] sm:$0xff]  ;;  %v190_v29 = vadd.f32 %v168_v24, %v122_v4  ;;  %v670_v62 = vadd.f32 %v648_v63, %v601_v40  ;;  %v7828_v32 = vld [vmem:[#allocation25_spill] sm:$0xff] }
  0xd8   :  { %v1561_v9 = vadd.f32 %v7816_v53, %v1492_v59  ;;  %7817 = vst [vmem:[#allocation16_spill] sm:$0xff] %v5405_v36  ;;  %v7818_v60 = vld [vmem:[#allocation31_spill] sm:$0xff]  ;;  %7819 = vst [vmem:[#allocation35_spill] sm:$0xff] %v5410_v18  ;;  %v5413_v33 = vmul.f32 %v3148_v57, %v3581_v43  ;;  %v374_v24 = vmul.f32 %v2666_v1, %v3362_v17 }
  0xd9   :  { %v1150_v10 = vadd.f32 %v7818_v60, %v1081_v51  ;;  %v5418_v16 = vld [vmem:[%s7481_s1 + $0x730] sm:$0xff]  ;;  %v259_v5 = vadd.f32 %v237_v6, %v190_v29  ;;  %v739_v57 = vadd.f32 %v5301_v34, %v670_v62  ;;  %v7824_v29 = vld [vmem:[#allocation17_spill] sm:$0xff]  ;;  %v5460_v50 = vmul.f32 %v7828_v32, %v7622_v52 }
  0xda   :  { %7820 = vst [vmem:[#allocation36_spill] sm:$0xff] %v5413_v33  ;;  %v7821_v59 = vld [vmem:[#allocation27_spill] sm:$0xff]  ;;  %v443_v51 = vmul.f32 %v5418_v16, %v3368_v19  ;;  %v7827_v33 = vld [vmem:[#allocation28_spill] sm:$0xff] }
  0xdb   :  { %v1629_v0 = vadd.f32 %v7821_v59, %v1561_v9  ;;  %v5427_v63 = vld [vmem:[%s7481_s1 + $0x4f1] sm:$0xff]  ;;  %v7823_v9 = vld [vmem:[#allocation21_spill] sm:$0xff]  ;;  %v328_v59 = vadd.f32 %v306_v58, %v259_v5  ;;  %v807_v36 = vadd.f32 %v5304_v45, %v739_v57 }
  0xdc   :  { %v5432_v40 = vld [vmem:[%s7481_s1 + $0x731] sm:$0xff]  ;;  %v1218_v56 = vadd.f32 %v7823_v9, %v1150_v10  ;;  %v512_v4 = vmul.f32 %v5427_v63, %v3371_v20  ;;  %v7825_v10 = vld [vmem:[#allocation29_spill] sm:$0xff] }
  0xdd   :  { %7822 = vst [vmem:[#allocation46_spill] sm:$0xff] %v5432_v40  ;;  %v2827_v2 = vld [vmem:[%s7481_s1 + $0x370] sm:$0xff]  ;;  %v580_v6 = vmul.f32 %v5432_v40, %v3389_v25  ;;  %v1698_v60 = vadd.f32 %v7824_v29, %v1629_v0  ;;  %v649_v34 = vmul.f32 %v7825_v10, %v3395_v27  ;;  %v7829_v0 = vld [vmem:[#allocation18_spill] sm:$0xff]  ;;  %v396_v5 = vadd.f32 %v374_v24, %v328_v59  ;;  %v7832_v24 = vld [vmem:[#allocation41_spill] sm:$0xff] }
  0xde   :  { %v2850_v1 = vld [vmem:[%s7481_s1 + $0x131] sm:$0xff]  ;;  %v1287_v18 = vadd.f32 %v7827_v33, %v1218_v56  ;;  %v5463_v40 = vmul.f32 %v2827_v2, %v3428_v38  ;;  %v2553_v33 = vld [vmem:[%s7481_s1 + $0x728] sm:$0x7]  ;;  %v876_v56 = vadd.f32 %v5315_v21, %v807_v36  ;;  %v7834_v21 = vld [vmem:[#allocation13_spill] sm:$0xff] }
  0xdf   :  { %v2873_v53 = vld [vmem:[%s7481_s1 + $0x371] sm:$0xff]  ;;  %v1767_v58 = vadd.f32 %v7829_v0, %v1698_v60  ;;  %v5467_v29 = vmul.f32 %v2850_v1, %v3443_v42  ;;  %v2575_v60 = vld [vmem:[%s7481_s1 + $0x4e9] sm:$0x7]  ;;  %v465_v59 = vadd.f32 %v443_v51, %v396_v5  ;;  %v5513_v0 = vmul.f32 %v5225_v31, %v3483_v55 }
  0xe0   :  { %v7826_v62 = vld [vmem:[#allocation19_spill] sm:$0xff]  ;;  %v5470_v10 = vmul.f32 %v2873_v53, %v3449_v44  ;;  %v1356_v2 = vadd.f32 %v7832_v24, %v1287_v18  ;;  %v2598_v36 = vld [vmem:[%s7481_s1 + $0x729] sm:$0x7]  ;;  %v54_v5 = vmul.f32 %v2553_v33, %v7579_v22  ;;  %v2621_v31 = vld [vmem:[%s7481_s1 + $0x2b8] sm:$0x7] }
  0xe1   :  { %v5454_v9 = vmul.f32 %v7826_v62, %v3419_v35  ;;  %v5475_v45 = vld [vmem:[%s7481_s1 + $0x7f0] sm:$0xff]  ;;  %v1835_v18 = vadd.f32 %v7834_v21, %v1767_v58  ;;  %7836 = vst [vmem:[#allocation30_spill] sm:$0xff] %v5513_v0  ;;  %v5522_v58 = vmul.f32 %v5243_v28, %v3502_v61  ;;  %v101_v28 = vmul.f32 %v2575_v60, %v3333_v7  ;;  %v7839_v33 = vld [vmem:[#allocation32_spill] sm:$0xff] }
  0xe2   :  { %7830 = vst [vmem:[#allocation15_spill] sm:$0xff] %v5475_v45  ;;  %v5480_v32 = vld [vmem:[%s7481_s1 + $0x5b1] sm:$0xff]  ;;  %v5489_v57 = vmul.f32 %v5475_v45, %v3452_v46  ;;  %v945_v45 = vadd.f32 %v5318_v49, %v876_v56  ;;  %v169_v49 = vmul.f32 %v2598_v36, %v3335_v8  ;;  %v5541_v0 = vmul.f32 %v7839_v33, %v3523_v3  ;;  %v7849_v33 = vld [vmem:[#allocation22_spill] sm:$0xff] }
  0xe3   :  { %7831 = vst [vmem:[#allocation43_spill] sm:$0xff] %v5480_v32  ;;  %v5493_v1 = vmul.f32 %v5480_v32, %v3455_v47  ;;  %v5498_v53 = vld [vmem:[%s7481_s1 + $0x7f1] sm:$0xff]  ;;  %v1424_v32 = vadd.f32 %v5210_v13, %v1356_v2  ;;  %7837 = vst [vmem:[#allocation24_spill] sm:$0xff] %v5522_v58  ;;  %v1859_v21 = vadd.f32 %v7613_v39, %v1835_v18  ;;  %v7838_v2 = vld [vmem:[#allocation26_spill] sm:$0xff] }
  0xe4   :  { %7833 = vst [vmem:[#allocation44_spill] sm:$0xff] %v5498_v53  ;;  %v5509_v62 = vmul.f32 %v5498_v53, %v3458_v48  ;;  %v3034_v24 = vld [vmem:[%s7481_s1 + $0x430] sm:$0xff]  ;;  %v534_v53 = vadd.f32 %v512_v4, %v465_v59  ;;  %v1013_v58 = vadd.f32 %v5328_v41, %v945_v45  ;;  %7840 = vst [vmem:[#allocation11_spill] sm:$0xff] %v5541_v0  ;;  %v2644_v4 = vld [vmem:[%s7481_s1 + $0x79] sm:$0x7] }
  0xe5   :  { %v3057_v51 = vld [vmem:[%s7481_s1 + $0x1f1] sm:$0xff]  ;;  %v1493_v56 = vadd.f32 %v7838_v2, %v1424_v32  ;;  %1909 = vst.msk [vmem:[#allocation2 + $0x59] sm:$0x7] %vm1900_vm2, %v1859_v21  ;;  %v123_v45 = vadd.f32 %v101_v28, %v54_v5  ;;  %v238_v32 = vmul.f32 %v2621_v31, %v3343_v11  ;;  %v2667_v18 = vld [vmem:[%s7481_s1 + $0x2b9] sm:$0x7]  ;;  %v7843_v59 = vld [vmem:[#allocation33_spill] sm:$0xff]  ;;  %v307_v2 = vmul.f32 %v2644_v4, %v3353_v14 }
  0xe6   :  { %7835 = vst [vmem:[#allocation20_spill] sm:$0xff] %v5509_v62  ;;  %v3080_v13 = vld [vmem:[%s7481_s1 + $0x431] sm:$0xff]  ;;  %v5544_v62 = vmul.f32 %v3034_v24, %v3535_v12  ;;  %v602_v60 = vadd.f32 %v580_v6, %v534_v53  ;;  %v5551_v36 = vmul.f32 %v3057_v51, %v3541_v15  ;;  %v1082_v21 = vadd.f32 %v5331_v54, %v1013_v58  ;;  %v2713_v54 = vld [vmem:[%s7481_s1 + $0x4f9] sm:$0x7]  ;;  %v2782_v4 = vld [vmem:[%s7481_s1 + $0x5a9] sm:$0x7] }
  0xe7   :  { %v5556_v41 = vld [vmem:[%s7481_s1 + $0x8b0] sm:$0xff]  ;;  %v1562_v24 = vadd.f32 %v7843_v59, %v1493_v56  ;;  %v5565_v6 = vmul.f32 %v3080_v13, %v3553_v23  ;;  %v2690_v5 = vld [vmem:[%s7481_s1 + $0x738] sm:$0x7]  ;;  %v191_v28 = vadd.f32 %v169_v49, %v123_v45  ;;  %v375_v49 = vmul.f32 %v2667_v18, %v3362_v17  ;;  %v2805_v45 = vld [vmem:[%s7481_s1 + $0x7e9] sm:$0x7] }
  0xe8   :  { %7841 = vst [vmem:[#allocation23_spill] sm:$0xff] %v5544_v62  ;;  %7842 = vst [vmem:[#allocation45_spill] sm:$0xff] %v5551_v36  ;;  %v5569_v53 = vmul.f32 %v5556_v41, %v3556_v26  ;;  %v5574_v51 = vld [vmem:[%s7481_s1 + $0x671] sm:$0xff]  ;;  %v671_v58 = vadd.f32 %v649_v34, %v602_v60  ;;  %v2736_v56 = vld [vmem:[%s7481_s1 + $0x739] sm:$0x7]  ;;  %v1151_v59 = vadd.f32 %v5336_v30, %v1082_v21 }
  0xe9   :  { %7844 = vst [vmem:[#allocation31_spill] sm:$0xff] %v5565_v6  ;;  %7846 = vst [vmem:[#allocation21_spill] sm:$0xff] %v5574_v51  ;;  %v5584_v31 = vmul.f32 %v5574_v51, %v3573_v37  ;;  %v5589_v13 = vld [vmem:[%s7481_s1 + $0x8b1] sm:$0xff]  ;;  %v2759_v34 = vld [vmem:[%s7481_s1 + $0x7e8] sm:$0x7]  ;;  %v1630_v60 = vadd.f32 %v7849_v33, %v1562_v24  ;;  %v260_v6 = vadd.f32 %v238_v32, %v191_v28 }
  0xea   :  { %7845 = vst [vmem:[#allocation27_spill] sm:$0xff] %v5569_v53  ;;  %7848 = vst [vmem:[#allocation29_spill] sm:$0xff] %v5589_v13  ;;  %v740_v53 = vadd.f32 %v5454_v9, %v671_v58  ;;  %v444_v24 = vmul.f32 %v2690_v5, %v3368_v19  ;;  %v513_v30 = vmul.f32 %v2713_v54, %v3371_v20  ;;  %v2828_v21 = vld [vmem:[%s7481_s1 + $0x378] sm:$0x7]  ;;  %v7852_v36 = vld [vmem:[#allocation37_spill] sm:$0xff] }
  0xeb   :  { %7847 = vst [vmem:[#allocation17_spill] sm:$0xff] %v5584_v31  ;;  %v5602_v31 = vmul.f32 %v5589_v13, %v3581_v43  ;;  %v2851_v18 = vld [vmem:[%s7481_s1 + $0x139] sm:$0x7]  ;;  %v1219_v13 = vadd.f32 %v7852_v36, %v1151_v59  ;;  %v581_v62 = vmul.f32 %v2736_v56, %v3389_v25  ;;  %v650_v9 = vmul.f32 %v2759_v34, %v3395_v27 }
  0xec   :  { %v7851_v33 = vld [vmem:[#allocation40_spill] sm:$0xff]  ;;  %v808_v54 = vadd.f32 %v5460_v50, %v740_v53  ;;  %v329_v58 = vadd.f32 %v307_v2, %v260_v6  ;;  %v5632_v28 = vmul.f32 %v2782_v4, %v3419_v35  ;;  %v5635_v36 = vmul.f32 %v2805_v45, %v7622_v52  ;;  %v2966_v53 = vld [vmem:[%s7481_s1 + $0x8a8] sm:$0x7] }
  0xed   :  { %7850 = vst [vmem:[#allocation19_spill] sm:$0xff] %v5602_v31  ;;  %v1699_v31 = vadd.f32 %v7851_v33, %v1630_v60  ;;  %v2874_v32 = vld [vmem:[%s7481_s1 + $0x379] sm:$0x7]  ;;  %v7853_v60 = vld [vmem:[#allocation38_spill] sm:$0xff]  ;;  %v5646_v50 = vmul.f32 %v2828_v21, %v3428_v38  ;;  %v5649_v6 = vmul.f32 %v2851_v18, %v3443_v42  ;;  %v7856_v21 = vld [vmem:[#allocation39_spill] sm:$0xff] }
  0xee   :  { %v2897_v5 = vld [vmem:[%s7481_s1 + $0x7f8] sm:$0x7]  ;;  %v7854_v33 = vld [vmem:[#allocation14_spill] sm:$0xff]  ;;  %v877_v4 = vadd.f32 %v5463_v40, %v808_v54  ;;  %v397_v45 = vadd.f32 %v375_v49, %v329_v58  ;;  %v2622_v58 = vld [vmem:[%s7481_s1 + $0x2c0] sm:$0xff] }
  0xef   :  { %v2920_v56 = vld [vmem:[%s7481_s1 + $0x5b9] sm:$0x7]  ;;  %v1768_v59 = vadd.f32 %v7853_v60, %v1699_v31  ;;  %v1288_v51 = vadd.f32 %v7854_v33, %v1219_v13  ;;  %7855 = vst [vmem:[#allocation28_spill] sm:$0xff] %v5649_v6  ;;  %v2989_v2 = vld [vmem:[%s7481_s1 + $0x669] sm:$0x7]  ;;  %v5659_v31 = vmul.f32 %v2874_v32, %v3449_v44  ;;  %v5662_v13 = vmul.f32 %v2897_v5, %v3452_v46 }
  0xf0   :  { %v2943_v34 = vld [vmem:[%s7481_s1 + $0x7f9] sm:$0x7]  ;;  %v7857_v60 = vld [vmem:[#allocation10_spill] sm:$0xff]  ;;  %v5667_v6 = vmul.f32 %v2920_v56, %v3455_v47  ;;  %v946_v49 = vadd.f32 %v5467_v29, %v877_v4  ;;  %v466_v32 = vadd.f32 %v444_v24, %v397_v45  ;;  %v5677_v5 = vmul.f32 %v2966_v53, %v3483_v55 }
  0xf1   :  { %v1836_v18 = vadd.f32 %v7856_v21, %v1768_v59  ;;  %v1357_v33 = vadd.f32 %v7857_v60, %v1288_v51  ;;  %v5670_v0 = vmul.f32 %v2943_v34, %v3458_v48  ;;  %v3012_v40 = vld [vmem:[%s7481_s1 + $0x8a9] sm:$0x7]  ;;  %v5680_v54 = vmul.f32 %v2989_v2, %v3502_v61  ;;  %v3035_v51 = vld [vmem:[%s7481_s1 + $0x438] sm:$0x7] }
  0xf2   :  { %v7859_v34 = vld [vmem:[#allocation34_spill] sm:$0xff]  ;;  %v3058_v29 = vld [vmem:[%s7481_s1 + $0x1f9] sm:$0x7]  ;;  %v55_v53 = vmul.f32 %v5418_v16, %v7579_v22  ;;  %v102_v2 = vmul.f32 %v5427_v63, %v3333_v7  ;;  %v1014_v4 = vadd.f32 %v5470_v10, %v946_v49  ;;  %v535_v45 = vadd.f32 %v513_v30, %v466_v32 }
  0xf3   :  { %7858 = vst [vmem:[#allocation25_spill] sm:$0xff] %v5680_v54  ;;  %v1860_v56 = vadd.f32 %v7613_v39, %v1836_v18  ;;  %v1425_v59 = vadd.f32 %v7859_v34, %v1357_v33  ;;  %v3081_v24 = vld [vmem:[%s7481_s1 + $0x439] sm:$0x7]  ;;  %v5702_v21 = vmul.f32 %v3012_v40, %v3523_v3  ;;  %v7861_v60 = vld [vmem:[#allocation46_spill] sm:$0xff]  ;;  %v5715_v10 = vmul.f32 %v3035_v51, %v3535_v12 }
  0xf4   :  { %v3104_v18 = vld [vmem:[%s7481_s1 + $0x8b8] sm:$0x7]  ;;  %v170_v33 = vmul.f32 %v7861_v60, %v3335_v8  ;;  %v2645_v16 = vld [vmem:[%s7481_s1 + $0x81] sm:$0xff]  ;;  %v124_v49 = vadd.f32 %v102_v2, %v55_v53  ;;  %v239_v32 = vmul.f32 %v2622_v58, %v3343_v11  ;;  %v1083_v60 = vadd.f32 %v5489_v57, %v1014_v4 }
  0xf5   :  { %7860 = vst [vmem:[#allocation18_spill] sm:$0xff] %v5702_v21  ;;  %1910 = vst.msk [vmem:[#allocation2 + $0x61] sm:$0xff] %vm1872_vm0, %v1860_v56  ;;  %v7862_v63 = vld [vmem:[#allocation42_spill] sm:$0xff]  ;;  %v3127_v30 = vld [vmem:[%s7481_s1 + $0x679] sm:$0x7]  ;;  %v603_v21 = vadd.f32 %v581_v62, %v535_v45  ;;  %v5726_v56 = vmul.f32 %v3058_v29, %v3541_v15  ;;  %v5729_v51 = vmul.f32 %v3081_v24, %v3553_v23 }
  0xf6   :  { %v1494_v34 = vadd.f32 %v7862_v63, %v1425_v59  ;;  %7863 = vst [vmem:[#allocation41_spill] sm:$0xff] %v5715_v10  ;;  %v3150_v40 = vld [vmem:[%s7481_s1 + $0x8b9] sm:$0x7]  ;;  %v2668_v59 = vld [vmem:[%s7481_s1 + $0x2c1] sm:$0xff]  ;;  %v5736_v54 = vmul.f32 %v3104_v18, %v3556_v26  ;;  %v192_v53 = vadd.f32 %v170_v33, %v124_v49  ;;  %v308_v58 = vmul.f32 %v2645_v16, %v3353_v14 }
  0xf7   :  { %7864 = vst [vmem:[#allocation13_spill] sm:$0xff] %v5726_v56  ;;  %7865 = vst [vmem:[#allocation26_spill] sm:$0xff] %v5729_v51  ;;  %v7866_v63 = vld [vmem:[#allocation9_spill] sm:$0xff]  ;;  %v1152_v57 = vadd.f32 %v5493_v1, %v1083_v60  ;;  %v672_v62 = vadd.f32 %v650_v9, %v603_v21  ;;  %v5741_v29 = vmul.f32 %v3127_v30, %v3573_v37  ;;  %v7870_v4 = vld [vmem:[#allocation12_spill] sm:$0xff] }
  0xf8   :  { %v1563_v10 = vadd.f32 %v7866_v63, %v1494_v34  ;;  %7867 = vst [vmem:[#allocation32_spill] sm:$0xff] %v5736_v54  ;;  %v5744_v24 = vmul.f32 %v3150_v40, %v3581_v43  ;;  %v5749_v2 = vld [vmem:[%s7481_s1 + $0x740] sm:$0xff]  ;;  %v261_v18 = vadd.f32 %v239_v32, %v192_v53  ;;  %v376_v33 = vmul.f32 %v2668_v59, %v3362_v17  ;;  %v7872_v34 = vld [vmem:[#allocation20_spill] sm:$0xff] }
  0xf9   :  { %7868 = vst [vmem:[#allocation33_spill] sm:$0xff] %v5741_v29  ;;  %v445_v1 = vmul.f32 %v5749_v2, %v3368_v19  ;;  %v5758_v9 = vld [vmem:[%s7481_s1 + $0x501] sm:$0xff]  ;;  %v741_v30 = vadd.f32 %v5632_v28, %v672_v62  ;;  %v7873_v59 = vld [vmem:[#allocation16_spill] sm:$0xff]  ;;  %v7875_v62 = vld [vmem:[#allocation43_spill] sm:$0xff] }
  0xfa   :  { %7869 = vst [vmem:[#allocation22_spill] sm:$0xff] %v5744_v24  ;;  %v1631_v45 = vadd.f32 %v7870_v4, %v1563_v10  ;;  %v5763_v21 = vld [vmem:[%s7481_s1 + $0x741] sm:$0xff]  ;;  %v1220_v10 = vadd.f32 %v7872_v34, %v1152_v57  ;;  %v514_v40 = vmul.f32 %v5758_v9, %v3371_v20  ;;  %v330_v53 = vadd.f32 %v308_v58, %v261_v18  ;;  %v7874_v57 = vld [vmem:[#allocation15_spill] sm:$0xff]  ;;  %v7877_v54 = vld [vmem:[#allocation44_spill] sm:$0xff] }
  0xfb   :  { %7871 = vst [vmem:[#allocation40_spill] sm:$0xff] %v5763_v21  ;;  %v2829_v16 = vld [vmem:[%s7481_s1 + $0x380] sm:$0xff]  ;;  %v582_v49 = vmul.f32 %v5763_v21, %v3389_v25  ;;  %v651_v28 = vmul.f32 %v7874_v57, %v3395_v27  ;;  %v5785_v4 = vmul.f32 %v7875_v62, %v3419_v35  ;;  %v7876_v34 = vld [vmem:[#allocation30_spill] sm:$0xff]  ;;  %v809_v29 = vadd.f32 %v5635_v36, %v741_v30 }
  0xfc   :  { %v2852_v32 = vld [vmem:[%s7481_s1 + $0x141] sm:$0xff]  ;;  %v1700_v63 = vadd.f32 %v7873_v59, %v1631_v45  ;;  %v1289_v24 = vadd.f32 %v7876_v34, %v1220_v10  ;;  %v5791_v51 = vmul.f32 %v7877_v54, %v7622_v52  ;;  %v5794_v56 = vmul.f32 %v2829_v16, %v3428_v38  ;;  %v7878_v45 = vld [vmem:[#allocation35_spill] sm:$0xff]  ;;  %v7881_v16 = vld [vmem:[#allocation24_spill] sm:$0xff] }
  0xfd   :  { %v2875_v60 = vld [vmem:[%s7481_s1 + $0x381] sm:$0xff]  ;;  %v398_v18 = vadd.f32 %v376_v33, %v330_v53  ;;  %v5798_v59 = vmul.f32 %v2852_v32, %v3443_v42  ;;  %v2555_v33 = vld [vmem:[%s7481_s1 + $0x738] sm:$0x7]  ;;  %v878_v30 = vadd.f32 %v5646_v50, %v809_v29 }
  0xfe   :  { %v1769_v58 = vadd.f32 %v7878_v45, %v1700_v63  ;;  %v5801_v57 = vmul.f32 %v2875_v60, %v3449_v44  ;;  %v5806_v36 = vld [vmem:[%s7481_s1 + $0x800] sm:$0xff]  ;;  %v1358_v10 = vadd.f32 %v7881_v16, %v1289_v24  ;;  %v2577_v53 = vld [vmem:[%s7481_s1 + $0x4f9] sm:$0x7]  ;;  %v5844_v45 = vmul.f32 %v5556_v41, %v3483_v55  ;;  %v2623_v41 = vld [vmem:[%s7481_s1 + $0x2c8] sm:$0x7] }
  0xff   :  { %7879 = vst [vmem:[#allocation37_spill] sm:$0xff] %v5806_v36  ;;  %v5811_v54 = vld [vmem:[%s7481_s1 + $0x5c1] sm:$0xff]  ;;  %v5820_v32 = vmul.f32 %v5806_v36, %v3452_v46  ;;  %v2600_v50 = vld [vmem:[%s7481_s1 + $0x739] sm:$0x7]  ;;  %v467_v62 = vadd.f32 %v445_v1, %v398_v18  ;;  %v56_v18 = vmul.f32 %v2555_v33, %v7579_v22 }
 0x100   :  { %7880 = vst [vmem:[#allocation38_spill] sm:$0xff] %v5811_v54  ;;  %v5824_v60 = vmul.f32 %v5811_v54, %v3455_v47  ;;  %v5829_v63 = vld [vmem:[%s7481_s1 + $0x801] sm:$0xff]  ;;  %v7885_v29 = vld [vmem:[#allocation36_spill] sm:$0xff]  ;;  %7887 = vst [vmem:[#allocation46_spill] sm:$0xff] %v5844_v45 }
 0x101   :  { %7882 = vst [vmem:[#allocation14_spill] sm:$0xff] %v5820_v32  ;;  %7884 = vst [vmem:[#allocation10_spill] sm:$0xff] %v5829_v63  ;;  %v1837_v24 = vadd.f32 %v7885_v29, %v1769_v58  ;;  %v5840_v34 = vmul.f32 %v5829_v63, %v3458_v48  ;;  %v3036_v16 = vld [vmem:[%s7481_s1 + $0x440] sm:$0xff]  ;;  %v7888_v54 = vld [vmem:[#allocation11_spill] sm:$0xff]  ;;  %v536_v63 = vadd.f32 %v514_v40, %v467_v62 }
 0x102   :  { %7883 = vst [vmem:[#allocation39_spill] sm:$0xff] %v5824_v60  ;;  %v1426_v36 = vadd.f32 %v7888_v54, %v1358_v10  ;;  %v7889_v60 = vld [vmem:[#allocation28_spill] sm:$0xff]  ;;  %v7890_v21 = vld [vmem:[#allocation21_spill] sm:$0xff]  ;;  %v171_v10 = vmul.f32 %v2600_v50, %v3335_v8  ;;  %v2646_v40 = vld [vmem:[%s7481_s1 + $0x89] sm:$0x7] }
 0x103   :  { %7886 = vst [vmem:[#allocation34_spill] sm:$0xff] %v5840_v34  ;;  %v947_v32 = vadd.f32 %v7889_v60, %v878_v30  ;;  %v5853_v58 = vmul.f32 %v7890_v21, %v3502_v61  ;;  %v3059_v1 = vld [vmem:[%s7481_s1 + $0x201] sm:$0xff]  ;;  %v1861_v29 = vadd.f32 %v7613_v39, %v1837_v24  ;;  %v103_v21 = vmul.f32 %v2577_v53, %v3333_v7  ;;  %v7892_v30 = vld [vmem:[#allocation23_spill] sm:$0xff]  ;;  %v2669_v24 = vld [vmem:[%s7481_s1 + $0x2c9] sm:$0x7] }
 0x104   :  { %v3082_v54 = vld [vmem:[%s7481_s1 + $0x441] sm:$0xff]  ;;  %v1495_v60 = vadd.f32 %v7892_v30, %v1426_v36  ;;  %v5875_v34 = vmul.f32 %v3036_v16, %v3535_v12  ;;  %v604_v53 = vadd.f32 %v582_v49, %v536_v63  ;;  %v5882_v50 = vmul.f32 %v3059_v1, %v3541_v15 }
 0x105   :  { %7891 = vst [vmem:[#allocation42_spill] sm:$0xff] %v5853_v58  ;;  %v1015_v58 = vadd.f32 %v5659_v31, %v947_v32  ;;  %v7893_v33 = vld [vmem:[#allocation29_spill] sm:$0xff]  ;;  %1911 = vst.msk [vmem:[#allocation2 + $0x69] sm:$0x7] %vm1900_vm2, %v1861_v29  ;;  %v125_v36 = vadd.f32 %v103_v21, %v56_v18  ;;  %v240_v32 = vmul.f32 %v2623_v41, %v3343_v11  ;;  %v2692_v18 = vld [vmem:[%s7481_s1 + $0x748] sm:$0x7] }
 0x106   :  { %v5872_v45 = vmul.f32 %v7893_v33, %v3523_v3  ;;  %7894 = vst [vmem:[#allocation9_spill] sm:$0xff] %v5875_v34  ;;  %7895 = vst [vmem:[#allocation12_spill] sm:$0xff] %v5882_v50  ;;  %v5887_v31 = vld [vmem:[%s7481_s1 + $0x8c0] sm:$0xff]  ;;  %v5896_v49 = vmul.f32 %v3082_v54, %v3553_v23  ;;  %v309_v30 = vmul.f32 %v2646_v40, %v3353_v14  ;;  %v7902_v33 = vld [vmem:[#allocation31_spill] sm:$0xff] }
 0x107   :  { %v7896_v62 = vld [vmem:[#allocation45_spill] sm:$0xff]  ;;  %v1084_v29 = vadd.f32 %v5662_v13, %v1015_v58  ;;  %v5900_v63 = vmul.f32 %v5887_v31, %v3556_v26  ;;  %v2715_v13 = vld [vmem:[%s7481_s1 + $0x509] sm:$0x7]  ;;  %v673_v58 = vadd.f32 %v651_v28, %v604_v53  ;;  %v193_v21 = vadd.f32 %v171_v10, %v125_v36  ;;  %v2761_v28 = vld [vmem:[%s7481_s1 + $0x7f8] sm:$0x7] }
 0x108   :  { %v1564_v16 = vadd.f32 %v7896_v62, %v1495_v60  ;;  %7897 = vst [vmem:[#allocation20_spill] sm:$0xff] %v5896_v49  ;;  %v5905_v1 = vld [vmem:[%s7481_s1 + $0x681] sm:$0xff]  ;;  %v2738_v60 = vld [vmem:[%s7481_s1 + $0x749] sm:$0x7]  ;;  %v377_v10 = vmul.f32 %v2669_v24, %v3362_v17  ;;  %v2784_v40 = vld [vmem:[%s7481_s1 + $0x5b9] sm:$0x7] }
 0x109   :  { %7898 = vst [vmem:[#allocation16_spill] sm:$0xff] %v5900_v63  ;;  %7899 = vst [vmem:[#allocation15_spill] sm:$0xff] %v5905_v1  ;;  %v5915_v41 = vmul.f32 %v5905_v1, %v3573_v37  ;;  %v5920_v54 = vld [vmem:[%s7481_s1 + $0x8c1] sm:$0xff]  ;;  %v1153_v62 = vadd.f32 %v5667_v6, %v1084_v29  ;;  %v2807_v36 = vld [vmem:[%s7481_s1 + $0x7f9] sm:$0x7]  ;;  %v742_v63 = vadd.f32 %v5785_v4, %v673_v58 }
 0x10a   :  { %7901 = vst [vmem:[#allocation30_spill] sm:$0xff] %v5920_v54  ;;  %v1632_v53 = vadd.f32 %v7902_v33, %v1564_v16  ;;  %v262_v49 = vadd.f32 %v240_v32, %v193_v21  ;;  %v446_v16 = vmul.f32 %v2692_v18, %v3368_v19  ;;  %v515_v6 = vmul.f32 %v2715_v13, %v3371_v20  ;;  %v2830_v29 = vld [vmem:[%s7481_s1 + $0x388] sm:$0x7]  ;;  %v7904_v33 = vld [vmem:[#allocation27_spill] sm:$0xff] }
 0x10b   :  { %7900 = vst [vmem:[#allocation43_spill] sm:$0xff] %v5915_v41  ;;  %v5933_v41 = vmul.f32 %v5920_v54, %v3581_v43  ;;  %v2853_v24 = vld [vmem:[%s7481_s1 + $0x149] sm:$0x7]  ;;  %v1221_v50 = vadd.f32 %v5670_v0, %v1153_v62  ;;  %v583_v54 = vmul.f32 %v2738_v60, %v3389_v25  ;;  %v652_v4 = vmul.f32 %v2761_v28, %v3395_v27 }
 0x10c   :  { %v2876_v32 = vld [vmem:[%s7481_s1 + $0x389] sm:$0x7]  ;;  %v810_v13 = vadd.f32 %v5791_v51, %v742_v63  ;;  %v331_v58 = vadd.f32 %v309_v30, %v262_v49  ;;  %v5963_v21 = vmul.f32 %v2784_v40, %v3419_v35  ;;  %v5966_v0 = vmul.f32 %v2807_v36, %v7622_v52  ;;  %v2968_v63 = vld [vmem:[%s7481_s1 + $0x8b8] sm:$0x7] }
 0x10d   :  { %7903 = vst [vmem:[#allocation44_spill] sm:$0xff] %v5933_v41  ;;  %v1701_v41 = vadd.f32 %v7904_v33, %v1632_v53  ;;  %v2899_v18 = vld [vmem:[%s7481_s1 + $0x808] sm:$0x7]  ;;  %v7905_v53 = vld [vmem:[#allocation17_spill] sm:$0xff]  ;;  %v1290_v33 = vadd.f32 %v5677_v5, %v1221_v50  ;;  %v5977_v51 = vmul.f32 %v2830_v29, %v3428_v38  ;;  %v5980_v49 = vmul.f32 %v2853_v24, %v3443_v42  ;;  %v2991_v30 = vld [vmem:[%s7481_s1 + $0x679] sm:$0x7] }
 0x10e   :  { %v2922_v60 = vld [vmem:[%s7481_s1 + $0x5c9] sm:$0x7]  ;;  %v879_v40 = vadd.f32 %v5794_v56, %v810_v13  ;;  %v399_v36 = vadd.f32 %v377_v10, %v331_v58  ;;  %v5993_v5 = vmul.f32 %v2899_v18, %v3452_v46  ;;  %v7906_v50 = vld [vmem:[#allocation19_spill] sm:$0xff]  ;;  %v7907_v24 = vld [vmem:[#allocation25_spill] sm:$0xff]  ;;  %v6008_v18 = vmul.f32 %v2968_v63, %v3483_v55 }
 0x10f   :  { %v2945_v28 = vld [vmem:[%s7481_s1 + $0x809] sm:$0x7]  ;;  %v1770_v62 = vadd.f32 %v7905_v53, %v1701_v41  ;;  %v5990_v41 = vmul.f32 %v2876_v32, %v3449_v44  ;;  %v1359_v53 = vadd.f32 %v7907_v24, %v1290_v33  ;;  %v5998_v34 = vmul.f32 %v2922_v60, %v3455_v47  ;;  %v3014_v56 = vld [vmem:[%s7481_s1 + $0x8b9] sm:$0x7]  ;;  %v2624_v60 = vld [vmem:[%s7481_s1 + $0x2d0] sm:$0xff] }
 0x110   :  { %v6001_v1 = vmul.f32 %v2945_v28, %v3458_v48  ;;  %v948_v10 = vadd.f32 %v5798_v59, %v879_v40  ;;  %v468_v32 = vadd.f32 %v446_v16, %v399_v36  ;;  %7908 = vst [vmem:[#allocation35_spill] sm:$0xff] %v6008_v18  ;;  %v6011_v13 = vmul.f32 %v2991_v30, %v3502_v61  ;;  %v3037_v58 = vld [vmem:[%s7481_s1 + $0x448] sm:$0x7]  ;;  %v7912_v24 = vld [vmem:[#allocation40_spill] sm:$0xff] }
 0x111   :  { %v1838_v29 = vadd.f32 %v7906_v50, %v1770_v62  ;;  %v7910_v62 = vld [vmem:[#allocation18_spill] sm:$0xff]  ;;  %v57_v63 = vmul.f32 %v5749_v2, %v7579_v22  ;;  %v104_v30 = vmul.f32 %v5758_v9, %v3333_v7  ;;  %v6033_v50 = vmul.f32 %v3014_v56, %v3523_v3  ;;  %v2647_v2 = vld [vmem:[%s7481_s1 + $0x91] sm:$0xff]  ;;  %v7913_v9 = vld [vmem:[#allocation41_spill] sm:$0xff] }
 0x112   :  { %7909 = vst [vmem:[#allocation24_spill] sm:$0xff] %v6011_v13  ;;  %v1427_v33 = vadd.f32 %v7910_v62, %v1359_v53  ;;  %v3060_v59 = vld [vmem:[%s7481_s1 + $0x209] sm:$0x7]  ;;  %v1016_v40 = vadd.f32 %v5801_v57, %v948_v10  ;;  %v537_v36 = vadd.f32 %v515_v6, %v468_v32  ;;  %v172_v53 = vmul.f32 %v7912_v24, %v3335_v8 }
 0x113   :  { %v1862_v28 = vadd.f32 %v7613_v39, %v1838_v29  ;;  %v3083_v16 = vld [vmem:[%s7481_s1 + $0x449] sm:$0x7]  ;;  %7911 = vst [vmem:[#allocation36_spill] sm:$0xff] %v6033_v50  ;;  %v6046_v57 = vmul.f32 %v3037_v58, %v3535_v12  ;;  %v126_v10 = vadd.f32 %v104_v30, %v57_v63  ;;  %v241_v32 = vmul.f32 %v2624_v60, %v3343_v11  ;;  %v7920_v30 = vld [vmem:[#allocation39_spill] sm:$0xff] }
 0x114   :  { %v3106_v29 = vld [vmem:[%s7481_s1 + $0x8c8] sm:$0x7]  ;;  %v1496_v62 = vadd.f32 %v7913_v9, %v1427_v33  ;;  %v605_v13 = vadd.f32 %v583_v54, %v537_v36  ;;  %v6060_v58 = vmul.f32 %v3083_v16, %v3553_v23  ;;  %v2670_v33 = vld [vmem:[%s7481_s1 + $0x2d1] sm:$0xff]  ;;  %v7918_v9 = vld [vmem:[#allocation13_spill] sm:$0xff]  ;;  %v310_v60 = vmul.f32 %v2647_v2, %v3353_v14 }
 0x115   :  { %1912 = vst.msk [vmem:[#allocation2 + $0x71] sm:$0xff] %vm1872_vm0, %v1862_v28  ;;  %7914 = vst [vmem:[#allocation11_spill] sm:$0xff] %v6046_v57  ;;  %v3129_v6 = vld [vmem:[%s7481_s1 + $0x689] sm:$0x7]  ;;  %v6057_v28 = vmul.f32 %v3060_v59, %v3541_v15  ;;  %v6067_v18 = vmul.f32 %v3106_v29, %v3556_v26  ;;  %v194_v63 = vadd.f32 %v172_v53, %v126_v10  ;;  %v6080_v36 = vld [vmem:[%s7481_s1 + $0x750] sm:$0xff] }
 0x116   :  { %v3152_v56 = vld [vmem:[%s7481_s1 + $0x8c9] sm:$0x7]  ;;  %7917 = vst [vmem:[#allocation21_spill] sm:$0xff] %v6060_v58  ;;  %v1565_v57 = vadd.f32 %v7918_v9, %v1496_v62  ;;  %v6072_v59 = vmul.f32 %v3129_v6, %v3573_v37  ;;  %v378_v53 = vmul.f32 %v2670_v33, %v3362_v17  ;;  %v2831_v2 = vld [vmem:[%s7481_s1 + $0x390] sm:$0xff] }
 0x117   :  { %v7915_v24 = vld [vmem:[#allocation14_spill] sm:$0xff]  ;;  %7916 = vst [vmem:[#allocation28_spill] sm:$0xff] %v6057_v28  ;;  %7919 = vst [vmem:[#allocation23_spill] sm:$0xff] %v6067_v18  ;;  %v6075_v16 = vmul.f32 %v3152_v56, %v3581_v43  ;;  %v2854_v33 = vld [vmem:[%s7481_s1 + $0x151] sm:$0xff] }
 0x118   :  { %v1085_v50 = vadd.f32 %v7915_v24, %v1016_v40  ;;  %v674_v40 = vadd.f32 %v652_v4, %v605_v13  ;;  %7921 = vst [vmem:[#allocation29_spill] sm:$0xff] %v6072_v59  ;;  %v7923_v62 = vld [vmem:[#allocation26_spill] sm:$0xff]  ;;  %v263_v24 = vadd.f32 %v241_v32, %v194_v63  ;;  %v6089_v4 = vld [vmem:[%s7481_s1 + $0x511] sm:$0xff] }
 0x119   :  { %7922 = vst [vmem:[#allocation45_spill] sm:$0xff] %v6075_v16  ;;  %v1633_v29 = vadd.f32 %v7923_v62, %v1565_v57  ;;  %v6094_v13 = vld [vmem:[%s7481_s1 + $0x751] sm:$0xff]  ;;  %v7925_v57 = vld [vmem:[#allocation34_spill] sm:$0xff]  ;;  %v516_v10 = vmul.f32 %v6089_v4, %v3371_v20 }
 0x11a   :  { %v1154_v54 = vadd.f32 %v7920_v30, %v1085_v50  ;;  %v447_v50 = vmul.f32 %v6080_v36, %v3368_v19  ;;  %7924 = vst [vmem:[#allocation31_spill] sm:$0xff] %v6094_v13  ;;  %v743_v56 = vadd.f32 %v5963_v21, %v674_v40  ;;  %v584_v32 = vmul.f32 %v6094_v13, %v3389_v25  ;;  %v2877_v9 = vld [vmem:[%s7481_s1 + $0x391] sm:$0xff]  ;;  %v7928_v40 = vld [vmem:[#allocation38_spill] sm:$0xff] }
 0x11b   :  { %v7926_v63 = vld [vmem:[#allocation32_spill] sm:$0xff]  ;;  %v332_v62 = vadd.f32 %v310_v60, %v263_v24  ;;  %v7929_v16 = vld [vmem:[#allocation46_spill] sm:$0xff]  ;;  %v6125_v13 = vmul.f32 %v2831_v2, %v3428_v38 }
 0x11c   :  { %v1222_v6 = vadd.f32 %v7925_v57, %v1154_v54  ;;  %v1702_v30 = vadd.f32 %v7926_v63, %v1633_v29  ;;  %v7927_v54 = vld [vmem:[#allocation37_spill] sm:$0xff]  ;;  %v6116_v57 = vmul.f32 %v7928_v40, %v3419_v35  ;;  %v811_v18 = vadd.f32 %v5966_v0, %v743_v56  ;;  %v7930_v58 = vld [vmem:[#allocation10_spill] sm:$0xff]  ;;  %v6137_v0 = vld [vmem:[%s7481_s1 + $0x810] sm:$0xff] }
 0x11d   :  { %v653_v21 = vmul.f32 %v7927_v54, %v3395_v27  ;;  %v6122_v28 = vmul.f32 %v7930_v58, %v7622_v52  ;;  %v7931_v29 = vld [vmem:[#allocation33_spill] sm:$0xff]  ;;  %v400_v24 = vadd.f32 %v378_v53, %v332_v62  ;;  %v6129_v63 = vmul.f32 %v2854_v33, %v3443_v42  ;;  %7932 = vst [vmem:[#allocation27_spill] sm:$0xff] %v6137_v0  ;;  %v6142_v58 = vld [vmem:[%s7481_s1 + $0x5d1] sm:$0xff]  ;;  %v7934_v53 = vld [vmem:[#allocation42_spill] sm:$0xff] }
 0x11e   :  { %v1291_v59 = vadd.f32 %v7929_v16, %v1222_v6  ;;  %v1771_v60 = vadd.f32 %v7931_v29, %v1702_v30  ;;  %v6132_v54 = vmul.f32 %v2877_v9, %v3449_v44  ;;  %7933 = vst [vmem:[#allocation17_spill] sm:$0xff] %v6142_v58  ;;  %v2557_v16 = vld [vmem:[%s7481_s1 + $0x748] sm:$0x7]  ;;  %v880_v6 = vadd.f32 %v5977_v51, %v811_v18  ;;  %v6160_v9 = vld [vmem:[%s7481_s1 + $0x811] sm:$0xff] }
 0x11f   :  { %v6151_v56 = vmul.f32 %v6137_v0, %v3452_v46  ;;  %v6155_v33 = vmul.f32 %v6142_v58, %v3455_v47  ;;  %7936 = vst [vmem:[#allocation25_spill] sm:$0xff] %v6160_v9  ;;  %v2579_v30 = vld [vmem:[%s7481_s1 + $0x509] sm:$0x7]  ;;  %v469_v62 = vadd.f32 %v447_v50, %v400_v24  ;;  %v6171_v40 = vmul.f32 %v6160_v9, %v3458_v48  ;;  %v3061_v50 = vld [vmem:[%s7481_s1 + $0x211] sm:$0xff] }
 0x120   :  { %v1360_v2 = vadd.f32 %v7934_v53, %v1291_v59  ;;  %v2602_v51 = vld [vmem:[%s7481_s1 + $0x749] sm:$0x7]  ;;  %v6175_v29 = vmul.f32 %v5887_v31, %v3483_v55  ;;  %v3038_v53 = vld [vmem:[%s7481_s1 + $0x450] sm:$0xff]  ;;  %v949_v0 = vadd.f32 %v5980_v49, %v880_v6  ;;  %v58_v24 = vmul.f32 %v2557_v16, %v7579_v22  ;;  %v2625_v31 = vld [vmem:[%s7481_s1 + $0x2d8] sm:$0x7] }
 0x121   :  { %7935 = vst [vmem:[#allocation19_spill] sm:$0xff] %v6155_v33  ;;  %v7937_v18 = vld [vmem:[#allocation22_spill] sm:$0xff]  ;;  %7938 = vst [vmem:[#allocation18_spill] sm:$0xff] %v6171_v40  ;;  %v7940_v33 = vld [vmem:[#allocation15_spill] sm:$0xff]  ;;  %v538_v9 = vadd.f32 %v516_v10, %v469_v62  ;;  %v105_v49 = vmul.f32 %v2579_v30, %v3333_v7  ;;  %v6206_v40 = vmul.f32 %v3038_v53, %v3535_v12 }
 0x122   :  { %v1839_v59 = vadd.f32 %v7937_v18, %v1771_v60  ;;  %7939 = vst [vmem:[#allocation40_spill] sm:$0xff] %v6175_v29  ;;  %v1428_v58 = vadd.f32 %v5872_v45, %v1360_v2  ;;  %v6184_v60 = vmul.f32 %v7940_v33, %v3502_v61  ;;  %v3084_v45 = vld [vmem:[%s7481_s1 + $0x451] sm:$0xff]  ;;  %v173_v2 = vmul.f32 %v2602_v51, %v3335_v8  ;;  %v7942_v6 = vld [vmem:[#allocation9_spill] sm:$0xff]  ;;  %v7943_v16 = vld [vmem:[#allocation30_spill] sm:$0xff] }
 0x123   :  { %v6203_v29 = vmul.f32 %v7943_v16, %v3523_v3  ;;  %7944 = vst [vmem:[#allocation14_spill] sm:$0xff] %v6206_v40  ;;  %v2648_v10 = vld [vmem:[%s7481_s1 + $0x99] sm:$0x7]  ;;  %v606_v30 = vadd.f32 %v584_v32, %v538_v9  ;;  %v6213_v51 = vmul.f32 %v3061_v50, %v3541_v15  ;;  %v6227_v32 = vmul.f32 %v3084_v45, %v3553_v23  ;;  %v6236_v50 = vld [vmem:[%s7481_s1 + $0x691] sm:$0xff] }
 0x124   :  { %7941 = vst [vmem:[#allocation41_spill] sm:$0xff] %v6184_v60  ;;  %v1863_v18 = vadd.f32 %v7613_v39, %v1839_v59  ;;  %v1497_v33 = vadd.f32 %v7942_v6, %v1428_v58  ;;  %v1017_v60 = vadd.f32 %v5990_v41, %v949_v0  ;;  %v6218_v41 = vld [vmem:[%s7481_s1 + $0x8d0] sm:$0xff]  ;;  %v127_v0 = vadd.f32 %v105_v49, %v58_v24  ;;  %v2671_v59 = vld [vmem:[%s7481_s1 + $0x2d9] sm:$0x7] }
 0x125   :  { %7945 = vst [vmem:[#allocation13_spill] sm:$0xff] %v6213_v51  ;;  %v242_v58 = vmul.f32 %v2625_v31, %v3343_v11  ;;  %v7946_v62 = vld [vmem:[#allocation12_spill] sm:$0xff]  ;;  %7947 = vst [vmem:[#allocation39_spill] sm:$0xff] %v6227_v32  ;;  %v6231_v9 = vmul.f32 %v6218_v41, %v3556_v26  ;;  %v6246_v31 = vmul.f32 %v6236_v50, %v3573_v37 }
 0x126   :  { %1913 = vst.msk [vmem:[#allocation2 + $0x79] sm:$0x7] %vm1900_vm2, %v1863_v18  ;;  %v1566_v53 = vadd.f32 %v7946_v62, %v1497_v33  ;;  %v1086_v18 = vadd.f32 %v5993_v5, %v1017_v60  ;;  %7949 = vst [vmem:[#allocation34_spill] sm:$0xff] %v6236_v50  ;;  %v2694_v24 = vld [vmem:[%s7481_s1 + $0x758] sm:$0x7]  ;;  %v675_v60 = vadd.f32 %v653_v21, %v606_v30 }
 0x127   :  { %7948 = vst [vmem:[#allocation26_spill] sm:$0xff] %v6231_v9  ;;  %v2717_v5 = vld [vmem:[%s7481_s1 + $0x519] sm:$0x7]  ;;  %7950 = vst [vmem:[#allocation32_spill] sm:$0xff] %v6246_v31  ;;  %v6251_v45 = vld [vmem:[%s7481_s1 + $0x8d1] sm:$0xff]  ;;  %v195_v49 = vadd.f32 %v173_v2, %v127_v0  ;;  %v311_v6 = vmul.f32 %v2648_v10, %v3353_v14  ;;  %v379_v2 = vmul.f32 %v2671_v59, %v3362_v17 }
 0x128   :  { %7951 = vst [vmem:[#allocation37_spill] sm:$0xff] %v6251_v45  ;;  %v2740_v33 = vld [vmem:[%s7481_s1 + $0x759] sm:$0x7]  ;;  %v2763_v21 = vld [vmem:[%s7481_s1 + $0x808] sm:$0x7]  ;;  %v1155_v62 = vadd.f32 %v5998_v34, %v1086_v18  ;;  %v6264_v31 = vmul.f32 %v6251_v45, %v3581_v43  ;;  %v744_v9 = vadd.f32 %v6116_v57, %v675_v60  ;;  %v517_v34 = vmul.f32 %v2717_v5, %v3371_v20 }
 0x129   :  { %v7952_v16 = vld [vmem:[#allocation20_spill] sm:$0xff]  ;;  %v2786_v10 = vld [vmem:[%s7481_s1 + $0x5c9] sm:$0x7]  ;;  %v264_v32 = vadd.f32 %v242_v58, %v195_v49  ;;  %v585_v45 = vmul.f32 %v2740_v33, %v3389_v25  ;;  %v654_v57 = vmul.f32 %v2763_v21, %v3395_v27 }
 0x12a   :  { %v1634_v30 = vadd.f32 %v7952_v16, %v1566_v53  ;;  %7953 = vst [vmem:[#allocation38_spill] sm:$0xff] %v6264_v31  ;;  %v2809_v0 = vld [vmem:[%s7481_s1 + $0x809] sm:$0x7]  ;;  %v448_v53 = vmul.f32 %v2694_v24, %v3368_v19  ;;  %v2832_v18 = vld [vmem:[%s7481_s1 + $0x398] sm:$0x7]  ;;  %v1223_v51 = vadd.f32 %v6001_v1, %v1155_v62  ;;  %v812_v5 = vadd.f32 %v6122_v28, %v744_v9 }
 0x12b   :  { %v2855_v59 = vld [vmem:[%s7481_s1 + $0x159] sm:$0x7]  ;;  %v333_v60 = vadd.f32 %v311_v6, %v264_v32  ;;  %v6294_v49 = vmul.f32 %v2786_v10, %v3419_v35  ;;  %v6297_v1 = vmul.f32 %v2809_v0, %v7622_v52  ;;  %v6308_v28 = vmul.f32 %v2832_v18, %v3428_v38  ;;  %v2970_v9 = vld [vmem:[%s7481_s1 + $0x8c8] sm:$0x7] }
 0x12c   :  { %v7954_v16 = vld [vmem:[#allocation16_spill] sm:$0xff]  ;;  %v6311_v32 = vmul.f32 %v2855_v59, %v3443_v42  ;;  %v2993_v6 = vld [vmem:[%s7481_s1 + $0x689] sm:$0x7]  ;;  %v881_v10 = vadd.f32 %v6125_v13, %v812_v5 }
 0x12d   :  { %v1703_v31 = vadd.f32 %v7954_v16, %v1634_v30  ;;  %v2878_v58 = vld [vmem:[%s7481_s1 + $0x399] sm:$0x7]  ;;  %v7955_v30 = vld [vmem:[#allocation43_spill] sm:$0xff]  ;;  %v401_v0 = vadd.f32 %v379_v2, %v333_v60  ;;  %v3016_v13 = vld [vmem:[%s7481_s1 + $0x8c9] sm:$0x7]  ;;  %v6342_v5 = vmul.f32 %v2993_v6, %v3502_v61  ;;  %v106_v6 = vmul.f32 %v6089_v4, %v3333_v7 }
 0x12e   :  { %v2901_v24 = vld [vmem:[%s7481_s1 + $0x818] sm:$0x7]  ;;  %v7956_v16 = vld [vmem:[#allocation35_spill] sm:$0xff]  ;;  %7957 = vst [vmem:[#allocation46_spill] sm:$0xff] %v6311_v32  ;;  %v950_v2 = vadd.f32 %v6129_v63, %v881_v10  ;;  %v2626_v60 = vld [vmem:[%s7481_s1 + $0x2e0] sm:$0xff] }
 0x12f   :  { %v2924_v33 = vld [vmem:[%s7481_s1 + $0x5d9] sm:$0x7]  ;;  %v1772_v62 = vadd.f32 %v7955_v30, %v1703_v31  ;;  %v1292_v40 = vadd.f32 %v7956_v16, %v1223_v51  ;;  %v6321_v31 = vmul.f32 %v2878_v58, %v3449_v44  ;;  %v6324_v51 = vmul.f32 %v2901_v24, %v3452_v46  ;;  %7960 = vst [vmem:[#allocation10_spill] sm:$0xff] %v6342_v5  ;;  %v7964_v4 = vld [vmem:[#allocation11_spill] sm:$0xff] }
 0x130   :  { %v2947_v21 = vld [vmem:[%s7481_s1 + $0x819] sm:$0x7]  ;;  %v6329_v50 = vmul.f32 %v2924_v33, %v3455_v47  ;;  %v470_v58 = vadd.f32 %v448_v53, %v401_v0  ;;  %v6339_v24 = vmul.f32 %v2970_v9, %v3483_v55  ;;  %v59_v9 = vmul.f32 %v6080_v36, %v7579_v22  ;;  %v2649_v36 = vld [vmem:[%s7481_s1 + $0xa1] sm:$0xff] }
 0x131   :  { %v7958_v18 = vld [vmem:[#allocation44_spill] sm:$0xff]  ;;  %v6332_v32 = vmul.f32 %v2947_v21, %v3458_v48  ;;  %v1018_v10 = vadd.f32 %v6132_v54, %v950_v2 }
 0x132   :  { %v1840_v59 = vadd.f32 %v7958_v18, %v1772_v62  ;;  %v7959_v30 = vld [vmem:[#allocation24_spill] sm:$0xff]  ;;  %v539_v0 = vadd.f32 %v517_v34, %v470_v58  ;;  %v6364_v18 = vmul.f32 %v3016_v13, %v3523_v3  ;;  %v128_v2 = vadd.f32 %v106_v6, %v59_v9 }
 0x133   :  { %v1361_v16 = vadd.f32 %v7959_v30, %v1292_v40  ;;  %v3039_v40 = vld [vmem:[%s7481_s1 + $0x458] sm:$0x7]  ;;  %v7963_v30 = vld [vmem:[#allocation31_spill] sm:$0xff]  ;;  %v243_v58 = vmul.f32 %v2626_v60, %v3343_v11  ;;  %v312_v60 = vmul.f32 %v2649_v36, %v3353_v14 }
 0x134   :  { %v1864_v33 = vadd.f32 %v7613_v39, %v1840_v59  ;;  %v7961_v21 = vld [vmem:[#allocation36_spill] sm:$0xff]  ;;  %7962 = vst [vmem:[#allocation33_spill] sm:$0xff] %v6364_v18  ;;  %v6377_v54 = vmul.f32 %v3039_v40, %v3535_v12  ;;  %v607_v18 = vadd.f32 %v585_v45, %v539_v0  ;;  %v7973_v0 = vld [vmem:[#allocation21_spill] sm:$0xff] }
 0x135   :  { %v1429_v62 = vadd.f32 %v7961_v21, %v1361_v16  ;;  %v3062_v63 = vld [vmem:[%s7481_s1 + $0x219] sm:$0x7]  ;;  %v174_v16 = vmul.f32 %v7963_v30, %v3335_v8  ;;  %v1087_v30 = vadd.f32 %v6151_v56, %v1018_v10  ;;  %v7970_v56 = vld [vmem:[#allocation19_spill] sm:$0xff]  ;;  %v6411_v10 = vld [vmem:[%s7481_s1 + $0x760] sm:$0xff] }
 0x136   :  { %v3085_v53 = vld [vmem:[%s7481_s1 + $0x459] sm:$0x7]  ;;  %1914 = vst.msk [vmem:[#allocation2 + $0x81] sm:$0xff] %vm1872_vm0, %v1864_v33  ;;  %7965 = vst [vmem:[#allocation42_spill] sm:$0xff] %v6377_v54  ;;  %v6388_v33 = vmul.f32 %v3062_v63, %v3541_v15  ;;  %v676_v6 = vadd.f32 %v654_v57, %v607_v18  ;;  %v449_v36 = vmul.f32 %v6411_v10, %v3368_v19  ;;  %v6420_v57 = vld [vmem:[%s7481_s1 + $0x521] sm:$0xff] }
 0x137   :  { %v3108_v59 = vld [vmem:[%s7481_s1 + $0x8d8] sm:$0x7]  ;;  %v1498_v21 = vadd.f32 %v7964_v4, %v1429_v62  ;;  %v6391_v40 = vmul.f32 %v3085_v53, %v3553_v23  ;;  %v2672_v62 = vld [vmem:[%s7481_s1 + $0x2e1] sm:$0xff]  ;;  %v196_v9 = vadd.f32 %v174_v16, %v128_v2  ;;  %v1156_v45 = vadd.f32 %v7970_v56, %v1087_v30 }
 0x138   :  { %v3131_v34 = vld [vmem:[%s7481_s1 + $0x699] sm:$0x7]  ;;  %7966 = vst [vmem:[#allocation22_spill] sm:$0xff] %v6388_v33  ;;  %v6398_v5 = vmul.f32 %v3108_v59, %v3556_v26  ;;  %v380_v16 = vmul.f32 %v2672_v62, %v3362_v17  ;;  %v6425_v18 = vld [vmem:[%s7481_s1 + $0x761] sm:$0xff]  ;;  %v745_v2 = vadd.f32 %v6294_v49, %v676_v6 }
 0x139   :  { %v3154_v13 = vld [vmem:[%s7481_s1 + $0x8d9] sm:$0x7]  ;;  %7967 = vst [vmem:[#allocation15_spill] sm:$0xff] %v6391_v40  ;;  %v6403_v63 = vmul.f32 %v3131_v34, %v3573_v37  ;;  %7974 = vst [vmem:[#allocation20_spill] sm:$0xff] %v6425_v18  ;;  %v7975_v34 = vld [vmem:[#allocation18_spill] sm:$0xff]  ;;  %v586_v30 = vmul.f32 %v6425_v18, %v3389_v25 }
 0x13a   :  { %v7968_v4 = vld [vmem:[#allocation28_spill] sm:$0xff]  ;;  %7969 = vst [vmem:[#allocation9_spill] sm:$0xff] %v6398_v5  ;;  %v6406_v53 = vmul.f32 %v3154_v13, %v3581_v43  ;;  %v1224_v13 = vadd.f32 %v7975_v34, %v1156_v45  ;;  %v2856_v62 = vld [vmem:[%s7481_s1 + $0x161] sm:$0xff]  ;;  %v7977_v45 = vld [vmem:[#allocation27_spill] sm:$0xff]  ;;  %v813_v5 = vadd.f32 %v6297_v1, %v745_v2 }
 0x13b   :  { %v1567_v54 = vadd.f32 %v7968_v4, %v1498_v21  ;;  %7971 = vst [vmem:[#allocation30_spill] sm:$0xff] %v6403_v63  ;;  %v265_v21 = vadd.f32 %v243_v58, %v196_v9  ;;  %v518_v58 = vmul.f32 %v6420_v57, %v3371_v20  ;;  %v2879_v4 = vld [vmem:[%s7481_s1 + $0x3a1] sm:$0xff]  ;;  %v7976_v9 = vld [vmem:[#allocation23_spill] sm:$0xff]  ;;  %v655_v49 = vmul.f32 %v7977_v45, %v3395_v27 }
 0x13c   :  { %7972 = vst [vmem:[#allocation12_spill] sm:$0xff] %v6406_v53  ;;  %v7978_v6 = vld [vmem:[#allocation17_spill] sm:$0xff]  ;;  %v7979_v53 = vld [vmem:[#allocation40_spill] sm:$0xff]  ;;  %v6463_v45 = vmul.f32 %v2879_v4, %v3449_v44 }
 0x13d   :  { %v1635_v59 = vadd.f32 %v7973_v0, %v1567_v54  ;;  %v2833_v54 = vld [vmem:[%s7481_s1 + $0x3a0] sm:$0xff]  ;;  %v334_v0 = vadd.f32 %v312_v60, %v265_v21  ;;  %v6447_v34 = vmul.f32 %v7978_v6, %v3419_v35  ;;  %v1293_v63 = vadd.f32 %v7979_v53, %v1224_v13  ;;  %v2559_v53 = vld [vmem:[%s7481_s1 + $0x758] sm:$0x7] }
 0x13e   :  { %v7980_v40 = vld [vmem:[#allocation25_spill] sm:$0xff]  ;;  %v6456_v18 = vmul.f32 %v2833_v54, %v3428_v38  ;;  %v882_v13 = vadd.f32 %v6308_v28, %v813_v5  ;;  %v2604_v28 = vld [vmem:[%s7481_s1 + $0x759] sm:$0x7] }
 0x13f   :  { %v1704_v56 = vadd.f32 %v7976_v9, %v1635_v59  ;;  %v6453_v33 = vmul.f32 %v7980_v40, %v7622_v52  ;;  %v7981_v59 = vld [vmem:[#allocation29_spill] sm:$0xff]  ;;  %v402_v21 = vadd.f32 %v380_v16, %v334_v0  ;;  %v6460_v9 = vmul.f32 %v2856_v62, %v3443_v42 }
 0x140   :  { %v6468_v1 = vld [vmem:[%s7481_s1 + $0x820] sm:$0xff] }
 0x141   :  { %v1773_v60 = vadd.f32 %v7981_v59, %v1704_v56  ;;  %7982 = vst [vmem:[#allocation16_spill] sm:$0xff] %v6468_v1  ;;  %v6473_v40 = vld [vmem:[%s7481_s1 + $0x5e1] sm:$0xff]  ;;  %v6482_v2 = vmul.f32 %v6468_v1, %v3452_v46  ;;  %v2581_v56 = vld [vmem:[%s7481_s1 + $0x519] sm:$0x7]  ;;  %v471_v0 = vadd.f32 %v449_v36, %v402_v21  ;;  %v6506_v59 = vmul.f32 %v6218_v41, %v3483_v55 }
 0x142   :  { %7983 = vst [vmem:[#allocation43_spill] sm:$0xff] %v6473_v40  ;;  %v7984_v16 = vld [vmem:[#allocation41_spill] sm:$0xff]  ;;  %v6486_v62 = vmul.f32 %v6473_v40, %v3455_v47  ;;  %v7991_v1 = vld [vmem:[#allocation46_spill] sm:$0xff]  ;;  %v60_v21 = vmul.f32 %v2559_v53, %v7579_v22 }
 0x143   :  { %v1362_v54 = vadd.f32 %v7984_v16, %v1293_v63  ;;  %7985 = vst [vmem:[#allocation35_spill] sm:$0xff] %v6482_v2  ;;  %v6491_v4 = vld [vmem:[%s7481_s1 + $0x821] sm:$0xff]  ;;  %7990 = vst [vmem:[#allocation31_spill] sm:$0xff] %v6506_v59 }
 0x144   :  { %7986 = vst [vmem:[#allocation44_spill] sm:$0xff] %v6486_v62  ;;  %7987 = vst [vmem:[#allocation24_spill] sm:$0xff] %v6491_v4  ;;  %v7988_v5 = vld [vmem:[#allocation45_spill] sm:$0xff]  ;;  %v6502_v6 = vmul.f32 %v6491_v4, %v3458_v48  ;;  %v951_v62 = vadd.f32 %v7991_v1, %v882_v13  ;;  %v7992_v2 = vld [vmem:[#allocation34_spill] sm:$0xff]  ;;  %v540_v4 = vadd.f32 %v518_v58, %v471_v0 }
 0x145   :  { %v1841_v63 = vadd.f32 %v7988_v5, %v1773_v60  ;;  %v3040_v16 = vld [vmem:[%s7481_s1 + $0x460] sm:$0xff]  ;;  %v1430_v40 = vadd.f32 %v6203_v29, %v1362_v54  ;;  %v6515_v60 = vmul.f32 %v7992_v2, %v3502_v61  ;;  %v2627_v41 = vld [vmem:[%s7481_s1 + $0x2e8] sm:$0x7]  ;;  %v107_v1 = vmul.f32 %v2581_v56, %v3333_v7 }
 0x146   :  { %7989 = vst [vmem:[#allocation36_spill] sm:$0xff] %v6502_v6  ;;  %v3063_v36 = vld [vmem:[%s7481_s1 + $0x221] sm:$0xff]  ;;  %v175_v54 = vmul.f32 %v2604_v28, %v3335_v8  ;;  %v6537_v6 = vmul.f32 %v3040_v16, %v3535_v12  ;;  %v2650_v58 = vld [vmem:[%s7481_s1 + $0xa9] sm:$0x7]  ;;  %v608_v56 = vadd.f32 %v586_v30, %v540_v4 }
 0x147   :  { %7993 = vst [vmem:[#allocation11_spill] sm:$0xff] %v6515_v60  ;;  %v1865_v5 = vadd.f32 %v7613_v39, %v1841_v63  ;;  %v3086_v29 = vld [vmem:[%s7481_s1 + $0x461] sm:$0xff]  ;;  %v1019_v60 = vadd.f32 %v6321_v31, %v951_v62  ;;  %v6544_v28 = vmul.f32 %v3063_v36, %v3541_v15  ;;  %v244_v62 = vmul.f32 %v2627_v41, %v3343_v11  ;;  %v2673_v63 = vld [vmem:[%s7481_s1 + $0x2e9] sm:$0x7] }
 0x148   :  { %v7994_v13 = vld [vmem:[#allocation14_spill] sm:$0xff]  ;;  %v7995_v53 = vld [vmem:[#allocation37_spill] sm:$0xff]  ;;  %7996 = vst [vmem:[#allocation28_spill] sm:$0xff] %v6537_v6  ;;  %v6558_v30 = vmul.f32 %v3086_v29, %v3553_v23 }
 0x149   :  { %v1499_v2 = vadd.f32 %v7994_v13, %v1430_v40  ;;  %v6534_v59 = vmul.f32 %v7995_v53, %v3523_v3  ;;  %1915 = vst.msk [vmem:[#allocation2 + $0x89] sm:$0x7] %vm1900_vm2, %v1865_v5  ;;  %7997 = vst [vmem:[#allocation19_spill] sm:$0xff] %v6544_v28  ;;  %v6549_v31 = vld [vmem:[%s7481_s1 + $0x8e0] sm:$0xff]  ;;  %v129_v40 = vadd.f32 %v107_v1, %v60_v21  ;;  %v2696_v21 = vld [vmem:[%s7481_s1 + $0x768] sm:$0x7] }
 0x14a   :  { %v7998_v0 = vld [vmem:[#allocation13_spill] sm:$0xff]  ;;  %v1088_v5 = vadd.f32 %v6324_v51, %v1019_v60  ;;  %7999 = vst [vmem:[#allocation21_spill] sm:$0xff] %v6558_v30  ;;  %v6562_v4 = vmul.f32 %v6549_v31, %v3556_v26  ;;  %v2719_v51 = vld [vmem:[%s7481_s1 + $0x529] sm:$0x7]  ;;  %v677_v60 = vadd.f32 %v655_v49, %v608_v56  ;;  %v313_v13 = vmul.f32 %v2650_v58, %v3353_v14  ;;  %v2765_v49 = vld [vmem:[%s7481_s1 + $0x818] sm:$0x7] }
 0x14b   :  { %v1568_v16 = vadd.f32 %v7998_v0, %v1499_v2  ;;  %v6567_v36 = vld [vmem:[%s7481_s1 + $0x6a1] sm:$0xff]  ;;  %v197_v1 = vadd.f32 %v175_v54, %v129_v40  ;;  %v2742_v2 = vld [vmem:[%s7481_s1 + $0x769] sm:$0x7]  ;;  %v8004_v53 = vld [vmem:[#allocation39_spill] sm:$0xff]  ;;  %v381_v54 = vmul.f32 %v2673_v63, %v3362_v17 }
 0x14c   :  { %8000 = vst [vmem:[#allocation18_spill] sm:$0xff] %v6562_v4  ;;  %8001 = vst [vmem:[#allocation23_spill] sm:$0xff] %v6567_v36  ;;  %v6577_v41 = vmul.f32 %v6567_v36, %v3573_v37  ;;  %v6582_v29 = vld [vmem:[%s7481_s1 + $0x8e1] sm:$0xff]  ;;  %v1157_v0 = vadd.f32 %v6329_v50, %v1088_v5  ;;  %v2788_v58 = vld [vmem:[%s7481_s1 + $0x5d9] sm:$0x7]  ;;  %v746_v4 = vadd.f32 %v6447_v34, %v677_v60 }
 0x14d   :  { %8003 = vst [vmem:[#allocation17_spill] sm:$0xff] %v6582_v29  ;;  %v1636_v56 = vadd.f32 %v8004_v53, %v1568_v16  ;;  %v2811_v40 = vld [vmem:[%s7481_s1 + $0x819] sm:$0x7]  ;;  %v266_v30 = vadd.f32 %v244_v62, %v197_v1  ;;  %v450_v16 = vmul.f32 %v2696_v21, %v3368_v19  ;;  %v519_v50 = vmul.f32 %v2719_v51, %v3371_v20  ;;  %v2834_v5 = vld [vmem:[%s7481_s1 + $0x3a8] sm:$0x7] }
 0x14e   :  { %8002 = vst [vmem:[#allocation27_spill] sm:$0xff] %v6577_v41  ;;  %v6595_v41 = vmul.f32 %v6582_v29, %v3581_v43  ;;  %v2857_v63 = vld [vmem:[%s7481_s1 + $0x169] sm:$0x7]  ;;  %v1225_v28 = vadd.f32 %v6332_v32, %v1157_v0  ;;  %v587_v29 = vmul.f32 %v2742_v2, %v3389_v25  ;;  %v656_v34 = vmul.f32 %v2765_v49, %v3395_v27 }
 0x14f   :  { %v8006_v53 = vld [vmem:[#allocation26_spill] sm:$0xff]  ;;  %v814_v51 = vadd.f32 %v6453_v33, %v746_v4  ;;  %v335_v60 = vadd.f32 %v313_v13, %v266_v30  ;;  %v6625_v1 = vmul.f32 %v2788_v58, %v3419_v35  ;;  %v6628_v32 = vmul.f32 %v2811_v40, %v7622_v52  ;;  %v2972_v4 = vld [vmem:[%s7481_s1 + $0x8d8] sm:$0x7] }
 0x150   :  { %8005 = vst [vmem:[#allocation40_spill] sm:$0xff] %v6595_v41  ;;  %v1705_v41 = vadd.f32 %v8006_v53, %v1636_v56  ;;  %v2880_v62 = vld [vmem:[%s7481_s1 + $0x3a9] sm:$0x7]  ;;  %v8007_v56 = vld [vmem:[#allocation32_spill] sm:$0xff]  ;;  %v1294_v53 = vadd.f32 %v6339_v24, %v1225_v28  ;;  %v6639_v33 = vmul.f32 %v2834_v5, %v3428_v38  ;;  %v6642_v30 = vmul.f32 %v2857_v63, %v3443_v42 }
 0x151   :  { %v2903_v21 = vld [vmem:[%s7481_s1 + $0x828] sm:$0x7]  ;;  %v2995_v13 = vld [vmem:[%s7481_s1 + $0x699] sm:$0x7]  ;;  %v883_v58 = vadd.f32 %v6456_v18, %v814_v51  ;;  %v403_v40 = vadd.f32 %v381_v54, %v335_v60 }
 0x152   :  { %v2926_v2 = vld [vmem:[%s7481_s1 + $0x5e9] sm:$0x7]  ;;  %v1774_v0 = vadd.f32 %v8007_v56, %v1705_v41  ;;  %v6652_v41 = vmul.f32 %v2880_v62, %v3449_v44  ;;  %v6655_v24 = vmul.f32 %v2903_v21, %v3452_v46  ;;  %v3018_v18 = vld [vmem:[%s7481_s1 + $0x8d9] sm:$0x7]  ;;  %v6670_v21 = vmul.f32 %v2972_v4, %v3483_v55 }
 0x153   :  { %v2949_v49 = vld [vmem:[%s7481_s1 + $0x829] sm:$0x7]  ;;  %v6660_v6 = vmul.f32 %v2926_v2, %v3455_v47  ;;  %v952_v54 = vadd.f32 %v6460_v9, %v883_v58  ;;  %v472_v62 = vadd.f32 %v450_v16, %v403_v40  ;;  %v6673_v51 = vmul.f32 %v2995_v13, %v3502_v61  ;;  %v2628_v2 = vld [vmem:[%s7481_s1 + $0x2f0] sm:$0xff] }
 0x154   :  { %v8008_v28 = vld [vmem:[#allocation38_spill] sm:$0xff]  ;;  %v6663_v36 = vmul.f32 %v2949_v49, %v3458_v48  ;;  %v61_v4 = vmul.f32 %v6411_v10, %v7579_v22  ;;  %v108_v13 = vmul.f32 %v6420_v57, %v3333_v7  ;;  %v2651_v10 = vld [vmem:[%s7481_s1 + $0xb1] sm:$0xff] }
 0x155   :  { %v1842_v5 = vadd.f32 %v8008_v28, %v1774_v0  ;;  %v8009_v63 = vld [vmem:[#allocation10_spill] sm:$0xff]  ;;  %8010 = vst [vmem:[#allocation25_spill] sm:$0xff] %v6673_v51  ;;  %v8011_v0 = vld [vmem:[#allocation33_spill] sm:$0xff]  ;;  %v1020_v58 = vadd.f32 %v6463_v45, %v952_v54  ;;  %v541_v40 = vadd.f32 %v519_v50, %v472_v62  ;;  %v6695_v28 = vmul.f32 %v3018_v18, %v3523_v3 }
 0x156   :  { %v1363_v56 = vadd.f32 %v8009_v63, %v1294_v53  ;;  %v3041_v60 = vld [vmem:[%s7481_s1 + $0x468] sm:$0x7]  ;;  %v8013_v63 = vld [vmem:[#allocation20_spill] sm:$0xff]  ;;  %v130_v54 = vadd.f32 %v108_v13, %v61_v4  ;;  %v245_v62 = vmul.f32 %v2628_v2, %v3343_v11 }
 0x157   :  { %v1866_v49 = vadd.f32 %v7613_v39, %v1842_v5  ;;  %v3064_v9 = vld [vmem:[%s7481_s1 + $0x229] sm:$0x7]  ;;  %8012 = vst [vmem:[#allocation29_spill] sm:$0xff] %v6695_v28  ;;  %v6708_v45 = vmul.f32 %v3041_v60, %v3535_v12  ;;  %v609_v51 = vadd.f32 %v587_v29, %v541_v40  ;;  %v8021_v40 = vld [vmem:[#allocation44_spill] sm:$0xff] }
 0x158   :  { %v1431_v53 = vadd.f32 %v8011_v0, %v1363_v56  ;;  %v3087_v16 = vld [vmem:[%s7481_s1 + $0x469] sm:$0x7]  ;;  %v176_v56 = vmul.f32 %v8013_v63, %v3335_v8  ;;  %v8016_v63 = vld [vmem:[#allocation35_spill] sm:$0xff] }
 0x159   :  { %v3110_v5 = vld [vmem:[%s7481_s1 + $0x8e8] sm:$0x7]  ;;  %1916 = vst.msk [vmem:[#allocation2 + $0x91] sm:$0xff] %vm1872_vm0, %v1866_v49  ;;  %8015 = vst [vmem:[#allocation41_spill] sm:$0xff] %v6708_v45  ;;  %v1089_v28 = vadd.f32 %v8016_v63, %v1020_v58  ;;  %v6719_v49 = vmul.f32 %v3064_v9, %v3541_v15  ;;  %v6722_v60 = vmul.f32 %v3087_v16, %v3553_v23  ;;  %v2720_v16 = vld [vmem:[%s7481_s1 + $0x531] sm:$0xff] }
 0x15a   :  { %v8014_v57 = vld [vmem:[#allocation42_spill] sm:$0xff]  ;;  %v6732_v2 = vmul.f32 %v3110_v5, %v3556_v26  ;;  %v198_v29 = vadd.f32 %v176_v56, %v130_v54  ;;  %v314_v9 = vmul.f32 %v2651_v10, %v3353_v14  ;;  %v2743_v58 = vld [vmem:[%s7481_s1 + $0x771] sm:$0xff] }
 0x15b   :  { %v1500_v0 = vadd.f32 %v8014_v57, %v1431_v53  ;;  %v3133_v50 = vld [vmem:[%s7481_s1 + $0x6a9] sm:$0x7]  ;;  %8017 = vst [vmem:[#allocation45_spill] sm:$0xff] %v6719_v49  ;;  %8018 = vst [vmem:[#allocation46_spill] sm:$0xff] %v6722_v60  ;;  %v2674_v53 = vld [vmem:[%s7481_s1 + $0x2f1] sm:$0xff]  ;;  %v1158_v63 = vadd.f32 %v8021_v40, %v1089_v28  ;;  %v678_v60 = vadd.f32 %v656_v34, %v609_v51 }
 0x15c   :  { %v3156_v18 = vld [vmem:[%s7481_s1 + $0x8e9] sm:$0x7]  ;;  %v2697_v57 = vld [vmem:[%s7481_s1 + $0x770] sm:$0xff]  ;;  %8020 = vst [vmem:[#allocation34_spill] sm:$0xff] %v6732_v2  ;;  %v6743_v49 = vmul.f32 %v3133_v50, %v3573_v37  ;;  %v267_v10 = vadd.f32 %v245_v62, %v198_v29  ;;  %v382_v54 = vmul.f32 %v2674_v53, %v3362_v17  ;;  %v8025_v45 = vld [vmem:[#allocation36_spill] sm:$0xff]  ;;  %v520_v51 = vmul.f32 %v2720_v16, %v3371_v20 }
 0x15d   :  { %v8019_v4 = vld [vmem:[#allocation22_spill] sm:$0xff]  ;;  %v6746_v5 = vmul.f32 %v3156_v18, %v3581_v43  ;;  %v8024_v56 = vld [vmem:[#allocation15_spill] sm:$0xff]  ;;  %v1226_v28 = vadd.f32 %v8025_v45, %v1158_v63  ;;  %v747_v34 = vadd.f32 %v6625_v1, %v678_v60  ;;  %v588_v50 = vmul.f32 %v2743_v58, %v3389_v25  ;;  %v8026_v53 = vld [vmem:[#allocation9_spill] sm:$0xff] }
 0x15e   :  { %v1569_v13 = vadd.f32 %v8019_v4, %v1500_v0  ;;  %8022 = vst [vmem:[#allocation14_spill] sm:$0xff] %v6743_v49  ;;  %v451_v4 = vmul.f32 %v2697_v57, %v3368_v19  ;;  %v2835_v2 = vld [vmem:[%s7481_s1 + $0x3b0] sm:$0xff]  ;;  %v8027_v29 = vld [vmem:[#allocation16_spill] sm:$0xff] }
 0x15f   :  { %8023 = vst [vmem:[#allocation37_spill] sm:$0xff] %v6746_v5  ;;  %v2858_v18 = vld [vmem:[%s7481_s1 + $0x171] sm:$0xff]  ;;  %v657_v45 = vmul.f32 %v8027_v29, %v3395_v27  ;;  %v8031_v29 = vld [vmem:[#allocation30_spill] sm:$0xff] }
 0x160   :  { %v1637_v0 = vadd.f32 %v8024_v56, %v1569_v13  ;;  %v2881_v62 = vld [vmem:[%s7481_s1 + $0x3b1] sm:$0xff]  ;;  %v336_v13 = vadd.f32 %v314_v9, %v267_v10  ;;  %v815_v56 = vadd.f32 %v6628_v32, %v747_v34  ;;  %v6784_v10 = vmul.f32 %v2835_v2, %v3428_v38  ;;  %v2561_v32 = vld [vmem:[%s7481_s1 + $0x768] sm:$0x7] }
 0x161   :  { %v8028_v1 = vld [vmem:[#allocation43_spill] sm:$0xff]  ;;  %v8030_v9 = vld [vmem:[#allocation24_spill] sm:$0xff]  ;;  %v6791_v49 = vmul.f32 %v2858_v18, %v3443_v42  ;;  %v2606_v18 = vld [vmem:[%s7481_s1 + $0x769] sm:$0x7] }
 0x162   :  { %v1706_v57 = vadd.f32 %v8026_v53, %v1637_v0  ;;  %v6769_v60 = vmul.f32 %v8028_v1, %v3419_v35  ;;  %v2904_v16 = vld [vmem:[%s7481_s1 + $0x830] sm:$0xff]  ;;  %v6781_v0 = vmul.f32 %v8030_v9, %v7622_v52  ;;  %v404_v5 = vadd.f32 %v382_v54, %v336_v13  ;;  %v2583_v54 = vld [vmem:[%s7481_s1 + $0x529] sm:$0x7] }
 0x163   :  { %v2927_v58 = vld [vmem:[%s7481_s1 + $0x5f1] sm:$0xff]  ;;  %v6802_v9 = vmul.f32 %v2904_v16, %v3452_v46 }
 0x164   :  { %v8029_v40 = vld [vmem:[#allocation31_spill] sm:$0xff]  ;;  %v1775_v1 = vadd.f32 %v8031_v29, %v1706_v57  ;;  %v6805_v57 = vmul.f32 %v2927_v58, %v3455_v47  ;;  %v473_v29 = vadd.f32 %v451_v4, %v404_v5  ;;  %v62_v4 = vmul.f32 %v2561_v32, %v7579_v22  ;;  %v8036_v22 = vld [vmem:[#allocation28_spill] sm:$0xff] }
 0x165   :  { %v1295_v63 = vadd.f32 %v8029_v40, %v1226_v28  ;;  %v2950_v53 = vld [vmem:[%s7481_s1 + $0x831] sm:$0xff]  ;;  %v6794_v28 = vmul.f32 %v2881_v62, %v3449_v44  ;;  %v884_v40 = vadd.f32 %v6639_v33, %v815_v56  ;;  %v6819_v33 = vmul.f32 %v6549_v31, %v3483_v55 }
 0x166   :  { %v8032_v34 = vld [vmem:[#allocation11_spill] sm:$0xff]  ;;  %8033 = vst [vmem:[#allocation13_spill] sm:$0xff] %v6805_v57  ;;  %v8034_v62 = vld [vmem:[#allocation12_spill] sm:$0xff] }
 0x167   :  { %v1364_v2 = vadd.f32 %v8032_v34, %v1295_v63  ;;  %v1843_v13 = vadd.f32 %v8034_v62, %v1775_v1  ;;  %v6815_v63 = vmul.f32 %v2950_v53, %v3458_v48  ;;  %v3042_v16 = vld [vmem:[%s7481_s1 + $0x470] sm:$0xff]  ;;  %v953_v56 = vadd.f32 %v6642_v30, %v884_v40  ;;  %v2629_v31 = vld [vmem:[%s7481_s1 + $0x2f8] sm:$0x7] }
 0x168   :  { %v8035_v34 = vld [vmem:[#allocation23_spill] sm:$0xff]  ;;  %v542_v1 = vadd.f32 %v520_v51, %v473_v29  ;;  %v177_v40 = vmul.f32 %v2606_v18, %v3335_v8  ;;  %v6853_v51 = vmul.f32 %v3042_v16, %v3535_v12  ;;  %v246_v16 = vmul.f32 %v2629_v31, %v3343_v11  ;;  %v2721_v11 = vld [vmem:[%s7481_s1 + $0x539] sm:$0x7] }
 0x169   :  { %v1432_v58 = vadd.f32 %v6534_v59, %v1364_v2  ;;  %v6828_v57 = vmul.f32 %v8035_v34, %v3502_v61  ;;  %v3065_v5 = vld [vmem:[%s7481_s1 + $0x231] sm:$0xff]  ;;  %v1867_v53 = vadd.f32 %v7613_v39, %v1843_v13  ;;  %v109_v2 = vmul.f32 %v2583_v54, %v3333_v7  ;;  %v8037_v34 = vld [vmem:[#allocation17_spill] sm:$0xff]  ;;  %v2652_v7 = vld [vmem:[%s7481_s1 + $0xb9] sm:$0x7] }
 0x16a   :  { %v3088_v59 = vld [vmem:[%s7481_s1 + $0x471] sm:$0xff]  ;;  %v1021_v62 = vadd.f32 %v6652_v41, %v953_v56  ;;  %v6850_v13 = vmul.f32 %v8037_v34, %v3523_v3  ;;  %v610_v8 = vadd.f32 %v588_v50, %v542_v1  ;;  %v6863_v41 = vmul.f32 %v3065_v5, %v3541_v15 }
 0x16b   :  { %v3111_v30 = vld [vmem:[%s7481_s1 + $0x8f0] sm:$0xff]  ;;  %v1501_v32 = vadd.f32 %v8036_v22, %v1432_v58  ;;  %1917 = vst.msk [vmem:[#allocation2 + $0x99] sm:$0x7] %vm1900_vm2, %v1867_v53  ;;  %v131_v18 = vadd.f32 %v109_v2, %v62_v4  ;;  %v2675_v58 = vld [vmem:[%s7481_s1 + $0x2f9] sm:$0x7]  ;;  %v6875_v50 = vmul.f32 %v3088_v59, %v3553_v23 }
 0x16c   :  { %v3134_v29 = vld [vmem:[%s7481_s1 + $0x6b1] sm:$0xff]  ;;  %v1090_v34 = vadd.f32 %v6655_v24, %v1021_v62  ;;  %v6878_v5 = vmul.f32 %v3111_v30, %v3556_v26  ;;  %v679_v31 = vadd.f32 %v657_v45, %v610_v8  ;;  %v315_v24 = vmul.f32 %v2652_v7, %v3353_v14  ;;  %v2744_v59 = vld [vmem:[%s7481_s1 + $0x779] sm:$0x7]  ;;  %v2767_v30 = vld [vmem:[%s7481_s1 + $0x828] sm:$0x7] }
 0x16d   :  { %v3157_v54 = vld [vmem:[%s7481_s1 + $0x8f1] sm:$0xff]  ;;  %v6887_v53 = vmul.f32 %v3134_v29, %v3573_v37  ;;  %v199_v1 = vadd.f32 %v177_v40, %v131_v18  ;;  %v2790_v2 = vld [vmem:[%s7481_s1 + $0x5e9] sm:$0x7]  ;;  %v383_v14 = vmul.f32 %v2675_v58, %v3362_v17  ;;  %v2859_v17 = vld [vmem:[%s7481_s1 + $0x179] sm:$0x7] }
 0x16e   :  { %v8038_v56 = vld [vmem:[#allocation19_spill] sm:$0xff]  ;;  %v2698_v4 = vld [vmem:[%s7481_s1 + $0x778] sm:$0x7]  ;;  %v1159_v62 = vadd.f32 %v6660_v6, %v1090_v34  ;;  %v6902_v40 = vmul.f32 %v3157_v54, %v3581_v43  ;;  %v2813_v29 = vld [vmem:[%s7481_s1 + $0x829] sm:$0x7]  ;;  %v748_v7 = vadd.f32 %v6769_v60, %v679_v31  ;;  %v521_v6 = vmul.f32 %v2721_v11, %v3371_v20 }
 0x16f   :  { %v1570_v22 = vadd.f32 %v8038_v56, %v1501_v32  ;;  %v8039_v32 = vld [vmem:[#allocation21_spill] sm:$0xff]  ;;  %v268_v8 = vadd.f32 %v246_v16, %v199_v1  ;;  %v452_v18 = vmul.f32 %v2698_v4, %v3368_v19  ;;  %v2836_v54 = vld [vmem:[%s7481_s1 + $0x3b8] sm:$0x7]  ;;  %v8040_v56 = vld [vmem:[#allocation18_spill] sm:$0xff]  ;;  %v589_v19 = vmul.f32 %v2744_v59, %v3389_v25 }
 0x170   :  { %v2882_v58 = vld [vmem:[%s7481_s1 + $0x3b9] sm:$0x7]  ;;  %v1227_v60 = vadd.f32 %v6663_v36, %v1159_v62  ;;  %v6928_v20 = vmul.f32 %v2767_v30, %v3395_v27  ;;  %v816_v34 = vadd.f32 %v6781_v0, %v748_v7  ;;  %v6939_v11 = vmul.f32 %v2790_v2, %v3419_v35  ;;  %v8041_v31 = vld [vmem:[#allocation27_spill] sm:$0xff] }
 0x171   :  { %v1638_v45 = vadd.f32 %v8039_v32, %v1570_v22  ;;  %v2905_v16 = vld [vmem:[%s7481_s1 + $0x838] sm:$0x7]  ;;  %v337_v4 = vadd.f32 %v315_v24, %v268_v8  ;;  %v6942_v36 = vmul.f32 %v2813_v29, %v7622_v52  ;;  %v6953_v0 = vmul.f32 %v2836_v54, %v3428_v38  ;;  %v2974_v52 = vld [vmem:[%s7481_s1 + $0x8e8] sm:$0x7] }
 0x172   :  { %v2928_v25 = vld [vmem:[%s7481_s1 + $0x5f9] sm:$0x7]  ;;  %v1296_v59 = vadd.f32 %v6670_v21, %v1227_v60  ;;  %v6956_v35 = vmul.f32 %v2859_v17, %v3443_v42  ;;  %v2997_v24 = vld [vmem:[%s7481_s1 + $0x6a9] sm:$0x7]  ;;  %v885_v30 = vadd.f32 %v6784_v10, %v816_v34  ;;  %v6968_v21 = vmul.f32 %v2882_v58, %v3449_v44  ;;  %v1964_v44 = vld [vmem:[#allocation2 + $0x1] sm:$0xff] }
 0x173   :  { %v1707_v22 = vadd.f32 %v8040_v56, %v1638_v45  ;;  %v2951_v27 = vld [vmem:[%s7481_s1 + $0x839] sm:$0x7]  ;;  %v405_v2 = vadd.f32 %v383_v14, %v337_v4  ;;  %v6971_v38 = vmul.f32 %v2905_v16, %v3452_v46  ;;  %v8043_v45 = vld [vmem:[#allocation25_spill] sm:$0xff]  ;;  %v6978_v29 = vmul.f32 %v2928_v25, %v3455_v47  ;;  %v3020_v17 = vld [vmem:[%s7481_s1 + $0x8e9] sm:$0x7] }
 0x174   :  { %v8042_v42 = vld [vmem:[#allocation40_spill] sm:$0xff]  ;;  %v1365_v62 = vadd.f32 %v8043_v45, %v1296_v59  ;;  %v6981_v10 = vmul.f32 %v2951_v27, %v3458_v48  ;;  %v1922_v14 = vld [vmem:[#allocation2] sm:$0xff]  ;;  %v954_v7 = vadd.f32 %v6791_v49, %v885_v30  ;;  %v6985_v46 = vmul.f32 %v2974_v52, %v3483_v55  ;;  %v7011_v34 = vld [vmem:[#allocation2 + $0x10] sm:$0xff] }
 0x175   :  { %v1776_v1 = vadd.f32 %v8041_v31, %v1707_v22  ;;  %v474_v8 = vadd.f32 %v452_v18, %v405_v2  ;;  %v6988_v54 = vmul.f32 %v2997_v24, %v3502_v61  ;;  %v8044_v58 = vld [vmem:[#allocation29_spill] sm:$0xff]  ;;  %v6996_v56 = vstv %s6908_s5  ;;  %v3043_v22 = vld [vmem:[%s7481_s1 + $0x478] sm:$0x7] }
 0x176   :  { %v1433_v48 = vadd.f32 %v8044_v58, %v1365_v62  ;;  %v6999_v49 = vstv %s6910_s18  ;;  %v2026_v18 = vld [vmem:[#allocation2 + $0x2] sm:$0xff]  ;;  %v1022_v55 = vadd.f32 %v6794_v28, %v954_v7  ;;  %v1944_v60 = vmul.f32 %v6996_v56, %v1922_v14  ;;  %v3066_v59 = vld [vmem:[%s7481_s1 + $0x239] sm:$0x7] }
 0x177   :  { %v1844_v32 = vadd.f32 %v8042_v42, %v1776_v1  ;;  %v543_v61 = vadd.f32 %v521_v6, %v474_v8  ;;  %v1986_v16 = vmul.f32 %v6999_v49, %v1964_v44  ;;  %v8045_v4 = vld [vmem:[#allocation41_spill] sm:$0xff]  ;;  %v7016_v27 = vmul.f32 %v3020_v17, %v3523_v3  ;;  %v3089_v52 = vld [vmem:[%s7481_s1 + $0x479] sm:$0x7] }
 0x178   :  { %v1502_v25 = vadd.f32 %v8045_v4, %v1433_v48  ;;  %v7019_v28 = vstv %s6933_s28  ;;  %v7022_v6 = vstv %s6935_s11  ;;  %v1091_v31 = vadd.f32 %v6802_v9, %v1022_v55  ;;  %v3112_v3 = vld [vmem:[%s7481_s1 + $0x8f8] sm:$0x7]  ;;  %v8046_v2 = vld [vmem:[#allocation45_spill] sm:$0xff]  ;;  %v1923_v55 = vld [vmem:[#allocation2 + $0x8] sm:$0x3] }
 0x179   :  { %v1868_v47 = vadd.f32 %v7613_v39, %v1844_v32  ;;  %v611_v1 = vadd.f32 %v589_v19, %v543_v61  ;;  %v2006_v24 = vadd.f32 %v1986_v16, %v1944_v60  ;;  %v2048_v30 = vmul.f32 %v7019_v28, %v2026_v18  ;;  %v7043_v32 = vld [vmem:[#allocation2 + $0x11] sm:$0xff]  ;;  %v8047_v62 = vld [vmem:[#allocation13_spill] sm:$0xff]  ;;  %v1965_v16 = vld [vmem:[#allocation2 + $0x9] sm:$0x3] }
 0x17a   :  { %v1571_v42 = vadd.f32 %v8046_v2, %v1502_v25  ;;  %v7039_v9 = vmul.f32 %v3043_v22, %v3535_v12  ;;  %v2110_v19 = vmul.f32 %v7022_v6, %v7011_v34  ;;  %v7046_v45 = vstv %s6964_s17  ;;  %v7050_v8 = vld [vmem:[#allocation2 + $0x12] sm:$0xff]  ;;  %v2027_v4 = vld [vmem:[#allocation2 + $0xa] sm:$0x3] }
 0x17b   :  { %1918 = vst.msk [vmem:[#allocation2 + $0xa1] sm:$0xff] %vm1872_vm0, %v1868_v47  ;;  %v1160_v14 = vadd.f32 %v8047_v62, %v1091_v31  ;;  %v680_v44 = vadd.f32 %v6928_v20, %v611_v1  ;;  %v2068_v7 = vadd.f32 %v2048_v30, %v2006_v24  ;;  %v7053_v17 = vstv %s6973_s3  ;;  %v8048_v47 = vld [vmem:[#allocation46_spill] sm:$0xff]  ;;  %v7072_v31 = vld [vmem:[#allocation2 + $0x20] sm:$0xff]  ;;  %v2089_v24 = vld [vmem:[#allocation2 + $0x18] sm:$0x3] }
 0x17c   :  { %v1639_v12 = vadd.f32 %v8048_v47, %v1571_v42  ;;  %v7057_v58 = vmul.f32 %v3066_v59, %v3541_v15  ;;  %v7060_v48 = vmul.f32 %v3089_v52, %v3553_v23  ;;  %v7063_v18 = vmul.f32 %v3112_v3, %v3556_v26  ;;  %v8049_v15 = vld [vmem:[#allocation34_spill] sm:$0xff]  ;;  %v3135_v59 = vld [vmem:[%s7481_s1 + $0x6b9] sm:$0x7] }
 0x17d   :  { %v1228_v20 = vadd.f32 %v6815_v63, %v1160_v14  ;;  %v749_v61 = vadd.f32 %v6939_v11, %v680_v44  ;;  %v2130_v22 = vadd.f32 %v2110_v19, %v2068_v7  ;;  %v2172_v60 = vmul.f32 %v7046_v45, %v7043_v32  ;;  %v8050_v30 = vld [vmem:[#allocation14_spill] sm:$0xff]  ;;  %v3158_v44 = vld [vmem:[%s7481_s1 + $0x8f9] sm:$0x7]  ;;  %s3256_s1 = smov [#allocation5]  }
 0x17e   :  { %v1708_v25 = vadd.f32 %v8049_v15, %v1639_v12  ;;  %v2234_v23 = vmul.f32 %v7053_v17, %v7050_v8  ;;  %v7075_v26 = vstv %s7001_s13  ;;  %v7078_v1 = vstv %s7003_s29  ;;  %v7089_v42 = vld [vmem:[#allocation2 + $0x21] sm:$0xff]  ;;  %v2151_v15 = vld [vmem:[#allocation2 + $0x19] sm:$0x3]  ;;  %s2529_s11 = sshll.u32 %s3256_s1, 4  ;;  %s2530_s11 = int_to_ptr.vmem [resolvable:$true] %s2529_s11 }
 0x17f   :  { %v1297_v63 = vadd.f32 %v6819_v33, %v1228_v20  ;;  %v817_v11 = vadd.f32 %v6942_v36, %v749_v61  ;;  %v2192_v52 = vadd.f32 %v2172_v60, %v2130_v22  ;;  %v1945_v3 = vmul.f32 %v6996_v56, %v1923_v55  ;;  %v7103_v12 = vld [vmem:[#allocation2 + $0x22] sm:$0xff]  ;;  %s3228_s15 = scalar_lea.vmem %s2530_s11, 2560  ;;  %p3233_p6 = scmp.lt.s32.totalorder %s2530_s11, %s2530_s11 }
 0x180   :  { %v1777_v2 = vadd.f32 %v8050_v30, %v1708_v25  ;;  %v7092_v19 = vstv %s7024_s24  ;;  %v1987_v62 = vmul.f32 %v6999_v49, %v1965_v16  ;;  %v2049_v33 = vmul.f32 %v7019_v28, %v2027_v4  ;;  %v8051_v55 = vld [vmem:[#allocation37_spill] sm:$0xff]  ;;  %p3229_p5 = scmp.ne.s32.totalorder %s2530_s11, %s3228_s15  ;;  %p3234_p7 = scmp.lt.s32.totalorder %s3228_s15, %s3228_s15 }
 0x181   :  { %v1366_v36 = vadd.f32 %v6828_v57, %v1297_v63  ;;  %v886_v14 = vadd.f32 %v6953_v0, %v817_v11  ;;  %v2254_v7 = vadd.f32 %v2234_v23, %v2192_v52  ;;  %v2297_v47 = vmul.f32 %v7075_v26, %v7072_v31  ;;  %v2213_v11 = vld [vmem:[#allocation2 + $0x1a] sm:$0x3]  ;;  %v2276_v52 = vld [vmem:[#allocation2 + $0x28] sm:$0x3] }
 0x182   :  { %v1845_v20 = vadd.f32 %v8051_v55, %v1777_v2  ;;  %v7107_v61 = vmul.f32 %v3135_v59, %v3573_v37  ;;  %v2007_v22 = vadd.f32 %v1987_v62, %v1945_v3  ;;  %v2111_v57 = vmul.f32 %v7022_v6, %v2089_v24  ;;  %v2338_v2 = vld [vmem:[#allocation2 + $0x29] sm:$0x3]  ;;  %v1967_v55 = vld [vmem:[#allocation2 + $0x19] sm:$0x3]  ;;  %p3235_p8 = por %p3234_p7, %p3233_p6 }
 0x183   :  { %v1434_v0 = vadd.f32 %v6850_v13, %v1366_v36  ;;  %v955_v60 = vadd.f32 %v6956_v35, %v886_v14  ;;  %v2317_v16 = vadd.f32 %v2297_v47, %v2254_v7  ;;  %v2359_v4 = vmul.f32 %v7078_v1, %v7089_v42  ;;  %v1925_v14 = vld [vmem:[#allocation2 + $0x18] sm:$0x3] }
 0x184   :  { %v1869_v25 = vadd.f32 %v7613_v39, %v1845_v20  ;;  %v7116_v23 = vmul.f32 %v3158_v44, %v3581_v43  ;;  %v2421_v37 = vmul.f32 %v7092_v19, %v7103_v12  ;;  %v2069_v63 = vadd.f32 %v2049_v33, %v2007_v22  ;;  %v2400_v22 = vld [vmem:[#allocation2 + $0x2a] sm:$0x3]  ;;  %p3236_p9 = pnand %p3235_p8, %p3229_p5 }
 0x185   :  { %v1503_v13 = vadd.f32 %v6853_v51, %v1434_v0  ;;  %v1023_v59 = vadd.f32 %v6968_v21, %v955_v60  ;;  %v2379_v35 = vadd.f32 %v2359_v4, %v2317_v16  ;;  %v1946_v3 = vmul.f32 %v7011_v34, %v6996_v56  ;;  %v2029_v4 = vld [vmem:[#allocation2 + $0x1a] sm:$0x3] }
 0x186   :  { %1919 = vst.msk [vmem:[#allocation2 + $0xa9] sm:$0x7] %vm1900_vm2, %v1869_v25  ;;  %v7126_v24 = vstv %s7080_s8  ;;  %v2131_v43 = vadd.f32 %v2111_v57, %v2069_v63  ;;  %v2173_v30 = vmul.f32 %v7046_v45, %v2151_v15  ;;  %v1988_v62 = vmul.f32 %v7043_v32, %v6999_v49 }
 0x187   :  { %v1572_v51 = vadd.f32 %v6863_v41, %v1503_v13  ;;  %v1092_v21 = vadd.f32 %v6971_v38, %v1023_v59  ;;  %v2441_v33 = vadd.f32 %v2421_v37, %v2379_v35  ;;  %v2235_v36 = vmul.f32 %v7053_v17, %v2213_v11  ;;  %v2091_v13 = vld [vmem:[#allocation2 + $0x28] sm:$0x3] }
 0x188   :  { %v2193_v34 = vadd.f32 %v2173_v30, %v2131_v43  ;;  %v2298_v44 = vmul.f32 %v7075_v26, %v2276_v52  ;;  %v2008_v7 = vadd.f32 %v1988_v62, %v1946_v3  ;;  %v2050_v47 = vmul.f32 %v7050_v8, %v7019_v28  ;;  %v2153_v52 = vld [vmem:[#allocation2 + $0x29] sm:$0x3] }
 0x189   :  { %v1640_v20 = vadd.f32 %v6875_v50, %v1572_v51  ;;  %v1161_v32 = vadd.f32 %v6978_v29, %v1092_v21  ;;  %v2463_v41 = vadd.f32 %v7126_v24, %v2441_v33  ;;  %v2360_v38 = vmul.f32 %v7078_v1, %v2338_v2  ;;  %v7146_v50 = vld [vmem:[#allocation2 + $0x30] sm:$0xff]  ;;  %v2215_v33 = vld [vmem:[#allocation2 + $0x2a] sm:$0x3] }
 0x18a   :  { %v2255_v57 = vadd.f32 %v2235_v36, %v2193_v34  ;;  %v2070_v0 = vadd.f32 %v2050_v47, %v2008_v7  ;;  %v2112_v60 = vmul.f32 %v7072_v31, %v7022_v6  ;;  %v1947_v16 = vmul.f32 %v6996_v56, %v1925_v14  ;;  %v7161_v21 = vld [vmem:[#allocation2 + $0x31] sm:$0xff] }
 0x18b   :  { %v1709_v8 = vadd.f32 %v6878_v5, %v1640_v20  ;;  %v1229_v15 = vadd.f32 %v6981_v10, %v1161_v32  ;;  %3176 = vtanh.f32 %v2463_v41  ;;  %v1989_v29 = vmul.f32 %v6999_v49, %v1967_v55  ;;  %v2278_v55 = vld [vmem:[#allocation2 + $0x38] sm:$0x3] }
 0x18c   :  { %v2318_v25 = vadd.f32 %v2298_v44, %v2255_v57  ;;  %v2422_v37 = vmul.f32 %v7092_v19, %v2400_v22  ;;  %v2132_v63 = vadd.f32 %v2112_v60, %v2070_v0  ;;  %v2174_v11 = vmul.f32 %v7089_v42, %v7046_v45  ;;  %v2340_v57 = vld [vmem:[#allocation2 + $0x39] sm:$0x3] }
 0x18d   :  { %v1778_v59 = vadd.f32 %v6887_v53, %v1709_v8  ;;  %v1298_v35 = vadd.f32 %v6985_v46, %v1229_v15  ;;  %v2009_v5 = vadd.f32 %v1989_v29, %v1947_v16  ;;  %v2051_v10 = vmul.f32 %v7019_v28, %v2029_v4  ;;  %v1927_v16 = vld [vmem:[#allocation2 + $0x28] sm:$0x3] }
 0x18e   :  { %v2380_v3 = vadd.f32 %v2360_v38, %v2318_v25  ;;  %v2194_v43 = vadd.f32 %v2174_v11, %v2132_v63  ;;  %v2236_v30 = vmul.f32 %v7103_v12, %v7053_v17  ;;  %v2299_v2 = vmul.f32 %v7075_v26, %v7146_v50 }
 0x18f   :  { %v1846_v62 = vadd.f32 %v6902_v40, %v1778_v59  ;;  %v1367_v51 = vadd.f32 %v6988_v54, %v1298_v35  ;;  %v2071_v53 = vadd.f32 %v2051_v10, %v2009_v5  ;;  %v2113_v46 = vmul.f32 %v7022_v6, %v2091_v13  ;;  %v7169_v40 = vld [vmem:[#allocation2 + $0x32] sm:$0xff]  ;;  %v2031_v13 = vld [vmem:[#allocation2 + $0x2a] sm:$0x3] }
 0x190   :  { %v2442_v36 = vadd.f32 %v2422_v37, %v2380_v3  ;;  %v2256_v14 = vadd.f32 %v2236_v30, %v2194_v43  ;;  %v2175_v34 = vmul.f32 %v7046_v45, %v2153_v52  ;;  %v1948_v44 = vmul.f32 %v7072_v31, %v6996_v56  ;;  %v2093_v43 = vld [vmem:[#allocation2 + $0x38] sm:$0x3] }
 0x191   :  { %v1870_v7 = vadd.f32 %v7613_v39, %v1846_v62  ;;  %v1435_v47 = vadd.f32 %v7016_v27, %v1367_v51  ;;  %v2133_v54 = vadd.f32 %v2113_v46, %v2071_v53  ;;  %v1990_v20 = vmul.f32 %v7089_v42, %v6999_v49  ;;  %v1969_v42 = vld [vmem:[#allocation2 + $0x29] sm:$0x3]  ;;  %v7196_v62 = vld [vmem:[#allocation2 + $0x40] sm:$0xff] }
 0x192   :  { %v2464_v32 = vadd.f32 %v7126_v24, %v2442_v36  ;;  %v2319_v41 = vadd.f32 %v2299_v2, %v2256_v14  ;;  %v2361_v38 = vmul.f32 %v7078_v1, %v7161_v21  ;;  %v2237_v22 = vmul.f32 %v7053_v17, %v2215_v33  ;;  %v2155_v14 = vld [vmem:[#allocation2 + $0x39] sm:$0x3] }
 0x193   :  { %1920 = vst.msk [vmem:[#allocation2 + $0xb1] sm:$0xff] %vm1872_vm0, %v1870_v7  ;;  %v1504_v31 = vadd.f32 %v7039_v9, %v1435_v47  ;;  %v2195_v27 = vadd.f32 %v2175_v34, %v2133_v54  ;;  %v2010_v0 = vadd.f32 %v1990_v20, %v1948_v44  ;;  %v2052_v60 = vmul.f32 %v7103_v12, %v7019_v28  ;;  %v2402_v9 = vld [vmem:[#allocation2 + $0x3a] sm:$0x3]  ;;  %v7202_v34 = vld [vmem:[#allocation2 + $0x41] sm:$0xff] }
 0x194   :  { %3178 = vtanh.f32 %v2464_v32  ;;  %v2381_v4 = vadd.f32 %v2361_v38, %v2319_v41  ;;  %v2423_v8 = vmul.f32 %v7092_v19, %v7169_v40  ;;  %v2300_v15 = vmul.f32 %v7075_v26, %v2278_v55  ;;  %v2217_v20 = vld [vmem:[#allocation2 + $0x3a] sm:$0x3]  ;;  %v7208_v32 = vld [vmem:[#allocation2 + $0x42] sm:$0xff] }
 0x195   :  { %v3177_v29 = vpop.eup %3176  ;;  %v1573_v25 = vadd.f32 %v7057_v58, %v1504_v31  ;;  %v2257_v37 = vadd.f32 %v2237_v22, %v2195_v27  ;;  %v2072_v63 = vadd.f32 %v2052_v60, %v2010_v0  ;;  %v2114_v11 = vmul.f32 %v7146_v50, %v7022_v6  ;;  %v2280_v60 = vld [vmem:[#allocation2 + $0x48] sm:$0x3] }
 0x196   :  { %2503 = vst.msk [vmem:[#allocation5] sm:$0xff] %vm1872_vm0, %v3177_v29  ;;  %v2443_v12 = vadd.f32 %v2423_v8, %v2381_v4  ;;  %v2362_v59 = vmul.f32 %v7078_v1, %v2340_v57  ;;  %v1949_v35 = vmul.f32 %v6996_v56, %v1927_v16  ;;  %v1991_v5 = vmul.f32 %v6999_v49, %v1969_v42  ;;  %v2342_v8 = vld [vmem:[#allocation2 + $0x49] sm:$0x3]  ;;  %v1929_v29 = vld [vmem:[#allocation2 + $0x38] sm:$0x3] }
 0x197   :  { %v1641_v10 = vadd.f32 %v7060_v48, %v1573_v25  ;;  %v2320_v52 = vadd.f32 %v2300_v15, %v2257_v37  ;;  %v2134_v58 = vadd.f32 %v2114_v11, %v2072_v63  ;;  %v2176_v3 = vmul.f32 %v7161_v21, %v7046_v45 }
 0x198   :  { %v2465_v30 = vadd.f32 %v7126_v24, %v2443_v12  ;;  %v2424_v2 = vmul.f32 %v7092_v19, %v2402_v9  ;;  %v2011_v51 = vadd.f32 %v1991_v5, %v1949_v35  ;;  %v2053_v53 = vmul.f32 %v7019_v28, %v2031_v13  ;;  %v2404_v9 = vld [vmem:[#allocation2 + $0x4a] sm:$0x3]  ;;  %v7231_v35 = vld [vmem:[#allocation2 + $0x50] sm:$0xff] }
 0x199   :  { %v1710_v46 = vadd.f32 %v7063_v18, %v1641_v10  ;;  %v2382_v33 = vadd.f32 %v2362_v59, %v2320_v52  ;;  %v2196_v36 = vadd.f32 %v2176_v3, %v2134_v58  ;;  %v2238_v48 = vmul.f32 %v7169_v40, %v7053_v17  ;;  %v2095_v52 = vld [vmem:[#allocation2 + $0x48] sm:$0x3] }
 0x19a   :  { %3180 = vtanh.f32 %v2465_v30  ;;  %v2073_v44 = vadd.f32 %v2053_v53, %v2011_v51  ;;  %v2115_v7 = vmul.f32 %v7022_v6, %v2093_v43  ;;  %v2301_v18 = vmul.f32 %v7075_v26, %v7196_v62  ;;  %v7241_v53 = vld [vmem:[#allocation2 + $0x51] sm:$0xff] }
 0x19b   :  { %v1779_v47 = vadd.f32 %v7107_v61, %v1710_v46  ;;  %v2444_v54 = vadd.f32 %v2424_v2, %v2382_v33  ;;  %v2258_v55 = vadd.f32 %v2238_v48, %v2196_v36  ;;  %v2177_v38 = vmul.f32 %v7046_v45, %v2155_v14  ;;  %v7243_v46 = vld [vmem:[#allocation2 + $0x52] sm:$0xff] }
 0x19c   :  { %v2135_v41 = vadd.f32 %v2115_v7, %v2073_v44  ;;  %v1950_v22 = vmul.f32 %v7146_v50, %v6996_v56  ;;  %v1992_v31 = vmul.f32 %v7161_v21, %v6999_v49  ;;  %v2363_v0 = vmul.f32 %v7078_v1, %v7202_v34  ;;  %v1971_v21 = vld [vmem:[#allocation2 + $0x39] sm:$0x3] }
 0x19d   :  { %v1847_v27 = vadd.f32 %v7116_v23, %v1779_v47  ;;  %v2466_v61 = vadd.f32 %v7126_v24, %v2444_v54  ;;  %v2321_v57 = vadd.f32 %v2301_v18, %v2258_v55  ;;  %v2239_v4 = vmul.f32 %v7053_v17, %v2217_v20  ;;  %v2157_v54 = vld [vmem:[#allocation2 + $0x49] sm:$0x3]  ;;  %v2282_v20 = vld [vmem:[#allocation2 + $0x58] sm:$0x3] }
 0x19e   :  { %v3179_v16 = vpop.eup %3178  ;;  %v2197_v42 = vadd.f32 %v2177_v38, %v2135_v41  ;;  %v2012_v15 = vadd.f32 %v1992_v31, %v1950_v22  ;;  %v2054_v50 = vmul.f32 %v7169_v40, %v7019_v28  ;;  %v2425_v37 = vmul.f32 %v7092_v19, %v7208_v32  ;;  %v2033_v40 = vld [vmem:[#allocation2 + $0x3a] sm:$0x3]  ;;  %v2219_v18 = vld [vmem:[#allocation2 + $0x4a] sm:$0x3] }
 0x19f   :  { %v1871_v23 = vadd.f32 %v7613_v39, %v1847_v27  ;;  %2505 = vst.msk [vmem:[#allocation5 + $0x8] sm:$0x3] %vm2504_vm3, %v3179_v16  ;;  %3182 = vtanh.f32 %v2466_v61  ;;  %v2383_v25 = vadd.f32 %v2363_v0, %v2321_v57  ;;  %v2302_v11 = vmul.f32 %v7075_v26, %v2280_v60  ;;  %v1931_v57 = vld [vmem:[#allocation2 + $0x48] sm:$0x3]  ;;  %v2344_v16 = vld [vmem:[#allocation2 + $0x59] sm:$0x3] }
 0x1a0   :  { %v2259_v63 = vadd.f32 %v2239_v4, %v2197_v42  ;;  %v2074_v13 = vadd.f32 %v2054_v50, %v2012_v15  ;;  %v2116_v12 = vmul.f32 %v7196_v62, %v7022_v6  ;;  %v2364_v39 = vmul.f32 %v7078_v1, %v2342_v8  ;;  %v1973_v4 = vld [vmem:[#allocation2 + $0x49] sm:$0x3] }
 0x1a1   :  { %1921 = vst.msk [vmem:[#allocation2 + $0xb9] sm:$0x7] %vm1900_vm2, %v1871_v23  ;;  %v2445_v59 = vadd.f32 %v2425_v37, %v2383_v25  ;;  %v1951_v5 = vmul.f32 %v6996_v56, %v1929_v29  ;;  %v1993_v10 = vmul.f32 %v6999_v49, %v1971_v21  ;;  %v2426_v3 = vmul.f32 %v7092_v19, %v2404_v9  ;;  %v2406_v29 = vld [vmem:[#allocation2 + $0x5a] sm:$0x3] }
 0x1a2   :  { %v2322_v58 = vadd.f32 %v2302_v11, %v2259_v63  ;;  %v2136_v43 = vadd.f32 %v2116_v12, %v2074_v13  ;;  %v2178_v30 = vmul.f32 %v7202_v34, %v7046_v45  ;;  %v2240_v51 = vmul.f32 %v7208_v32, %v7053_v17  ;;  %v2035_v63 = vld [vmem:[#allocation2 + $0x4a] sm:$0x3]  ;;  %v7269_v13 = vld [vmem:[#allocation2 + $0x60] sm:$0xff] }
 0x1a3   :  { %v2467_v2 = vadd.f32 %v7126_v24, %v2445_v59  ;;  %v2013_v33 = vadd.f32 %v1993_v10, %v1951_v5  ;;  %v2055_v36 = vmul.f32 %v7019_v28, %v2033_v40  ;;  %v2303_v7 = vmul.f32 %v7075_v26, %v7231_v35  ;;  %v2097_v40 = vld [vmem:[#allocation2 + $0x58] sm:$0x3] }
 0x1a4   :  { %v3181_v48 = vpop.eup %3180  ;;  %v2384_v14 = vadd.f32 %v2364_v39, %v2322_v58  ;;  %v2198_v44 = vadd.f32 %v2178_v30, %v2136_v43  ;;  %v2117_v47 = vmul.f32 %v7022_v6, %v2095_v52  ;;  %v1952_v41 = vmul.f32 %v7196_v62, %v6996_v56 }
 0x1a5   :  { %2506 = vst.msk [vmem:[#allocation5 + $0x10] sm:$0xff] %vm1872_vm0, %v3181_v48  ;;  %3184 = vtanh.f32 %v2467_v2  ;;  %v2075_v55 = vadd.f32 %v2055_v36, %v2013_v33  ;;  %v1994_v38 = vmul.f32 %v7202_v34, %v6999_v49  ;;  %v2365_v27 = vmul.f32 %v7078_v1, %v7241_v53  ;;  %v2159_v2 = vld [vmem:[#allocation2 + $0x59] sm:$0x3] }
 0x1a6   :  { %v2446_v22 = vadd.f32 %v2426_v3, %v2384_v14  ;;  %v2260_v31 = vadd.f32 %v2240_v51, %v2198_v44  ;;  %v2427_v61 = vmul.f32 %v7092_v19, %v7243_v46  ;;  %v2179_v60 = vmul.f32 %v7046_v45, %v2157_v54  ;;  %v7277_v3 = vld [vmem:[#allocation2 + $0x61] sm:$0xff] }
 0x1a7   :  { %v2137_v0 = vadd.f32 %v2117_v47, %v2075_v55  ;;  %v2014_v42 = vadd.f32 %v1994_v38, %v1952_v41  ;;  %v2056_v62 = vmul.f32 %v7208_v32, %v7019_v28  ;;  %v2241_v15 = vmul.f32 %v7053_v17, %v2219_v18  ;;  %v7284_v44 = vld [vmem:[#allocation2 + $0x62] sm:$0xff]  ;;  %v2221_v47 = vld [vmem:[#allocation2 + $0x5a] sm:$0x3] }
 0x1a8   :  { %v2468_v34 = vadd.f32 %v7126_v24, %v2446_v22  ;;  %v2323_v8 = vadd.f32 %v2303_v7, %v2260_v31  ;;  %v2304_v50 = vmul.f32 %v7075_v26, %v2282_v20  ;;  %v2118_v37 = vmul.f32 %v7231_v35, %v7022_v6  ;;  %v2284_v31 = vld [vmem:[#allocation2 + $0x68] sm:$0x3] }
 0x1a9   :  { %v3183_v21 = vpop.eup %3182  ;;  %v2199_v23 = vadd.f32 %v2179_v60, %v2137_v0  ;;  %v2076_v25 = vadd.f32 %v2056_v62, %v2014_v42  ;;  %v1953_v9 = vmul.f32 %v6996_v56, %v1931_v57  ;;  %v2366_v11 = vmul.f32 %v7078_v1, %v2344_v16  ;;  %v1933_v57 = vld [vmem:[#allocation2 + $0x58] sm:$0x3]  ;;  %v2346_v62 = vld [vmem:[#allocation2 + $0x69] sm:$0x3] }
 0x1aa   :  { %2507 = vst.msk [vmem:[#allocation5 + $0x18] sm:$0x3] %vm2504_vm3, %v3183_v21  ;;  %3186 = vtanh.f32 %v2468_v34  ;;  %v2385_v32 = vadd.f32 %v2365_v27, %v2323_v8  ;;  %v1995_v12 = vmul.f32 %v6999_v49, %v1973_v4  ;;  %v2428_v39 = vmul.f32 %v7092_v19, %v2406_v29  ;;  %v1975_v0 = vld [vmem:[#allocation2 + $0x59] sm:$0x3]  ;;  %v2408_v21 = vld [vmem:[#allocation2 + $0x6a] sm:$0x3] }
 0x1ab   :  { %v2261_v59 = vadd.f32 %v2241_v15, %v2199_v23  ;;  %v2138_v5 = vadd.f32 %v2118_v37, %v2076_v25  ;;  %v2180_v10 = vmul.f32 %v7241_v53, %v7046_v45  ;;  %v2242_v58 = vmul.f32 %v7243_v46, %v7053_v17 }
 0x1ac   :  { %v2447_v52 = vadd.f32 %v2427_v61, %v2385_v32  ;;  %v2015_v43 = vadd.f32 %v1995_v12, %v1953_v9  ;;  %v2057_v30 = vmul.f32 %v7019_v28, %v2035_v63  ;;  %v2305_v36 = vmul.f32 %v7075_v26, %v7269_v13  ;;  %v7308_v12 = vld [vmem:[#allocation2 + $0x70] sm:$0xff] }
 0x1ad   :  { %v2324_v51 = vadd.f32 %v2304_v50, %v2261_v59  ;;  %v2200_v33 = vadd.f32 %v2180_v10, %v2138_v5  ;;  %v2119_v48 = vmul.f32 %v7022_v6, %v2097_v40  ;;  %v1954_v54 = vmul.f32 %v7231_v35, %v6996_v56  ;;  %v2037_v50 = vld [vmem:[#allocation2 + $0x5a] sm:$0x3]  ;;  %v2099_v40 = vld [vmem:[#allocation2 + $0x68] sm:$0x3] }
 0x1ae   :  { %v2469_v14 = vadd.f32 %v7126_v24, %v2447_v52  ;;  %v2077_v7 = vadd.f32 %v2057_v30, %v2015_v43  ;;  %v1996_v55 = vmul.f32 %v7241_v53, %v6999_v49  ;;  %v2367_v38 = vmul.f32 %v7078_v1, %v7277_v3  ;;  %v7315_v30 = vld [vmem:[#allocation2 + $0x71] sm:$0xff] }
 0x1af   :  { %v3185_v18 = vpop.eup %3184  ;;  %v2386_v20 = vadd.f32 %v2366_v11, %v2324_v51  ;;  %v2262_v41 = vadd.f32 %v2242_v58, %v2200_v33  ;;  %v2181_v22 = vmul.f32 %v7046_v45, %v2159_v2  ;;  %v2058_v35 = vmul.f32 %v7243_v46, %v7019_v28  ;;  %v2161_v2 = vld [vmem:[#allocation2 + $0x69] sm:$0x3] }
 0x1b0   :  { %2508 = vst.msk [vmem:[#allocation5 + $0x20] sm:$0xff] %vm1872_vm0, %v3185_v18  ;;  %3188 = vtanh.f32 %v2469_v14  ;;  %v2139_v27 = vadd.f32 %v2119_v48, %v2077_v7  ;;  %v2016_v61 = vadd.f32 %v1996_v55, %v1954_v54  ;;  %v2429_v16 = vmul.f32 %v7092_v19, %v7284_v44  ;;  %v2223_v54 = vld [vmem:[#allocation2 + $0x6a] sm:$0x3]  ;;  %v2286_v55 = vld [vmem:[#allocation2 + $0x78] sm:$0x3] }
 0x1b1   :  { %v2448_v53 = vadd.f32 %v2428_v39, %v2386_v20  ;;  %v2325_v60 = vadd.f32 %v2305_v36, %v2262_v41  ;;  %v2243_v42 = vmul.f32 %v7053_v17, %v2221_v47  ;;  %v2306_v34 = vmul.f32 %v7075_v26, %v2284_v31  ;;  %v7321_v47 = vld [vmem:[#allocation2 + $0x72] sm:$0xff] }
 0x1b2   :  { %v2201_v4 = vadd.f32 %v2181_v22, %v2139_v27  ;;  %v2078_v8 = vadd.f32 %v2058_v35, %v2016_v61  ;;  %v2120_v15 = vmul.f32 %v7269_v13, %v7022_v6  ;;  %v1955_v23 = vmul.f32 %v6996_v56, %v1933_v57  ;;  %v2348_v35 = vld [vmem:[#allocation2 + $0x79] sm:$0x3] }
 0x1b3   :  { %v2470_v46 = vadd.f32 %v7126_v24, %v2448_v53  ;;  %v2387_v29 = vadd.f32 %v2367_v38, %v2325_v60  ;;  %v1997_v25 = vmul.f32 %v6999_v49, %v1975_v0  ;;  %v2368_v63 = vmul.f32 %v7078_v1, %v2346_v62  ;;  %v1935_v53 = vld [vmem:[#allocation2 + $0x68] sm:$0x3] }
 0x1b4   :  { %v3187_v37 = vpop.eup %3186  ;;  %v2263_v9 = vadd.f32 %v2243_v42, %v2201_v4  ;;  %v2140_v32 = vadd.f32 %v2120_v15, %v2078_v8  ;;  %v2182_v11 = vmul.f32 %v7277_v3, %v7046_v45  ;;  %v2059_v5 = vmul.f32 %v7019_v28, %v2037_v50  ;;  %v2039_v15 = vld [vmem:[#allocation2 + $0x6a] sm:$0x3] }
 0x1b5   :  { %2509 = vst.msk [vmem:[#allocation5 + $0x28] sm:$0x3] %vm2504_vm3, %v3187_v37  ;;  %3190 = vtanh.f32 %v2470_v46  ;;  %v2449_v59 = vadd.f32 %v2429_v16, %v2387_v29  ;;  %v2017_v39 = vadd.f32 %v1997_v25, %v1955_v23  ;;  %v2430_v52 = vmul.f32 %v7092_v19, %v2408_v21  ;;  %v7341_v29 = vld [vmem:[#allocation2 + $0x80] sm:$0xff] }
 0x1b6   :  { %v2326_v10 = vadd.f32 %v2306_v34, %v2263_v9  ;;  %v2202_v58 = vadd.f32 %v2182_v11, %v2140_v32  ;;  %v2244_v43 = vmul.f32 %v7284_v44, %v7053_v17  ;;  %v2307_v33 = vmul.f32 %v7075_v26, %v7308_v12  ;;  %v2410_v34 = vld [vmem:[#allocation2 + $0x7a] sm:$0x3] }
 0x1b7   :  { %v2471_v51 = vadd.f32 %v7126_v24, %v2449_v59  ;;  %v2079_v36 = vadd.f32 %v2059_v5, %v2017_v39  ;;  %v2121_v48 = vmul.f32 %v7022_v6, %v2099_v40  ;;  %v1956_v18 = vmul.f32 %v7269_v13, %v6996_v56  ;;  %v1977_v13 = vld [vmem:[#allocation2 + $0x69] sm:$0x3]  ;;  %v7348_v59 = vld [vmem:[#allocation2 + $0x81] sm:$0xff] }
 0x1b8   :  { %v2388_v14 = vadd.f32 %v2368_v63, %v2326_v10  ;;  %v2264_v7 = vadd.f32 %v2244_v43, %v2202_v58  ;;  %v1998_v20 = vmul.f32 %v7277_v3, %v6999_v49  ;;  %v2369_v41 = vmul.f32 %v7078_v1, %v7315_v30  ;;  %v2101_v63 = vld [vmem:[#allocation2 + $0x78] sm:$0x3] }
 0x1b9   :  { %3192 = vtanh.f32 %v2471_v51  ;;  %v2141_v38 = vadd.f32 %v2121_v48, %v2079_v36  ;;  %v2183_v22 = vmul.f32 %v7046_v45, %v2161_v2  ;;  %v2060_v0 = vmul.f32 %v7284_v44, %v7019_v28  ;;  %v7357_v2 = vld [vmem:[#allocation2 + $0x82] sm:$0xff]  ;;  %v2163_v51 = vld [vmem:[#allocation2 + $0x79] sm:$0x3] }
 0x1ba   :  { %v3189_v31 = vpop.eup %3188  ;;  %v2450_v27 = vadd.f32 %v2430_v52, %v2388_v14  ;;  %v2327_v61 = vadd.f32 %v2307_v33, %v2264_v7  ;;  %v2018_v57 = vadd.f32 %v1998_v20, %v1956_v18  ;;  %v2431_v3 = vmul.f32 %v7092_v19, %v7321_v47  ;;  %v2225_v14 = vld [vmem:[#allocation2 + $0x7a] sm:$0x3]  ;;  %v2288_v18 = vld [vmem:[#allocation2 + $0x88] sm:$0x3] }
 0x1bb   :  { %2510 = vst.msk [vmem:[#allocation5 + $0x30] sm:$0xff] %vm1872_vm0, %v3189_v31  ;;  %v2203_v60 = vadd.f32 %v2183_v22, %v2141_v38  ;;  %v2245_v16 = vmul.f32 %v7053_v17, %v2223_v54  ;;  %v2308_v42 = vmul.f32 %v7075_v26, %v2286_v55  ;;  %v2122_v44 = vmul.f32 %v7308_v12, %v7022_v6 }
 0x1bc   :  { %v2472_v62 = vadd.f32 %v7126_v24, %v2450_v27  ;;  %v2389_v4 = vadd.f32 %v2369_v41, %v2327_v61  ;;  %v2080_v8 = vadd.f32 %v2060_v0, %v2018_v57  ;;  %v2370_v46 = vmul.f32 %v7078_v1, %v2348_v35  ;;  %v1937_v61 = vld [vmem:[#allocation2 + $0x78] sm:$0x3]  ;;  %v2350_v0 = vld [vmem:[#allocation2 + $0x89] sm:$0x3] }
 0x1bd   :  { %v2265_v50 = vadd.f32 %v2245_v16, %v2203_v60  ;;  %v1957_v21 = vmul.f32 %v6996_v56, %v1935_v53  ;;  %v1999_v23 = vmul.f32 %v6999_v49, %v1977_v13  ;;  %v2184_v9 = vmul.f32 %v7315_v30, %v7046_v45  ;;  %v1979_v35 = vld [vmem:[#allocation2 + $0x79] sm:$0x3] }
 0x1be   :  { %3194 = vtanh.f32 %v2472_v62  ;;  %v2451_v25 = vadd.f32 %v2431_v3, %v2389_v4  ;;  %v2142_v37 = vadd.f32 %v2122_v44, %v2080_v8  ;;  %v2432_v40 = vmul.f32 %v7092_v19, %v2410_v34  ;;  %v2412_v4 = vld [vmem:[#allocation2 + $0x8a] sm:$0x3]  ;;  %v7377_v8 = vld [vmem:[#allocation2 + $0x90] sm:$0xff] }
 0x1bf   :  { %v3191_v32 = vpop.eup %3190  ;;  %v2328_v11 = vadd.f32 %v2308_v42, %v2265_v50  ;;  %v2019_v39 = vadd.f32 %v1999_v23, %v1957_v21  ;;  %v2061_v5 = vmul.f32 %v7019_v28, %v2039_v15  ;;  %v2246_v58 = vmul.f32 %v7321_v47, %v7053_v17  ;;  %v2041_v42 = vld [vmem:[#allocation2 + $0x7a] sm:$0x3]  ;;  %v2103_v21 = vld [vmem:[#allocation2 + $0x88] sm:$0x3] }
 0x1c0   :  { %2511 = vst.msk [vmem:[#allocation5 + $0x38] sm:$0x3] %vm2504_vm3, %v3191_v32  ;;  %v2473_v10 = vadd.f32 %v7126_v24, %v2451_v25  ;;  %v2204_v52 = vadd.f32 %v2184_v9, %v2142_v37  ;;  %v2309_v43 = vmul.f32 %v7075_v26, %v7341_v29  ;;  %v2123_v48 = vmul.f32 %v7022_v6, %v2101_v63  ;;  %v7384_v9 = vld [vmem:[#allocation2 + $0x91] sm:$0xff] }
 0x1c1   :  { %v2390_v33 = vadd.f32 %v2370_v46, %v2328_v11  ;;  %v2081_v36 = vadd.f32 %v2061_v5, %v2019_v39  ;;  %v1958_v7 = vmul.f32 %v7308_v12, %v6996_v56  ;;  %v2371_v55 = vmul.f32 %v7078_v1, %v7348_v59 }
 0x1c2   :  { %3196 = vtanh.f32 %v2473_v10  ;;  %v2266_v54 = vadd.f32 %v2246_v58, %v2204_v52  ;;  %v2000_v20 = vmul.f32 %v7315_v30, %v6999_v49  ;;  %v2433_v22 = vmul.f32 %v7092_v19, %v7357_v2  ;;  %v2165_v10 = vld [vmem:[#allocation2 + $0x89] sm:$0x3] }
 0x1c3   :  { %v3193_v41 = vpop.eup %3192  ;;  %v2452_v38 = vadd.f32 %v2432_v40, %v2390_v33  ;;  %v2143_v31 = vadd.f32 %v2123_v48, %v2081_v36  ;;  %v2185_v27 = vmul.f32 %v7046_v45, %v2163_v51  ;;  %v2247_v57 = vmul.f32 %v7053_v17, %v2225_v14  ;;  %v2227_v14 = vld [vmem:[#allocation2 + $0x8a] sm:$0x3] }
 0x1c4   :  { %2512 = vst.msk [vmem:[#allocation5 + $0x40] sm:$0xff] %vm1872_vm0, %v3193_v41  ;;  %v2329_v12 = vadd.f32 %v2309_v43, %v2266_v54  ;;  %v2020_v53 = vadd.f32 %v2000_v20, %v1958_v7  ;;  %v2062_v30 = vmul.f32 %v7321_v47, %v7019_v28  ;;  %v2310_v60 = vmul.f32 %v7075_v26, %v2288_v18  ;;  %v7394_v43 = vld [vmem:[#allocation2 + $0x92] sm:$0xff] }
 0x1c5   :  { %v2474_v13 = vadd.f32 %v7126_v24, %v2452_v38  ;;  %v2205_v3 = vadd.f32 %v2185_v27, %v2143_v31  ;;  %v2124_v16 = vmul.f32 %v7341_v29, %v7022_v6  ;;  %v1959_v44 = vmul.f32 %v6996_v56, %v1937_v61  ;;  %v2290_v7 = vld [vmem:[#allocation2 + $0x98] sm:$0x3] }
 0x1c6   :  { %v2391_v62 = vadd.f32 %v2371_v55, %v2329_v12  ;;  %v2082_v34 = vadd.f32 %v2062_v30, %v2020_v53  ;;  %v2001_v15 = vmul.f32 %v6999_v49, %v1979_v35  ;;  %v2372_v50 = vmul.f32 %v7078_v1, %v2350_v0  ;;  %v2352_v61 = vld [vmem:[#allocation2 + $0x99] sm:$0x3]  ;;  %v1981_v12 = vld [vmem:[#allocation2 + $0x89] sm:$0x3] }
 0x1c7   :  { %3198 = vtanh.f32 %v2474_v13  ;;  %v2267_v47 = vadd.f32 %v2247_v57, %v2205_v3  ;;  %v2186_v46 = vmul.f32 %v7348_v59, %v7046_v45  ;;  %v2063_v32 = vmul.f32 %v7019_v28, %v2041_v42  ;;  %v2414_v30 = vld [vmem:[#allocation2 + $0x9a] sm:$0x3]  ;;  %v2043_v42 = vld [vmem:[#allocation2 + $0x8a] sm:$0x3] }
 0x1c8   :  { %v3195_v23 = vpop.eup %3194  ;;  %v2453_v25 = vadd.f32 %v2433_v22, %v2391_v62  ;;  %v2144_v37 = vadd.f32 %v2124_v16, %v2082_v34  ;;  %v2021_v63 = vadd.f32 %v2001_v15, %v1959_v44  ;;  %v2434_v40 = vmul.f32 %v7092_v19, %v2412_v4  ;;  %v1939_v22 = vld [vmem:[#allocation2 + $0x88] sm:$0x3]  ;;  %v2291_v34 = vld [vmem:[#allocation2 + $0xa0] sm:$0xff]  ;;  %v2105_v15 = vld [vmem:[#allocation2 + $0x98] sm:$0x3] }
 0x1c9   :  { %2513 = vst.msk [vmem:[#allocation5 + $0x48] sm:$0x3] %vm2504_vm3, %v3195_v23  ;;  %v2330_v11 = vadd.f32 %v2310_v60, %v2267_v47  ;;  %v2248_v39 = vmul.f32 %v7357_v2, %v7053_v17  ;;  %v2311_v5 = vmul.f32 %v7075_v26, %v7377_v8  ;;  %v2125_v33 = vmul.f32 %v7022_v6, %v2103_v21 }
 0x1ca   :  { %v2475_v52 = vadd.f32 %v7126_v24, %v2453_v25  ;;  %v2206_v58 = vadd.f32 %v2186_v46, %v2144_v37  ;;  %v2083_v51 = vadd.f32 %v2063_v32, %v2021_v63  ;;  %v2373_v48 = vmul.f32 %v7078_v1, %v7384_v9  ;;  %v2353_v37 = vld [vmem:[#allocation2 + $0xa1] sm:$0xff] }
 0x1cb   :  { %v2392_v36 = vadd.f32 %v2372_v50, %v2330_v11  ;;  %v1960_v54 = vmul.f32 %v7341_v29, %v6996_v56  ;;  %v2002_v55 = vmul.f32 %v7348_v59, %v6999_v49  ;;  %v2187_v38 = vmul.f32 %v7046_v45, %v2165_v10  ;;  %v2415_v63 = vld [vmem:[#allocation2 + $0xa2] sm:$0xff] }
 0x1cc   :  { %v3197_v18 = vpop.eup %3196  ;;  %3200 = vtanh.f32 %v2475_v52  ;;  %v2268_v20 = vadd.f32 %v2248_v39, %v2206_v58  ;;  %v2145_v41 = vadd.f32 %v2125_v33, %v2083_v51  ;;  %v2435_v27 = vmul.f32 %v7092_v19, %v7394_v43  ;;  %v2167_v52 = vld [vmem:[#allocation2 + $0x99] sm:$0x3] }
 0x1cd   :  { %2514 = vst.msk [vmem:[#allocation5 + $0x50] sm:$0xff] %vm1872_vm0, %v3197_v18  ;;  %v2454_v31 = vadd.f32 %v2434_v40, %v2392_v36  ;;  %v2022_v35 = vadd.f32 %v2002_v55, %v1960_v54  ;;  %v2064_v29 = vmul.f32 %v7357_v2, %v7019_v28  ;;  %v2249_v0 = vmul.f32 %v7053_v17, %v2227_v14  ;;  %v2229_v54 = vld [vmem:[#allocation2 + $0x9a] sm:$0x3]  ;;  %v2292_v55 = vld [vmem:[#allocation2 + $0xa8] sm:$0x3] }
 0x1ce   :  { %v2331_v59 = vadd.f32 %v2311_v5, %v2268_v20  ;;  %v2207_v57 = vadd.f32 %v2187_v38, %v2145_v41  ;;  %v2312_v53 = vmul.f32 %v7075_v26, %v2290_v7  ;;  %v2126_v60 = vmul.f32 %v7377_v8, %v7022_v6 }
 0x1cf   :  { %v2476_v13 = vadd.f32 %v7126_v24, %v2454_v31  ;;  %v2084_v3 = vadd.f32 %v2064_v29, %v2022_v35  ;;  %v1961_v16 = vmul.f32 %v6996_v56, %v1939_v22  ;;  %v2374_v2 = vmul.f32 %v7078_v1, %v2352_v61  ;;  %v1941_v31 = vld [vmem:[#allocation2 + $0x98] sm:$0x3] }
 0x1d0   :  { %v2393_v62 = vadd.f32 %v2373_v48, %v2331_v59  ;;  %v2269_v4 = vadd.f32 %v2249_v0, %v2207_v57  ;;  %v2003_v44 = vmul.f32 %v6999_v49, %v1981_v12  ;;  %v2436_v50 = vmul.f32 %v7092_v19, %v2414_v30  ;;  %v2045_v12 = vld [vmem:[#allocation2 + $0x9a] sm:$0x3] }
 0x1d1   :  { %v3199_v47 = vpop.eup %3198  ;;  %3202 = vtanh.f32 %v2476_v13  ;;  %v2146_v46 = vadd.f32 %v2126_v60, %v2084_v3  ;;  %v2188_v21 = vmul.f32 %v7384_v9, %v7046_v45  ;;  %v2065_v11 = vmul.f32 %v7019_v28, %v2043_v42  ;;  %v2354_v13 = vld [vmem:[#allocation2 + $0xa9] sm:$0x3] }
 0x1d2   :  { %2515 = vst.msk [vmem:[#allocation5 + $0x58] sm:$0x3] %vm2504_vm3, %v3199_v47  ;;  %v2455_v23 = vadd.f32 %v2435_v27, %v2393_v62  ;;  %v2332_v25 = vadd.f32 %v2312_v53, %v2269_v4  ;;  %v2023_v32 = vadd.f32 %v2003_v44, %v1961_v16  ;;  %v2250_v39 = vmul.f32 %v7394_v43, %v7053_v17  ;;  %v1983_v27 = vld [vmem:[#allocation2 + $0x99] sm:$0x3]  ;;  %v2107_v53 = vld [vmem:[#allocation2 + $0xa8] sm:$0x3] }
 0x1d3   :  { %v2208_v40 = vadd.f32 %v2188_v21, %v2146_v46  ;;  %v2313_v5 = vmul.f32 %v7075_v26, %v2291_v34  ;;  %v2127_v10 = vmul.f32 %v7022_v6, %v2105_v15  ;;  %v1962_v36 = vmul.f32 %v7377_v8, %v6996_v56  ;;  %v2293_v62 = vld [vmem:[#allocation2 + $0xb0] sm:$0xff]  ;;  %v2416_v44 = vld [vmem:[#allocation2 + $0xaa] sm:$0x3] }
 0x1d4   :  { %v2477_v58 = vadd.f32 %v7126_v24, %v2455_v23  ;;  %v2394_v51 = vadd.f32 %v2374_v2, %v2332_v25  ;;  %v2085_v33 = vadd.f32 %v2065_v11, %v2023_v32  ;;  %v2375_v14 = vmul.f32 %v7078_v1, %v2353_v37  ;;  %v2169_v21 = vld [vmem:[#allocation2 + $0xa9] sm:$0x3] }
 0x1d5   :  { %v2270_v48 = vadd.f32 %v2250_v39, %v2208_v40  ;;  %v2437_v7 = vmul.f32 %v7092_v19, %v2415_v63  ;;  %v2004_v18 = vmul.f32 %v7384_v9, %v6999_v49  ;;  %v2189_v22 = vmul.f32 %v7046_v45, %v2167_v52  ;;  %v2231_v39 = vld [vmem:[#allocation2 + $0xaa] sm:$0x3] }
 0x1d6   :  { %v3201_v20 = vpop.eup %3200  ;;  %3204 = vtanh.f32 %v2477_v58  ;;  %v2456_v41 = vadd.f32 %v2436_v50, %v2394_v51  ;;  %v2147_v38 = vadd.f32 %v2127_v10, %v2085_v33  ;;  %v2066_v35 = vmul.f32 %v7394_v43, %v7019_v28  ;;  %v2417_v33 = vld [vmem:[#allocation2 + $0xb2] sm:$0xff] }
 0x1d7   :  { %2516 = vst.msk [vmem:[#allocation5 + $0x60] sm:$0xff] %vm1872_vm0, %v3201_v20  ;;  %v2333_v8 = vadd.f32 %v2313_v5, %v2270_v48  ;;  %v2024_v61 = vadd.f32 %v2004_v18, %v1962_v36  ;;  %v2128_v29 = vmul.f32 %v2291_v34, %v7022_v6  ;;  %v2251_v57 = vmul.f32 %v7053_v17, %v2229_v54 }
 0x1d8   :  { %v2478_v9 = vadd.f32 %v7126_v24, %v2456_v41  ;;  %v2209_v59 = vadd.f32 %v2189_v22, %v2147_v38  ;;  %v2314_v0 = vmul.f32 %v7075_v26, %v2292_v55  ;;  %v1963_v60 = vmul.f32 %v6996_v56, %v1941_v31  ;;  %v2356_v55 = vld [vmem:[#allocation2 + $0xb9] sm:$0x3] }
 0x1d9   :  { %v2395_v30 = vadd.f32 %v2375_v14, %v2333_v8  ;;  %v2086_v3 = vadd.f32 %v2066_v35, %v2024_v61  ;;  %v2005_v16 = vmul.f32 %v6999_v49, %v1983_v27  ;;  %v2190_v42 = vmul.f32 %v2353_v37, %v7046_v45  ;;  %v2355_v37 = vld [vmem:[#allocation2 + $0xb1] sm:$0xff]  ;;  %v2418_v38 = vld [vmem:[#allocation2 + $0xba] sm:$0x3] }
 0x1da   :  { %3206 = vtanh.f32 %v2478_v9  ;;  %v2271_v43 = vadd.f32 %v2251_v57, %v2209_v59  ;;  %v2067_v4 = vmul.f32 %v7019_v28, %v2045_v12  ;;  %v2129_v50 = vmul.f32 %v7022_v6, %v2107_v53  ;;  %v2294_v6 = vld [vmem:[#allocation2 + $0xb8] sm:$0x3] }
 0x1db   :  { %v3203_v2 = vpop.eup %3202  ;;  %v2457_v34 = vadd.f32 %v2437_v7, %v2395_v30  ;;  %v2148_v15 = vadd.f32 %v2128_v29, %v2086_v3  ;;  %v2025_v47 = vadd.f32 %v2005_v16, %v1963_v60  ;;  %v2376_v56 = vmul.f32 %v7078_v1, %v2354_v13 }
 0x1dc   :  { %2517 = vst.msk [vmem:[#allocation5 + $0x68] sm:$0x3] %vm2504_vm3, %v3203_v2  ;;  %v2334_v46 = vadd.f32 %v2314_v0, %v2271_v43  ;;  %v2252_v49 = vmul.f32 %v2415_v63, %v7053_v17  ;;  %v2315_v28 = vmul.f32 %v7075_v26, %v2293_v62  ;;  %v2438_v40 = vmul.f32 %v7092_v19, %v2416_v44 }
 0x1dd   :  { %v2479_v23 = vadd.f32 %v7126_v24, %v2457_v34  ;;  %v2210_v25 = vadd.f32 %v2190_v42, %v2148_v15  ;;  %v2087_v32 = vadd.f32 %v2067_v4, %v2025_v47  ;;  %v2191_v52 = vmul.f32 %v7046_v45, %v2169_v21 }
 0x1de   :  { %v2396_v11 = vadd.f32 %v2376_v56, %v2334_v46  ;;  %v2377_v51 = vmul.f32 %v7078_v1, %v2355_v37  ;;  %v2253_v14 = vmul.f32 %v7053_v17, %v2231_v39  ;;  %v2316_v7 = vmul.f32 %v7075_v26, %v2294_v6 }
 0x1df   :  { %3208 = vtanh.f32 %v2479_v23  ;;  %v2272_v5 = vadd.f32 %v2252_v49, %v2210_v25  ;;  %v2149_v10 = vadd.f32 %v2129_v50, %v2087_v32  ;;  %v2439_v20 = vmul.f32 %v7092_v19, %v2417_v33 }
 0x1e0   :  { %v3205_v58 = vpop.eup %3204  ;;  %v2458_v63 = vadd.f32 %v2438_v40, %v2396_v11  ;;  %v2378_v27 = vmul.f32 %v7078_v1, %v2356_v55  ;;  %v2440_v26 = vmul.f32 %v7092_v19, %v2418_v38 }
 0x1e1   :  { %2518 = vst.msk [vmem:[#allocation5 + $0x70] sm:$0xff] %vm1872_vm0, %v3205_v58  ;;  %v2335_v36 = vadd.f32 %v2315_v28, %v2272_v5  ;;  %v2211_v48 = vadd.f32 %v2191_v52, %v2149_v10 }
 0x1e2   :  { %v2480_v54 = vadd.f32 %v7126_v24, %v2458_v63 }
 0x1e3   :  { %v2397_v18 = vadd.f32 %v2377_v51, %v2335_v36  ;;  %v2273_v45 = vadd.f32 %v2253_v14, %v2211_v48 }
 0x1e4   :  { %v3207_v41 = vpop.eup %3206  ;;  %3210 = vtanh.f32 %v2480_v54 }
 0x1e5   :  { %2519 = vst.msk [vmem:[#allocation5 + $0x78] sm:$0x3] %vm2504_vm3, %v3207_v41  ;;  %v2459_v22 = vadd.f32 %v2439_v20, %v2397_v18  ;;  %v2336_v31 = vadd.f32 %v2316_v7, %v2273_v45 }
 0x1e7   :  { %v2481_v17 = vadd.f32 %v7126_v24, %v2459_v22  ;;  %v2398_v8 = vadd.f32 %v2378_v27, %v2336_v31 }
 0x1e9   :  { %v3209_v61 = vpop.eup %3208  ;;  %3212 = vtanh.f32 %v2481_v17  ;;  %v2460_v35 = vadd.f32 %v2440_v26, %v2398_v8 }
 0x1ea   :  { %2520 = vst.msk [vmem:[#allocation5 + $0x80] sm:$0xff] %vm1872_vm0, %v3209_v61 }
 0x1eb   :  { %v2482_v29 = vadd.f32 %v7126_v24, %v2460_v35 }
 0x1ed   :  { %3214 = vtanh.f32 %v2482_v29 }
 0x1ee   :  { %v3211_v12 = vpop.eup %3210 }
 0x1ef   :  { %2521 = vst.msk [vmem:[#allocation5 + $0x88] sm:$0x3] %vm2504_vm3, %v3211_v12 }
 0x1f3   :  { %v3213_v9 = vpop.eup %3212 }
 0x1f4   :  { %2522 = vst.msk [vmem:[#allocation5 + $0x90] sm:$0xff] %vm1872_vm0, %v3213_v9 }
 0x1f7   :  { %v3215_v1 = vpop.eup %3214 }
 0x1f8   :  { %2523 = vst.msk [vmem:[#allocation5 + $0x98] sm:$0x3] %vm2504_vm3, %v3215_v1 }
 0x1f9   :  { %3239 = shalt.err (!%p3236_p9)
}
 0x1fa   :  { %s3240_s19 = scalar_lea.hbm %s7482_s2, 2560 }
 0x1fb   :  { %p3241_p10 = scmp.ne.s32.totalorder %s7482_s2, %s3240_s19  ;;  %p3244_p11 = scmp.lt.u32.totalorder %s3240_s19, %s7482_s2 }
 0x1fd   :  { %p3246_p12 = pnand %p3244_p11, %p3241_p10 }
 0x1ff   :  { %3249 = shalt.err (!%p3246_p12)
}
 0x200   :  { %s3257_s17 = smov 128   ;;  %s3258_s3 = smov 8  }
 0x201   :  { %2535 = dma.vmem_to_hbm [thread:$0]  %s2530_s11, 2560, %s7482_s2, [#allocation6], %s3257_s17, %s3257_s17, %s3258_s3  }
 0x202   :  { %3252 = dma.done.wait [#allocation6], 2560  }
 0x203   :  { %3253 = vsyncadd [#allocation6], 4294964736 }
 0x204   :  { %2539 = vsyncpa [#allocation6], 1 }

</bundles_post_ra>
